<compile_context>
chip_gen: v6e
topology: v6e:2x2x1
jax: 0.10.0
libtpu: 0.0.40
codegen_flags: <defaults>
</compile_context>

<pallas_src>
import numpy as np
import jax
import jax.numpy as jnp
from jax.experimental import pallas as pl
from jax.experimental.pallas import tpu as pltpu

# ---------------- small-but-consistent configuration ----------------
B = 2                 # batch
IN_CHANS = 2          # in_chans
IMG = 16              # img_size
PATCH = 4             # patch_size
EMBED = 32            # embed_dim
DEPTH = 2             # depth
HEADS = 4             # num_heads
HEAD_DIM = EMBED // HEADS                  # 8
MLP_HIDDEN = int(EMBED * 4.0)              # 128
REPR = 32             # repr_dim
NUM_PATCHES = (IMG // PATCH) ** 2          # 16
SEQ = NUM_PATCHES + 1                      # 17
SEQ_PAD = 24          # SEQ padded to a sublane multiple (8)
BS = B * SEQ_PAD      # 48  : batch folded into the sublane axis
HBS = HEADS * BS      # 192 : head-expanded key axis (lane axis of scores)
PATCH_DIM = IN_CHANS * PATCH * PATCH       # 32
OUT_PAD = 128         # lane-dense output width (sliced back to REPR)
LN_EPS = 1e-5
NEG_INF = -1e30


def _layernorm(v, g, b):
    # PyTorch nn.LayerNorm: biased variance, eps inside the sqrt.
    mu = jnp.mean(v, axis=-1, keepdims=True)
    var = jnp.mean(jnp.square(v - mu), axis=-1, keepdims=True)
    return (v - mu) * jax.lax.rsqrt(var + LN_EPS) * g + b


# ---------------- the Pallas kernel (whole batch in one step) ----------------
def vit_kernel(patches_ref,    # (BS, PATCH_DIM) bf16  cls slots & pad rows = 0
               proj_w_ref,     # (PATCH_DIM, EMBED) bf16
               embed_add_ref,  # (BS, EMBED) f32  cls+pos / proj_b+pos per batch, pad=0
               wqkv_ref,       # (DEPTH, EMBED, 3*EMBED) bf16  [wq*scale|wk|wv]
               lvw_ref,        # (DEPTH, 2, 128) f32  row0=[bq*scale|bk|bv|0] row1=b1
               wo_ref,         # (DEPTH, EMBED, EMBED) bf16
               w1_ref,         # (DEPTH, EMBED, MLP_HIDDEN) bf16
               w2_ref,         # (DEPTH, MLP_HIDDEN, EMBED) bf16
               lve_ref,        # (DEPTH+1, 8, EMBED) f32 rows: ln1_g,ln1_b,bo,ln2_g,ln2_b,b2 / [D]=lnf
               amask_ref,      # (BS, HBS)  f32 additive: 0 valid / -1e30 pad-key or cross-batch
               hmask_ref,      # (HBS, EMBED) f32 0/1 head block-diagonal mask
               ones_bd_ref,    # (HBS, HBS) f32 per-head block of ones (softmax denom bcast)
               sel_ref,        # (B, BS)    f32 cls-row selector
               head_w_ref,     # (EMBED, OUT_PAD) bf16  fc_w padded to 128 lanes
               head_b_ref,     # (1, OUT_PAD)     f32   fc_b padded (zeros beyond REPR)
               out_ref):       # (B, OUT_PAD) f32
    # ---- patch embedding: one full-tile bf16 matmul + f32 add (no concat) ----
    x = jnp.dot(patches_ref[...], proj_w_ref[...],
                preferred_element_type=jnp.float32) + embed_add_ref[...]   # (BS, EMBED) f32

    amask = amask_ref[...]        # (BS, HBS)
    hmask = hmask_ref[...]        # (HBS, EMBED)

    for d in range(DEPTH):
        # ======== TransformerEncoder block d (matches the PyTorch spec) ========
        # ---- multi-head self-attention on LayerNorm'd x ----
        xn = _layernorm(x, lve_ref[d, 0:1, :], lve_ref[d, 1:2, :])
        qkv = jnp.dot(xn.astype(jnp.bfloat16), wqkv_ref[d],
                      preferred_element_type=jnp.float32) + lvw_ref[d, 0:1, 0:3 * EMBED]
        q = qkv[:, 0 * EMBED:1 * EMBED]        # (BS, EMBED)  pre-scaled by 1/sqrt(dh)
        k = qkv[:, 1 * EMBED:2 * EMBED]
        v = qkv[:, 2 * EMBED:3 * EMBED]

        # head-expanded K / V: sublane tile (offsets are multiples of 8) * 0/1 head
        # mask -> keeps every attention matmul lane-dense, no per-head relayouts.
        k_bd = jnp.concatenate([k] * HEADS, axis=0) * hmask     # (HBS, EMBED)
        v_bd = jnp.concatenate([v] * HEADS, axis=0) * hmask     # (HBS, EMBED)

        # scores[i, (h,b',k)] = q_h[i] . k_h[(b',k)]   (f32 score/softmax path)
        s = jax.lax.dot_general(q, k_bd, (((1,), (1,)), ((), ())),
                                preferred_element_type=jnp.float32) + amask   # (BS, HBS)
        s = s - jnp.max(s, axis=-1, keepdims=True)       # row-global max: per-head safe
        e = jnp.exp(s)                                   # masked cols underflow to exact 0
        denom = jnp.dot(e, ones_bd_ref[...],
                        preferred_element_type=jnp.float32)      # per-head sums, broadcast
        p = e * pl.reciprocal(denom, approx=True)
        ctx = jnp.dot(p, v_bd, preferred_element_type=jnp.float32)   # (BS, EMBED), head-ordered
        attn = jnp.dot(ctx.astype(jnp.bfloat16), wo_ref[d],
                       preferred_element_type=jnp.float32) + lve_ref[d, 2:3, :]
        x = x + attn                                     # residual (dropout p = 0)

        # ---- MLP on LayerNorm'd x ----
        xn2 = _layernorm(x, lve_ref[d, 3:4, :], lve_ref[d, 4:5, :])
        h1 = jnp.dot(xn2.astype(jnp.bfloat16), w1_ref[d],
                     preferred_element_type=jnp.float32) + lvw_ref[d, 1:2, :]
        h1 = jnp.maximum(h1, 0.0)                        # ReLU
        h2 = jnp.dot(h1.astype(jnp.bfloat16), w2_ref[d],
                     preferred_element_type=jnp.float32) + lve_ref[d, 5:6, :]
        x = x + h2                                       # residual

    # cls rows via a selection matmul (no strided sublane gather), final LN,
    # fc (padded to 128 lanes) and exact-rsqrt L2 normalization.
    cls = jnp.dot(sel_ref[...], x, preferred_element_type=jnp.float32)   # (B, EMBED)
    cls = _layernorm(cls, lve_ref[DEPTH, 0:1, :], lve_ref[DEPTH, 1:2, :])
    out = jnp.dot(cls.astype(jnp.bfloat16), head_w_ref[...],
                  preferred_element_type=jnp.float32) + head_b_ref[...]   # (B, OUT_PAD)
    # padded lanes of `out` are exactly zero, so the norm only sees REPR lanes
    sumsq = jnp.sum(out * out, axis=-1, keepdims=True)
    out_ref[...] = out * jax.lax.rsqrt(jnp.maximum(sumsq, 1e-24))


# ---------------- wrapper ----------------
def _spec(shape):
    zeros = (0,) * len(shape)
    return pl.BlockSpec(shape, lambda i, _z=zeros: _z)


def vit_forward(x, params):
    Bsz, C, H, W = x.shape
    assert Bsz == B and C == IN_CHANS and H == IMG and W == IMG
    hp, wp = H // PATCH, W // PATCH

    # PyTorch: unfold(2,P,P).unfold(3,P,P).permute(0,2,3,1,4,5).reshape(B,N,-1)
    patches = x.reshape(Bsz, C, hp, PATCH, wp, PATCH)
    patches = patches.transpose(0, 2, 4, 1, 3, 5).reshape(Bsz, NUM_PATCHES, PATCH_DIM)

    # batch folded into the sublane axis: row index = b*SEQ_PAD + s.
    # cls slot (s=0) and pad rows stay zero.
    patches_pad = jnp.zeros((Bsz, SEQ_PAD, PATCH_DIM), jnp.float32)
    patches_pad = patches_pad.at[:, 1:SEQ, :].set(patches.astype(jnp.float32))
    patches_pad = patches_pad.reshape(BS, PATCH_DIM).astype(jnp.bfloat16)

    scale = 1.0 / float(np.sqrt(HEAD_DIM))

    # additive embedding: row0 = cls+pos[0], rows 1..SEQ = proj_b+pos[1:], pad = 0
    embed_one = jnp.zeros((SEQ_PAD, EMBED), jnp.float32)
    embed_one = embed_one.at[0:1, :].set(params["cls"] + params["pos"][0:1])
    embed_one = embed_one.at[1:SEQ, :].set(params["proj_b"] + params["pos"][1:])
    embed_add = jnp.tile(embed_one, (Bsz, 1))                       # (BS, EMBED)

    # fused QKV weights in bf16, scale folded into wq/bq; Wo stays separate
    wqkv = jnp.concatenate([params["wq"] * scale, params["wk"], params["wv"]],
                           axis=-1).astype(jnp.bfloat16)            # (D, E, 3E)
    bqkv = jnp.concatenate(
        [params["bq"] * scale, params["bk"], params["bv"],
         jnp.zeros((DEPTH, 1, MLP_HIDDEN - 3 * EMBED), jnp.float32)], axis=-1)
    lvw = jnp.concatenate([bqkv, params["b1"]], axis=1)             # (D, 2, 128) f32

    # narrow (EMBED-wide) per-layer vectors + final LN in slot DEPTH
    lve = jnp.zeros((DEPTH + 1, 8, EMBED), jnp.float32)
    for d in range(DEPTH):
        rows = jnp.concatenate([params["ln1_g"][d], params["ln1_b"][d],
                                params["bo"][d], params["ln2_g"][d],
                                params["ln2_b"][d], params["b2"][d]], axis=0)
        lve = lve.at[d, 0:6, :].set(rows)
    lve = lve.at[DEPTH, 0:2, :].set(
        jnp.concatenate([params["lnf_g"], params["lnf_b"]], axis=0))

    # ---- constant structural arrays (columns indexed (head, batch, key)) ----
    j = np.arange(HBS)
    col_r = j % BS                         # folded (batch,key) row index of the key
    col_b = col_r // SEQ_PAD               # key batch
    col_k = col_r % SEQ_PAD                # key position
    col_h = j // BS                        # head
    row_b = np.arange(BS) // SEQ_PAD       # query batch
    amask = np.where((col_k[None, :] < SEQ) & (col_b[None, :] == row_b[:, None]),
                     0.0, NEG_INF).astype(np.float32)               # (BS, HBS)
    hmask = (col_h[:, None] ==
             (np.arange(EMBED) // HEAD_DIM)[None, :]).astype(np.float32)   # (HBS, EMBED)
    ones_bd = (col_h[:, None] == col_h[None, :]).astype(np.float32)        # (HBS, HBS)
    sel = np.zeros((Bsz, BS), np.float32)
    sel[np.arange(Bsz), np.arange(Bsz) * SEQ_PAD] = 1.0             # cls-row selector

    # head: fc_w / fc_b padded to 128 output lanes (lane-dense output store)
    head_w = jnp.zeros((EMBED, OUT_PAD), jnp.float32
                       ).at[:, 0:REPR].set(params["fc_w"]).astype(jnp.bfloat16)
    head_b = jnp.zeros((1, OUT_PAD), jnp.float32).at[:, 0:REPR].set(params["fc_b"])

    args = [patches_pad,
            params["proj_w"].astype(jnp.bfloat16),
            embed_add,
            wqkv, lvw,
            params["wo"].astype(jnp.bfloat16),
            params["w1"].astype(jnp.bfloat16),
            params["w2"].astype(jnp.bfloat16),
            lve,
            jnp.asarray(amask), jnp.asarray(hmask), jnp.asarray(ones_bd),
            jnp.asarray(sel), head_w, head_b]

    out = pl.pallas_call(
        vit_kernel,
        out_shape=jax.ShapeDtypeStruct((Bsz, OUT_PAD), jnp.float32),
        grid_spec=pltpu.PrefetchScalarGridSpec(
            num_scalar_prefetch=0,
            grid=(1,),                      # collapsed: batch folded into sublanes
            in_specs=[_spec(a.shape) for a in args],
            out_specs=pl.BlockSpec((Bsz, OUT_PAD), lambda i: (0, 0)),
        ),
        compiler_params=pltpu.CompilerParams(
            dimension_semantics=("arbitrary",)),
    )(*args)
    return out[:, :REPR]


# ---------------- pure-JAX reference (same math, no Pallas, unpadded, f32) ----------------
def ref_forward(x, params):
    Bsz, C, H, W = x.shape
    hp, wp = H // PATCH, W // PATCH
    patches = x.reshape(Bsz, C, hp, PATCH, wp, PATCH)
    patches = patches.transpose(0, 2, 4, 1, 3, 5).reshape(Bsz, NUM_PATCHES, PATCH_DIM)

    def single(p):
        tok = p @ params["proj_w"] + params["proj_b"] + params["pos"][1:]
        xs = jnp.concatenate([params["cls"] + params["pos"][0:1], tok], axis=0)
        scale = 1.0 / float(np.sqrt(HEAD_DIM))
        for d in range(DEPTH):
            xn = _layernorm(xs, params["ln1_g"][d], params["ln1_b"][d])
            q = xn @ params["wq"][d] + params["bq"][d]
            k = xn @ params["wk"][d] + params["bk"][d]
            v = xn @ params["wv"][d] + params["bv"][d]
            outs = []
            for h in range(HEADS):
                sl = slice(h * HEAD_DIM, (h + 1) * HEAD_DIM)
                s = (q[:, sl] * scale) @ k[:, sl].T
                a = jax.nn.softmax(s, axis=-1)
                outs.append(a @ v[:, sl])
            attn = jnp.concatenate(outs, axis=-1) @ params["wo"][d] + params["bo"][d]
            xs = xs + attn
            xn2 = _layernorm(xs, params["ln2_g"][d], params["ln2_b"][d])
            h1 = jnp.maximum(xn2 @ params["w1"][d] + params["b1"][d], 0.0)
            xs = xs + h1 @ params["w2"][d] + params["b2"][d]
        xs = _layernorm(xs, params["lnf_g"], params["lnf_b"])
        cls = xs[0:1, :] @ params["fc_w"] + params["fc_b"]
        nrm = jnp.sqrt(jnp.sum(cls * cls, axis=-1, keepdims=True))
        return (cls / jnp.maximum(nrm, 1e-12))[0]

    return jax.vmap(single)(patches)


# ---------------- deterministic parameter init ----------------
def make_params(key):
    ks = iter(jax.random.split(key, 40))

    def rnd(shape, scale):
        return (scale * jax.random.normal(next(ks), shape)).astype(jnp.float32)

    p = {
        "proj_w": rnd((PATCH_DIM, EMBED), 0.05),
        "proj_b": rnd((1, EMBED), 0.02),
        "cls":    rnd((1, EMBED), 0.02),
        "pos":    rnd((SEQ, EMBED), 0.02),
        "ln1_g":  jnp.ones((DEPTH, 1, EMBED), jnp.float32),
        "ln1_b":  jnp.zeros((DEPTH, 1, EMBED), jnp.float32),
        "wq":     rnd((DEPTH, EMBED, EMBED), 0.05),
        "bq":     rnd((DEPTH, 1, EMBED), 0.02),
        "wk":     rnd((DEPTH, EMBED, EMBED), 0.05),
        "bk":     rnd((DEPTH, 1, EMBED), 0.02),
        "wv":     rnd((DEPTH, EMBED, EMBED), 0.05),
        "bv":     rnd((DEPTH, 1, EMBED), 0.02),
        "wo":     rnd((DEPTH, EMBED, EMBED), 0.05),
        "bo":     rnd((DEPTH, 1, EMBED), 0.02),
        "ln2_g":  jnp.ones((DEPTH, 1, EMBED), jnp.float32),
        "ln2_b":  jnp.zeros((DEPTH, 1, EMBED), jnp.float32),
        "w1":     rnd((DEPTH, EMBED, MLP_HIDDEN), 0.05),
        "b1":     rnd((DEPTH, 1, MLP_HIDDEN), 0.02),
        "w2":     rnd((DEPTH, MLP_HIDDEN, EMBED), 0.05),
        "b2":     rnd((DEPTH, 1, EMBED), 0.02),
        "lnf_g":  jnp.ones((1, EMBED), jnp.float32),
        "lnf_b":  jnp.zeros((1, EMBED), jnp.float32),
        "fc_w":   rnd((EMBED, REPR), 0.1),
        "fc_b":   jnp.zeros((1, REPR), jnp.float32),
    }
    return p


if __name__ == "__main__":
    key = jax.random.PRNGKey(0)
    kx, kp = jax.random.split(key)
    x = jax.random.normal(kx, (B, IN_CHANS, IMG, IMG), dtype=jnp.float32)
    params = make_params(kp)

    out = jax.block_until_ready(vit_forward(x, params))
    ref = jax.block_until_ready(ref_forward(x, params))
    np.testing.assert_allclose(np.asarray(out), np.asarray(ref), atol=5e-2, rtol=0)

    assert out.shape == (B, REPR)
    print("KERNEL_OK")
</pallas_src>

<mosaic_0001>
module attributes {stable_mosaic.version = 11 : i64} {
  func.func @vit_kernel(%arg0: i32, %arg1: memref<48x32xbf16, #tpu.memory_space<vmem>>, %arg2: memref<32x32xbf16, #tpu.memory_space<vmem>>, %arg3: memref<48x32xf32, #tpu.memory_space<vmem>>, %arg4: memref<2x32x96xbf16, #tpu.memory_space<vmem>>, %arg5: memref<2x2x128xf32, #tpu.memory_space<vmem>>, %arg6: memref<2x32x32xbf16, #tpu.memory_space<vmem>>, %arg7: memref<2x32x128xbf16, #tpu.memory_space<vmem>>, %arg8: memref<2x128x32xbf16, #tpu.memory_space<vmem>>, %arg9: memref<3x8x32xf32, #tpu.memory_space<vmem>>, %arg10: memref<48x192xf32, #tpu.memory_space<vmem>>, %arg11: memref<192x32xf32, #tpu.memory_space<vmem>>, %arg12: memref<192x192xf32, #tpu.memory_space<vmem>>, %arg13: memref<2x48xf32, #tpu.memory_space<vmem>>, %arg14: memref<32x128xbf16, #tpu.memory_space<vmem>>, %arg15: memref<1x128xf32, #tpu.memory_space<vmem>>, %arg16: memref<2x128xf32, #tpu.memory_space<vmem>>) attributes {dimension_semantics = [#tpu.dimension_semantics<arbitrary>], iteration_bounds = array<i64: 1>, scalar_prefetch = 0 : i64, scratch_operands = 0 : i64, tpu.core_type = #tpu.core_type<tc>, window_params = [{pipeline_mode = #tpu.pipeline_mode<synchronous>, transform_indices = @transform_0, window_bounds = array<i64: 48, 32>}, {pipeline_mode = #tpu.pipeline_mode<synchronous>, transform_indices = @transform_1, window_bounds = array<i64: 32, 32>}, {pipeline_mode = #tpu.pipeline_mode<synchronous>, transform_indices = @transform_2, window_bounds = array<i64: 48, 32>}, {pipeline_mode = #tpu.pipeline_mode<synchronous>, transform_indices = @transform_3, window_bounds = array<i64: 2, 32, 96>}, {pipeline_mode = #tpu.pipeline_mode<synchronous>, transform_indices = @transform_4, window_bounds = array<i64: 2, 2, 128>}, {pipeline_mode = #tpu.pipeline_mode<synchronous>, transform_indices = @transform_5, window_bounds = array<i64: 2, 32, 32>}, {pipeline_mode = #tpu.pipeline_mode<synchronous>, transform_indices = @transform_6, window_bounds = array<i64: 2, 32, 128>}, {pipeline_mode = #tpu.pipeline_mode<synchronous>, transform_indices = @transform_7, window_bounds = array<i64: 2, 128, 32>}, {pipeline_mode = #tpu.pipeline_mode<synchronous>, transform_indices = @transform_8, window_bounds = array<i64: 3, 8, 32>}, {pipeline_mode = #tpu.pipeline_mode<synchronous>, transform_indices = @transform_9, window_bounds = array<i64: 48, 192>}, {pipeline_mode = #tpu.pipeline_mode<synchronous>, transform_indices = @transform_10, window_bounds = array<i64: 192, 32>}, {pipeline_mode = #tpu.pipeline_mode<synchronous>, transform_indices = @transform_11, window_bounds = array<i64: 192, 192>}, {pipeline_mode = #tpu.pipeline_mode<synchronous>, transform_indices = @transform_12, window_bounds = array<i64: 2, 48>}, {pipeline_mode = #tpu.pipeline_mode<synchronous>, transform_indices = @transform_13, window_bounds = array<i64: 32, 128>}, {pipeline_mode = #tpu.pipeline_mode<synchronous>, transform_indices = @transform_14, window_bounds = array<i64: 1, 128>}, {pipeline_mode = #tpu.pipeline_mode<synchronous>, transform_indices = @transform_15, window_bounds = array<i64: 2, 128>}]} {
    %c0 = arith.constant 0 : index
    %c0_0 = arith.constant 0 : index
    %0 = vector.load %arg1[%c0, %c0_0] : memref<48x32xbf16, #tpu.memory_space<vmem>>, vector<48x32xbf16>
    %c0_1 = arith.constant 0 : index
    %c0_2 = arith.constant 0 : index
    %1 = vector.load %arg2[%c0_1, %c0_2] : memref<32x32xbf16, #tpu.memory_space<vmem>>, vector<32x32xbf16>
    %cst = arith.constant dense<0.000000e+00> : vector<48x32xf32>
    %2 = tpu.matmul %0, %1, %cst {dimension_numbers = #tpu.dot_dimension_numbers<[1], [0], [0], [1], [0, 0, 1, 1], [], []>} : vector<48x32xbf16>, vector<32x32xbf16>, vector<48x32xf32> -> vector<48x32xf32>
    %c0_3 = arith.constant 0 : index
    %c0_4 = arith.constant 0 : index
    %3 = vector.load %arg3[%c0_3, %c0_4] : memref<48x32xf32, #tpu.memory_space<vmem>>, vector<48x32xf32>
    %4 = arith.addf %2, %3 : vector<48x32xf32>
    %c0_5 = arith.constant 0 : index
    %c0_6 = arith.constant 0 : index
    %5 = vector.load %arg10[%c0_5, %c0_6] : memref<48x192xf32, #tpu.memory_space<vmem>>, vector<48x192xf32>
    %c0_7 = arith.constant 0 : index
    %c0_8 = arith.constant 0 : index
    %6 = vector.load %arg11[%c0_7, %c0_8] : memref<192x32xf32, #tpu.memory_space<vmem>>, vector<192x32xf32>
    %c0_9 = arith.constant 0 : index
    %c0_10 = arith.constant 0 : index
    %c0_11 = arith.constant 0 : index
    %7 = vector.load %arg9[%c0_9, %c0_10, %c0_11] : memref<3x8x32xf32, #tpu.memory_space<vmem>>, vector<1x1x32xf32>
    %8 = vector.shape_cast %7 : vector<1x1x32xf32> to vector<1x32xf32>
    %c0_12 = arith.constant 0 : index
    %c1 = arith.constant 1 : index
    %c0_13 = arith.constant 0 : index
    %9 = vector.load %arg9[%c0_12, %c1, %c0_13] : memref<3x8x32xf32, #tpu.memory_space<vmem>>, vector<1x1x32xf32>
    %10 = vector.shape_cast %9 : vector<1x1x32xf32> to vector<1x32xf32>
    %cst_14 = arith.constant dense<0.000000e+00> : vector<48xf32>
    %11 = vector.multi_reduction <add>, %4, %cst_14 [1] : vector<48x32xf32> to vector<48xf32>
    %12 = vector.shape_cast %11 : vector<48xf32> to vector<48x1xf32>
    %cst_15 = arith.constant 3.200000e+01 : f32
    %13 = vector.broadcast %cst_15 : f32 to vector<48x1xf32>
    %14 = arith.divf %12, %13 : vector<48x1xf32>
    %15 = vector.broadcast %14 : vector<48x1xf32> to vector<48x32xf32>
    %16 = arith.subf %4, %15 : vector<48x32xf32>
    %17 = arith.mulf %16, %16 : vector<48x32xf32>
    %cst_16 = arith.constant dense<0.000000e+00> : vector<48xf32>
    %18 = vector.multi_reduction <add>, %17, %cst_16 [1] : vector<48x32xf32> to vector<48xf32>
    %19 = vector.shape_cast %18 : vector<48xf32> to vector<48x1xf32>
    %cst_17 = arith.constant 3.200000e+01 : f32
    %20 = vector.broadcast %cst_17 : f32 to vector<48x1xf32>
    %21 = arith.divf %19, %20 : vector<48x1xf32>
    %22 = vector.broadcast %14 : vector<48x1xf32> to vector<48x32xf32>
    %23 = arith.subf %4, %22 : vector<48x32xf32>
    %cst_18 = arith.constant 9.99999974E-6 : f32
    %24 = vector.broadcast %cst_18 : f32 to vector<48x1xf32>
    %25 = arith.addf %21, %24 : vector<48x1xf32>
    %26 = math.rsqrt %25 : vector<48x1xf32>
    %27 = vector.broadcast %26 : vector<48x1xf32> to vector<48x32xf32>
    %28 = arith.mulf %23, %27 : vector<48x32xf32>
    %29 = vector.broadcast %8 : vector<1x32xf32> to vector<48x32xf32>
    %30 = arith.mulf %28, %29 : vector<48x32xf32>
    %31 = vector.broadcast %10 : vector<1x32xf32> to vector<48x32xf32>
    %32 = arith.addf %30, %31 : vector<48x32xf32>
    %33 = arith.truncf %32 : vector<48x32xf32> to vector<48x32xbf16>
    %c0_19 = arith.constant 0 : index
    %c0_20 = arith.constant 0 : index
    %c0_21 = arith.constant 0 : index
    %34 = vector.load %arg4[%c0_19, %c0_20, %c0_21] : memref<2x32x96xbf16, #tpu.memory_space<vmem>>, vector<1x32x96xbf16>
    %35 = vector.shape_cast %34 : vector<1x32x96xbf16> to vector<32x96xbf16>
    %cst_22 = arith.constant dense<0.000000e+00> : vector<48x96xf32>
    %36 = tpu.matmul %33, %35, %cst_22 {dimension_numbers = #tpu.dot_dimension_numbers<[1], [0], [0], [1], [0, 0, 1, 1], [], []>} : vector<48x32xbf16>, vector<32x96xbf16>, vector<48x96xf32> -> vector<48x96xf32>
    %c0_23 = arith.constant 0 : index
    %c0_24 = arith.constant 0 : index
    %c0_25 = arith.constant 0 : index
    %37 = vector.load %arg5[%c0_23, %c0_24, %c0_25] : memref<2x2x128xf32, #tpu.memory_space<vmem>>, vector<1x1x96xf32>
    %38 = vector.shape_cast %37 : vector<1x1x96xf32> to vector<1x96xf32>
    %39 = vector.broadcast %38 : vector<1x96xf32> to vector<48x96xf32>
    %40 = arith.addf %36, %39 : vector<48x96xf32>
    %41 = vector.extract_strided_slice %40 {offsets = [0, 0], sizes = [48, 32], strides = [1, 1]} : vector<48x96xf32> to vector<48x32xf32>
    %42 = vector.extract_strided_slice %40 {offsets = [0, 32], sizes = [48, 32], strides = [1, 1]} : vector<48x96xf32> to vector<48x32xf32>
    %43 = vector.extract_strided_slice %40 {offsets = [0, 64], sizes = [48, 32], strides = [1, 1]} : vector<48x96xf32> to vector<48x32xf32>
    %44 = tpu.concatenate %42, %42, %42, %42 in 0 : vector<48x32xf32>, vector<48x32xf32>, vector<48x32xf32>, vector<48x32xf32> -> vector<192x32xf32>
    %45 = arith.mulf %44, %6 : vector<192x32xf32>
    %46 = tpu.concatenate %43, %43, %43, %43 in 0 : vector<48x32xf32>, vector<48x32xf32>, vector<48x32xf32>, vector<48x32xf32> -> vector<192x32xf32>
    %47 = arith.mulf %46, %6 : vector<192x32xf32>
    %cst_26 = arith.constant dense<0.000000e+00> : vector<48x192xf32>
    %48 = tpu.matmul %41, %45, %cst_26 {dimension_numbers = #tpu.dot_dimension_numbers<[1], [1], [0], [0], [0, 0, 1, 0], [], []>} : vector<48x32xf32>, vector<192x32xf32>, vector<48x192xf32> -> vector<48x192xf32>
    %49 = arith.addf %48, %5 : vector<48x192xf32>
    %cst_27 = arith.constant dense<0xFF800000> : vector<48xf32>
    %50 = vector.multi_reduction <maximumf>, %49, %cst_27 [1] : vector<48x192xf32> to vector<48xf32>
    %51 = vector.shape_cast %50 : vector<48xf32> to vector<48x1xf32>
    %52 = vector.broadcast %51 : vector<48x1xf32> to vector<48x192xf32>
    %53 = arith.subf %49, %52 : vector<48x192xf32>
    %54 = math.exp %53 : vector<48x192xf32>
    %c0_28 = arith.constant 0 : index
    %c0_29 = arith.constant 0 : index
    %55 = vector.load %arg12[%c0_28, %c0_29] : memref<192x192xf32, #tpu.memory_space<vmem>>, vector<192x192xf32>
    %cst_30 = arith.constant dense<0.000000e+00> : vector<48x192xf32>
    %56 = tpu.matmul %54, %55, %cst_30 {dimension_numbers = #tpu.dot_dimension_numbers<[1], [0], [0], [1], [0, 0, 1, 1], [], []>} : vector<48x192xf32>, vector<192x192xf32>, vector<48x192xf32> -> vector<48x192xf32>
    %57 = tpu.reciprocal %56 {approx = true} : vector<48x192xf32> -> vector<48x192xf32>
    %58 = arith.mulf %54, %57 : vector<48x192xf32>
    %cst_31 = arith.constant dense<0.000000e+00> : vector<48x32xf32>
    %59 = tpu.matmul %58, %47, %cst_31 {dimension_numbers = #tpu.dot_dimension_numbers<[1], [0], [0], [1], [0, 0, 1, 1], [], []>} : vector<48x192xf32>, vector<192x32xf32>, vector<48x32xf32> -> vector<48x32xf32>
    %60 = arith.truncf %59 : vector<48x32xf32> to vector<48x32xbf16>
    %c0_32 = arith.constant 0 : index
    %c0_33 = arith.constant 0 : index
    %c0_34 = arith.constant 0 : index
    %61 = vector.load %arg6[%c0_32, %c0_33, %c0_34] : memref<2x32x32xbf16, #tpu.memory_space<vmem>>, vector<1x32x32xbf16>
    %62 = vector.shape_cast %61 : vector<1x32x32xbf16> to vector<32x32xbf16>
    %cst_35 = arith.constant dense<0.000000e+00> : vector<48x32xf32>
    %63 = tpu.matmul %60, %62, %cst_35 {dimension_numbers = #tpu.dot_dimension_numbers<[1], [0], [0], [1], [0, 0, 1, 1], [], []>} : vector<48x32xbf16>, vector<32x32xbf16>, vector<48x32xf32> -> vector<48x32xf32>
    %c0_36 = arith.constant 0 : index
    %c2 = arith.constant 2 : index
    %c0_37 = arith.constant 0 : index
    %64 = vector.load %arg9[%c0_36, %c2, %c0_37] : memref<3x8x32xf32, #tpu.memory_space<vmem>>, vector<1x1x32xf32>
    %65 = vector.shape_cast %64 : vector<1x1x32xf32> to vector<1x32xf32>
    %66 = vector.broadcast %65 : vector<1x32xf32> to vector<48x32xf32>
    %67 = arith.addf %63, %66 : vector<48x32xf32>
    %68 = arith.addf %4, %67 : vector<48x32xf32>
    %c0_38 = arith.constant 0 : index
    %c3 = arith.constant 3 : index
    %c0_39 = arith.constant 0 : index
    %69 = vector.load %arg9[%c0_38, %c3, %c0_39] : memref<3x8x32xf32, #tpu.memory_space<vmem>>, vector<1x1x32xf32>
    %70 = vector.shape_cast %69 : vector<1x1x32xf32> to vector<1x32xf32>
    %c0_40 = arith.constant 0 : index
    %c4 = arith.constant 4 : index
    %c0_41 = arith.constant 0 : index
    %71 = vector.load %arg9[%c0_40, %c4, %c0_41] : memref<3x8x32xf32, #tpu.memory_space<vmem>>, vector<1x1x32xf32>
    %72 = vector.shape_cast %71 : vector<1x1x32xf32> to vector<1x32xf32>
    %cst_42 = arith.constant dense<0.000000e+00> : vector<48xf32>
    %73 = vector.multi_reduction <add>, %68, %cst_42 [1] : vector<48x32xf32> to vector<48xf32>
    %74 = vector.shape_cast %73 : vector<48xf32> to vector<48x1xf32>
    %cst_43 = arith.constant 3.200000e+01 : f32
    %75 = vector.broadcast %cst_43 : f32 to vector<48x1xf32>
    %76 = arith.divf %74, %75 : vector<48x1xf32>
    %77 = vector.broadcast %76 : vector<48x1xf32> to vector<48x32xf32>
    %78 = arith.subf %68, %77 : vector<48x32xf32>
    %79 = arith.mulf %78, %78 : vector<48x32xf32>
    %cst_44 = arith.constant dense<0.000000e+00> : vector<48xf32>
    %80 = vector.multi_reduction <add>, %79, %cst_44 [1] : vector<48x32xf32> to vector<48xf32>
    %81 = vector.shape_cast %80 : vector<48xf32> to vector<48x1xf32>
    %cst_45 = arith.constant 3.200000e+01 : f32
    %82 = vector.broadcast %cst_45 : f32 to vector<48x1xf32>
    %83 = arith.divf %81, %82 : vector<48x1xf32>
    %84 = vector.broadcast %76 : vector<48x1xf32> to vector<48x32xf32>
    %85 = arith.subf %68, %84 : vector<48x32xf32>
    %cst_46 = arith.constant 9.99999974E-6 : f32
    %86 = vector.broadcast %cst_46 : f32 to vector<48x1xf32>
    %87 = arith.addf %83, %86 : vector<48x1xf32>
    %88 = math.rsqrt %87 : vector<48x1xf32>
    %89 = vector.broadcast %88 : vector<48x1xf32> to vector<48x32xf32>
    %90 = arith.mulf %85, %89 : vector<48x32xf32>
    %91 = vector.broadcast %70 : vector<1x32xf32> to vector<48x32xf32>
    %92 = arith.mulf %90, %91 : vector<48x32xf32>
    %93 = vector.broadcast %72 : vector<1x32xf32> to vector<48x32xf32>
    %94 = arith.addf %92, %93 : vector<48x32xf32>
    %95 = arith.truncf %94 : vector<48x32xf32> to vector<48x32xbf16>
    %c0_47 = arith.constant 0 : index
    %c0_48 = arith.constant 0 : index
    %c0_49 = arith.constant 0 : index
    %96 = vector.load %arg7[%c0_47, %c0_48, %c0_49] : memref<2x32x128xbf16, #tpu.memory_space<vmem>>, vector<1x32x128xbf16>
    %97 = vector.shape_cast %96 : vector<1x32x128xbf16> to vector<32x128xbf16>
    %cst_50 = arith.constant dense<0.000000e+00> : vector<48x128xf32>
    %98 = tpu.matmul %95, %97, %cst_50 {dimension_numbers = #tpu.dot_dimension_numbers<[1], [0], [0], [1], [0, 0, 1, 1], [], []>} : vector<48x32xbf16>, vector<32x128xbf16>, vector<48x128xf32> -> vector<48x128xf32>
    %c0_51 = arith.constant 0 : index
    %c1_52 = arith.constant 1 : index
    %c0_53 = arith.constant 0 : index
    %99 = vector.load %arg5[%c0_51, %c1_52, %c0_53] : memref<2x2x128xf32, #tpu.memory_space<vmem>>, vector<1x1x128xf32>
    %100 = vector.shape_cast %99 : vector<1x1x128xf32> to vector<1x128xf32>
    %101 = vector.broadcast %100 : vector<1x128xf32> to vector<48x128xf32>
    %102 = arith.addf %98, %101 : vector<48x128xf32>
    %cst_54 = arith.constant 0.000000e+00 : f32
    %103 = vector.broadcast %cst_54 : f32 to vector<48x128xf32>
    %104 = arith.maximumf %102, %103 : vector<48x128xf32>
    %105 = arith.truncf %104 : vector<48x128xf32> to vector<48x128xbf16>
    %c0_55 = arith.constant 0 : index
    %c0_56 = arith.constant 0 : index
    %c0_57 = arith.constant 0 : index
    %106 = vector.load %arg8[%c0_55, %c0_56, %c0_57] : memref<2x128x32xbf16, #tpu.memory_space<vmem>>, vector<1x128x32xbf16>
    %107 = vector.shape_cast %106 : vector<1x128x32xbf16> to vector<128x32xbf16>
    %cst_58 = arith.constant dense<0.000000e+00> : vector<48x32xf32>
    %108 = tpu.matmul %105, %107, %cst_58 {dimension_numbers = #tpu.dot_dimension_numbers<[1], [0], [0], [1], [0, 0, 1, 1], [], []>} : vector<48x128xbf16>, vector<128x32xbf16>, vector<48x32xf32> -> vector<48x32xf32>
    %c0_59 = arith.constant 0 : index
    %c5 = arith.constant 5 : index
    %c0_60 = arith.constant 0 : index
    %109 = vector.load %arg9[%c0_59, %c5, %c0_60] : memref<3x8x32xf32, #tpu.memory_space<vmem>>, vector<1x1x32xf32>
    %110 = vector.shape_cast %109 : vector<1x1x32xf32> to vector<1x32xf32>
    %111 = vector.broadcast %110 : vector<1x32xf32> to vector<48x32xf32>
    %112 = arith.addf %108, %111 : vector<48x32xf32>
    %113 = arith.addf %68, %112 : vector<48x32xf32>
    %c1_61 = arith.constant 1 : index
    %c0_62 = arith.constant 0 : index
    %c0_63 = arith.constant 0 : index
    %114 = vector.load %arg9[%c1_61, %c0_62, %c0_63] : memref<3x8x32xf32, #tpu.memory_space<vmem>>, vector<1x1x32xf32>
    %115 = vector.shape_cast %114 : vector<1x1x32xf32> to vector<1x32xf32>
    %c1_64 = arith.constant 1 : index
    %c1_65 = arith.constant 1 : index
    %c0_66 = arith.constant 0 : index
    %116 = vector.load %arg9[%c1_64, %c1_65, %c0_66] : memref<3x8x32xf32, #tpu.memory_space<vmem>>, vector<1x1x32xf32>
    %117 = vector.shape_cast %116 : vector<1x1x32xf32> to vector<1x32xf32>
    %cst_67 = arith.constant dense<0.000000e+00> : vector<48xf32>
    %118 = vector.multi_reduction <add>, %113, %cst_67 [1] : vector<48x32xf32> to vector<48xf32>
    %119 = vector.shape_cast %118 : vector<48xf32> to vector<48x1xf32>
    %cst_68 = arith.constant 3.200000e+01 : f32
    %120 = vector.broadcast %cst_68 : f32 to vector<48x1xf32>
    %121 = arith.divf %119, %120 : vector<48x1xf32>
    %122 = vector.broadcast %121 : vector<48x1xf32> to vector<48x32xf32>
    %123 = arith.subf %113, %122 : vector<48x32xf32>
    %124 = arith.mulf %123, %123 : vector<48x32xf32>
    %cst_69 = arith.constant dense<0.000000e+00> : vector<48xf32>
    %125 = vector.multi_reduction <add>, %124, %cst_69 [1] : vector<48x32xf32> to vector<48xf32>
    %126 = vector.shape_cast %125 : vector<48xf32> to vector<48x1xf32>
    %cst_70 = arith.constant 3.200000e+01 : f32
    %127 = vector.broadcast %cst_70 : f32 to vector<48x1xf32>
    %128 = arith.divf %126, %127 : vector<48x1xf32>
    %129 = vector.broadcast %121 : vector<48x1xf32> to vector<48x32xf32>
    %130 = arith.subf %113, %129 : vector<48x32xf32>
    %cst_71 = arith.constant 9.99999974E-6 : f32
    %131 = vector.broadcast %cst_71 : f32 to vector<48x1xf32>
    %132 = arith.addf %128, %131 : vector<48x1xf32>
    %133 = math.rsqrt %132 : vector<48x1xf32>
    %134 = vector.broadcast %133 : vector<48x1xf32> to vector<48x32xf32>
    %135 = arith.mulf %130, %134 : vector<48x32xf32>
    %136 = vector.broadcast %115 : vector<1x32xf32> to vector<48x32xf32>
    %137 = arith.mulf %135, %136 : vector<48x32xf32>
    %138 = vector.broadcast %117 : vector<1x32xf32> to vector<48x32xf32>
    %139 = arith.addf %137, %138 : vector<48x32xf32>
    %140 = arith.truncf %139 : vector<48x32xf32> to vector<48x32xbf16>
    %c1_72 = arith.constant 1 : index
    %c0_73 = arith.constant 0 : index
    %c0_74 = arith.constant 0 : index
    %141 = vector.load %arg4[%c1_72, %c0_73, %c0_74] : memref<2x32x96xbf16, #tpu.memory_space<vmem>>, vector<1x32x96xbf16>
    %142 = vector.shape_cast %141 : vector<1x32x96xbf16> to vector<32x96xbf16>
    %cst_75 = arith.constant dense<0.000000e+00> : vector<48x96xf32>
    %143 = tpu.matmul %140, %142, %cst_75 {dimension_numbers = #tpu.dot_dimension_numbers<[1], [0], [0], [1], [0, 0, 1, 1], [], []>} : vector<48x32xbf16>, vector<32x96xbf16>, vector<48x96xf32> -> vector<48x96xf32>
    %c1_76 = arith.constant 1 : index
    %c0_77 = arith.constant 0 : index
    %c0_78 = arith.constant 0 : index
    %144 = vector.load %arg5[%c1_76, %c0_77, %c0_78] : memref<2x2x128xf32, #tpu.memory_space<vmem>>, vector<1x1x96xf32>
    %145 = vector.shape_cast %144 : vector<1x1x96xf32> to vector<1x96xf32>
    %146 = vector.broadcast %145 : vector<1x96xf32> to vector<48x96xf32>
    %147 = arith.addf %143, %146 : vector<48x96xf32>
    %148 = vector.extract_strided_slice %147 {offsets = [0, 0], sizes = [48, 32], strides = [1, 1]} : vector<48x96xf32> to vector<48x32xf32>
    %149 = vector.extract_strided_slice %147 {offsets = [0, 32], sizes = [48, 32], strides = [1, 1]} : vector<48x96xf32> to vector<48x32xf32>
    %150 = vector.extract_strided_slice %147 {offsets = [0, 64], sizes = [48, 32], strides = [1, 1]} : vector<48x96xf32> to vector<48x32xf32>
    %151 = tpu.concatenate %149, %149, %149, %149 in 0 : vector<48x32xf32>, vector<48x32xf32>, vector<48x32xf32>, vector<48x32xf32> -> vector<192x32xf32>
    %152 = arith.mulf %151, %6 : vector<192x32xf32>
    %153 = tpu.concatenate %150, %150, %150, %150 in 0 : vector<48x32xf32>, vector<48x32xf32>, vector<48x32xf32>, vector<48x32xf32> -> vector<192x32xf32>
    %154 = arith.mulf %153, %6 : vector<192x32xf32>
    %cst_79 = arith.constant dense<0.000000e+00> : vector<48x192xf32>
    %155 = tpu.matmul %148, %152, %cst_79 {dimension_numbers = #tpu.dot_dimension_numbers<[1], [1], [0], [0], [0, 0, 1, 0], [], []>} : vector<48x32xf32>, vector<192x32xf32>, vector<48x192xf32> -> vector<48x192xf32>
    %156 = arith.addf %155, %5 : vector<48x192xf32>
    %cst_80 = arith.constant dense<0xFF800000> : vector<48xf32>
    %157 = vector.multi_reduction <maximumf>, %156, %cst_80 [1] : vector<48x192xf32> to vector<48xf32>
    %158 = vector.shape_cast %157 : vector<48xf32> to vector<48x1xf32>
    %159 = vector.broadcast %158 : vector<48x1xf32> to vector<48x192xf32>
    %160 = arith.subf %156, %159 : vector<48x192xf32>
    %161 = math.exp %160 : vector<48x192xf32>
    %c0_81 = arith.constant 0 : index
    %c0_82 = arith.constant 0 : index
    %162 = vector.load %arg12[%c0_81, %c0_82] : memref<192x192xf32, #tpu.memory_space<vmem>>, vector<192x192xf32>
    %cst_83 = arith.constant dense<0.000000e+00> : vector<48x192xf32>
    %163 = tpu.matmul %161, %162, %cst_83 {dimension_numbers = #tpu.dot_dimension_numbers<[1], [0], [0], [1], [0, 0, 1, 1], [], []>} : vector<48x192xf32>, vector<192x192xf32>, vector<48x192xf32> -> vector<48x192xf32>
    %164 = tpu.reciprocal %163 {approx = true} : vector<48x192xf32> -> vector<48x192xf32>
    %165 = arith.mulf %161, %164 : vector<48x192xf32>
    %cst_84 = arith.constant dense<0.000000e+00> : vector<48x32xf32>
    %166 = tpu.matmul %165, %154, %cst_84 {dimension_numbers = #tpu.dot_dimension_numbers<[1], [0], [0], [1], [0, 0, 1, 1], [], []>} : vector<48x192xf32>, vector<192x32xf32>, vector<48x32xf32> -> vector<48x32xf32>
    %167 = arith.truncf %166 : vector<48x32xf32> to vector<48x32xbf16>
    %c1_85 = arith.constant 1 : index
    %c0_86 = arith.constant 0 : index
    %c0_87 = arith.constant 0 : index
    %168 = vector.load %arg6[%c1_85, %c0_86, %c0_87] : memref<2x32x32xbf16, #tpu.memory_space<vmem>>, vector<1x32x32xbf16>
    %169 = vector.shape_cast %168 : vector<1x32x32xbf16> to vector<32x32xbf16>
    %cst_88 = arith.constant dense<0.000000e+00> : vector<48x32xf32>
    %170 = tpu.matmul %167, %169, %cst_88 {dimension_numbers = #tpu.dot_dimension_numbers<[1], [0], [0], [1], [0, 0, 1, 1], [], []>} : vector<48x32xbf16>, vector<32x32xbf16>, vector<48x32xf32> -> vector<48x32xf32>
    %c1_89 = arith.constant 1 : index
    %c2_90 = arith.constant 2 : index
    %c0_91 = arith.constant 0 : index
    %171 = vector.load %arg9[%c1_89, %c2_90, %c0_91] : memref<3x8x32xf32, #tpu.memory_space<vmem>>, vector<1x1x32xf32>
    %172 = vector.shape_cast %171 : vector<1x1x32xf32> to vector<1x32xf32>
    %173 = vector.broadcast %172 : vector<1x32xf32> to vector<48x32xf32>
    %174 = arith.addf %170, %173 : vector<48x32xf32>
    %175 = arith.addf %113, %174 : vector<48x32xf32>
    %c1_92 = arith.constant 1 : index
    %c3_93 = arith.constant 3 : index
    %c0_94 = arith.constant 0 : index
    %176 = vector.load %arg9[%c1_92, %c3_93, %c0_94] : memref<3x8x32xf32, #tpu.memory_space<vmem>>, vector<1x1x32xf32>
    %177 = vector.shape_cast %176 : vector<1x1x32xf32> to vector<1x32xf32>
    %c1_95 = arith.constant 1 : index
    %c4_96 = arith.constant 4 : index
    %c0_97 = arith.constant 0 : index
    %178 = vector.load %arg9[%c1_95, %c4_96, %c0_97] : memref<3x8x32xf32, #tpu.memory_space<vmem>>, vector<1x1x32xf32>
    %179 = vector.shape_cast %178 : vector<1x1x32xf32> to vector<1x32xf32>
    %cst_98 = arith.constant dense<0.000000e+00> : vector<48xf32>
    %180 = vector.multi_reduction <add>, %175, %cst_98 [1] : vector<48x32xf32> to vector<48xf32>
    %181 = vector.shape_cast %180 : vector<48xf32> to vector<48x1xf32>
    %cst_99 = arith.constant 3.200000e+01 : f32
    %182 = vector.broadcast %cst_99 : f32 to vector<48x1xf32>
    %183 = arith.divf %181, %182 : vector<48x1xf32>
    %184 = vector.broadcast %183 : vector<48x1xf32> to vector<48x32xf32>
    %185 = arith.subf %175, %184 : vector<48x32xf32>
    %186 = arith.mulf %185, %185 : vector<48x32xf32>
    %cst_100 = arith.constant dense<0.000000e+00> : vector<48xf32>
    %187 = vector.multi_reduction <add>, %186, %cst_100 [1] : vector<48x32xf32> to vector<48xf32>
    %188 = vector.shape_cast %187 : vector<48xf32> to vector<48x1xf32>
    %cst_101 = arith.constant 3.200000e+01 : f32
    %189 = vector.broadcast %cst_101 : f32 to vector<48x1xf32>
    %190 = arith.divf %188, %189 : vector<48x1xf32>
    %191 = vector.broadcast %183 : vector<48x1xf32> to vector<48x32xf32>
    %192 = arith.subf %175, %191 : vector<48x32xf32>
    %cst_102 = arith.constant 9.99999974E-6 : f32
    %193 = vector.broadcast %cst_102 : f32 to vector<48x1xf32>
    %194 = arith.addf %190, %193 : vector<48x1xf32>
    %195 = math.rsqrt %194 : vector<48x1xf32>
    %196 = vector.broadcast %195 : vector<48x1xf32> to vector<48x32xf32>
    %197 = arith.mulf %192, %196 : vector<48x32xf32>
    %198 = vector.broadcast %177 : vector<1x32xf32> to vector<48x32xf32>
    %199 = arith.mulf %197, %198 : vector<48x32xf32>
    %200 = vector.broadcast %179 : vector<1x32xf32> to vector<48x32xf32>
    %201 = arith.addf %199, %200 : vector<48x32xf32>
    %202 = arith.truncf %201 : vector<48x32xf32> to vector<48x32xbf16>
    %c1_103 = arith.constant 1 : index
    %c0_104 = arith.constant 0 : index
    %c0_105 = arith.constant 0 : index
    %203 = vector.load %arg7[%c1_103, %c0_104, %c0_105] : memref<2x32x128xbf16, #tpu.memory_space<vmem>>, vector<1x32x128xbf16>
    %204 = vector.shape_cast %203 : vector<1x32x128xbf16> to vector<32x128xbf16>
    %cst_106 = arith.constant dense<0.000000e+00> : vector<48x128xf32>
    %205 = tpu.matmul %202, %204, %cst_106 {dimension_numbers = #tpu.dot_dimension_numbers<[1], [0], [0], [1], [0, 0, 1, 1], [], []>} : vector<48x32xbf16>, vector<32x128xbf16>, vector<48x128xf32> -> vector<48x128xf32>
    %c1_107 = arith.constant 1 : index
    %c1_108 = arith.constant 1 : index
    %c0_109 = arith.constant 0 : index
    %206 = vector.load %arg5[%c1_107, %c1_108, %c0_109] : memref<2x2x128xf32, #tpu.memory_space<vmem>>, vector<1x1x128xf32>
    %207 = vector.shape_cast %206 : vector<1x1x128xf32> to vector<1x128xf32>
    %208 = vector.broadcast %207 : vector<1x128xf32> to vector<48x128xf32>
    %209 = arith.addf %205, %208 : vector<48x128xf32>
    %cst_110 = arith.constant 0.000000e+00 : f32
    %210 = vector.broadcast %cst_110 : f32 to vector<48x128xf32>
    %211 = arith.maximumf %209, %210 : vector<48x128xf32>
    %212 = arith.truncf %211 : vector<48x128xf32> to vector<48x128xbf16>
    %c1_111 = arith.constant 1 : index
    %c0_112 = arith.constant 0 : index
    %c0_113 = arith.constant 0 : index
    %213 = vector.load %arg8[%c1_111, %c0_112, %c0_113] : memref<2x128x32xbf16, #tpu.memory_space<vmem>>, vector<1x128x32xbf16>
    %214 = vector.shape_cast %213 : vector<1x128x32xbf16> to vector<128x32xbf16>
    %cst_114 = arith.constant dense<0.000000e+00> : vector<48x32xf32>
    %215 = tpu.matmul %212, %214, %cst_114 {dimension_numbers = #tpu.dot_dimension_numbers<[1], [0], [0], [1], [0, 0, 1, 1], [], []>} : vector<48x128xbf16>, vector<128x32xbf16>, vector<48x32xf32> -> vector<48x32xf32>
    %c1_115 = arith.constant 1 : index
    %c5_116 = arith.constant 5 : index
    %c0_117 = arith.constant 0 : index
    %216 = vector.load %arg9[%c1_115, %c5_116, %c0_117] : memref<3x8x32xf32, #tpu.memory_space<vmem>>, vector<1x1x32xf32>
    %217 = vector.shape_cast %216 : vector<1x1x32xf32> to vector<1x32xf32>
    %218 = vector.broadcast %217 : vector<1x32xf32> to vector<48x32xf32>
    %219 = arith.addf %215, %218 : vector<48x32xf32>
    %220 = arith.addf %175, %219 : vector<48x32xf32>
    %c0_118 = arith.constant 0 : index
    %c0_119 = arith.constant 0 : index
    %221 = vector.load %arg13[%c0_118, %c0_119] : memref<2x48xf32, #tpu.memory_space<vmem>>, vector<2x48xf32>
    %cst_120 = arith.constant dense<0.000000e+00> : vector<2x32xf32>
    %222 = tpu.matmul %221, %220, %cst_120 {dimension_numbers = #tpu.dot_dimension_numbers<[1], [0], [0], [1], [0, 0, 1, 1], [], []>} : vector<2x48xf32>, vector<48x32xf32>, vector<2x32xf32> -> vector<2x32xf32>
    %c2_121 = arith.constant 2 : index
    %c0_122 = arith.constant 0 : index
    %c0_123 = arith.constant 0 : index
    %223 = vector.load %arg9[%c2_121, %c0_122, %c0_123] : memref<3x8x32xf32, #tpu.memory_space<vmem>>, vector<1x1x32xf32>
    %224 = vector.shape_cast %223 : vector<1x1x32xf32> to vector<1x32xf32>
    %c2_124 = arith.constant 2 : index
    %c1_125 = arith.constant 1 : index
    %c0_126 = arith.constant 0 : index
    %225 = vector.load %arg9[%c2_124, %c1_125, %c0_126] : memref<3x8x32xf32, #tpu.memory_space<vmem>>, vector<1x1x32xf32>
    %226 = vector.shape_cast %225 : vector<1x1x32xf32> to vector<1x32xf32>
    %cst_127 = arith.constant dense<0.000000e+00> : vector<2xf32>
    %227 = vector.multi_reduction <add>, %222, %cst_127 [1] : vector<2x32xf32> to vector<2xf32>
    %228 = vector.shape_cast %227 : vector<2xf32> to vector<2x1xf32>
    %cst_128 = arith.constant 3.200000e+01 : f32
    %229 = vector.broadcast %cst_128 : f32 to vector<2x1xf32>
    %230 = arith.divf %228, %229 : vector<2x1xf32>
    %231 = vector.broadcast %230 : vector<2x1xf32> to vector<2x32xf32>
    %232 = arith.subf %222, %231 : vector<2x32xf32>
    %233 = arith.mulf %232, %232 : vector<2x32xf32>
    %cst_129 = arith.constant dense<0.000000e+00> : vector<2xf32>
    %234 = vector.multi_reduction <add>, %233, %cst_129 [1] : vector<2x32xf32> to vector<2xf32>
    %235 = vector.shape_cast %234 : vector<2xf32> to vector<2x1xf32>
    %cst_130 = arith.constant 3.200000e+01 : f32
    %236 = vector.broadcast %cst_130 : f32 to vector<2x1xf32>
    %237 = arith.divf %235, %236 : vector<2x1xf32>
    %238 = vector.broadcast %230 : vector<2x1xf32> to vector<2x32xf32>
    %239 = arith.subf %222, %238 : vector<2x32xf32>
    %cst_131 = arith.constant 9.99999974E-6 : f32
    %240 = vector.broadcast %cst_131 : f32 to vector<2x1xf32>
    %241 = arith.addf %237, %240 : vector<2x1xf32>
    %242 = math.rsqrt %241 : vector<2x1xf32>
    %243 = vector.broadcast %242 : vector<2x1xf32> to vector<2x32xf32>
    %244 = arith.mulf %239, %243 : vector<2x32xf32>
    %245 = vector.broadcast %224 : vector<1x32xf32> to vector<2x32xf32>
    %246 = arith.mulf %244, %245 : vector<2x32xf32>
    %247 = vector.broadcast %226 : vector<1x32xf32> to vector<2x32xf32>
    %248 = arith.addf %246, %247 : vector<2x32xf32>
    %249 = arith.truncf %248 : vector<2x32xf32> to vector<2x32xbf16>
    %c0_132 = arith.constant 0 : index
    %c0_133 = arith.constant 0 : index
    %250 = vector.load %arg14[%c0_132, %c0_133] : memref<32x128xbf16, #tpu.memory_space<vmem>>, vector<32x128xbf16>
    %cst_134 = arith.constant dense<0.000000e+00> : vector<2x128xf32>
    %251 = tpu.matmul %249, %250, %cst_134 {dimension_numbers = #tpu.dot_dimension_numbers<[1], [0], [0], [1], [0, 0, 1, 1], [], []>} : vector<2x32xbf16>, vector<32x128xbf16>, vector<2x128xf32> -> vector<2x128xf32>
    %c0_135 = arith.constant 0 : index
    %c0_136 = arith.constant 0 : index
    %252 = vector.load %arg15[%c0_135, %c0_136] : memref<1x128xf32, #tpu.memory_space<vmem>>, vector<1x128xf32>
    %253 = vector.broadcast %252 : vector<1x128xf32> to vector<2x128xf32>
    %254 = arith.addf %251, %253 : vector<2x128xf32>
    %255 = arith.mulf %254, %254 : vector<2x128xf32>
    %cst_137 = arith.constant dense<0.000000e+00> : vector<2xf32>
    %256 = vector.multi_reduction <add>, %255, %cst_137 [1] : vector<2x128xf32> to vector<2xf32>
    %257 = vector.shape_cast %256 : vector<2xf32> to vector<2x1xf32>
    %cst_138 = arith.constant 1.000000e-24 : f32
    %258 = vector.broadcast %cst_138 : f32 to vector<2x1xf32>
    %259 = arith.maximumf %257, %258 : vector<2x1xf32>
    %260 = math.rsqrt %259 : vector<2x1xf32>
    %261 = vector.broadcast %260 : vector<2x1xf32> to vector<2x128xf32>
    %262 = arith.mulf %254, %261 : vector<2x128xf32>
    %c0_139 = arith.constant 0 : index
    %c0_140 = arith.constant 0 : index
    %263 = vector.load %arg16[%c0_139, %c0_140] : memref<2x128xf32, #tpu.memory_space<vmem>>, vector<2x128xf32>
    tpu.vector_store %arg16[%c0_139, %c0_140], %262 {strides = array<i32>} : memref<2x128xf32, #tpu.memory_space<vmem>>, vector<2x128xf32>,
    return
  }
  func.func @transform_0(%arg0: i32) -> (i32, i32) {
    %c0_i32 = arith.constant 0 : i32
    %c0_i32_0 = arith.constant 0 : i32
    %c0_i32_1 = arith.constant 0 : i32
    return %c0_i32, %c0_i32_0 : i32, i32
  }
  func.func @transform_1(%arg0: i32) -> (i32, i32) {
    %c0_i32 = arith.constant 0 : i32
    %c0_i32_0 = arith.constant 0 : i32
    %c0_i32_1 = arith.constant 0 : i32
    return %c0_i32, %c0_i32_0 : i32, i32
  }
  func.func @transform_2(%arg0: i32) -> (i32, i32) {
    %c0_i32 = arith.constant 0 : i32
    %c0_i32_0 = arith.constant 0 : i32
    %c0_i32_1 = arith.constant 0 : i32
    return %c0_i32, %c0_i32_0 : i32, i32
  }
  func.func @transform_3(%arg0: i32) -> (i32, i32, i32) {
    %c0_i32 = arith.constant 0 : i32
    %c0_i32_0 = arith.constant 0 : i32
    %c0_i32_1 = arith.constant 0 : i32
    %c0_i32_2 = arith.constant 0 : i32
    return %c0_i32, %c0_i32_0, %c0_i32_1 : i32, i32, i32
  }
  func.func @transform_4(%arg0: i32) -> (i32, i32, i32) {
    %c0_i32 = arith.constant 0 : i32
    %c0_i32_0 = arith.constant 0 : i32
    %c0_i32_1 = arith.constant 0 : i32
    %c0_i32_2 = arith.constant 0 : i32
    return %c0_i32, %c0_i32_0, %c0_i32_1 : i32, i32, i32
  }
  func.func @transform_5(%arg0: i32) -> (i32, i32, i32) {
    %c0_i32 = arith.constant 0 : i32
    %c0_i32_0 = arith.constant 0 : i32
    %c0_i32_1 = arith.constant 0 : i32
    %c0_i32_2 = arith.constant 0 : i32
    return %c0_i32, %c0_i32_0, %c0_i32_1 : i32, i32, i32
  }
  func.func @transform_6(%arg0: i32) -> (i32, i32, i32) {
    %c0_i32 = arith.constant 0 : i32
    %c0_i32_0 = arith.constant 0 : i32
    %c0_i32_1 = arith.constant 0 : i32
    %c0_i32_2 = arith.constant 0 : i32
    return %c0_i32, %c0_i32_0, %c0_i32_1 : i32, i32, i32
  }
  func.func @transform_7(%arg0: i32) -> (i32, i32, i32) {
    %c0_i32 = arith.constant 0 : i32
    %c0_i32_0 = arith.constant 0 : i32
    %c0_i32_1 = arith.constant 0 : i32
    %c0_i32_2 = arith.constant 0 : i32
    return %c0_i32, %c0_i32_0, %c0_i32_1 : i32, i32, i32
  }
  func.func @transform_8(%arg0: i32) -> (i32, i32, i32) {
    %c0_i32 = arith.constant 0 : i32
    %c0_i32_0 = arith.constant 0 : i32
    %c0_i32_1 = arith.constant 0 : i32
    %c0_i32_2 = arith.constant 0 : i32
    return %c0_i32, %c0_i32_0, %c0_i32_1 : i32, i32, i32
  }
  func.func @transform_9(%arg0: i32) -> (i32, i32) {
    %c0_i32 = arith.constant 0 : i32
    %c0_i32_0 = arith.constant 0 : i32
    %c0_i32_1 = arith.constant 0 : i32
    return %c0_i32, %c0_i32_0 : i32, i32
  }
  func.func @transform_10(%arg0: i32) -> (i32, i32) {
    %c0_i32 = arith.constant 0 : i32
    %c0_i32_0 = arith.constant 0 : i32
    %c0_i32_1 = arith.constant 0 : i32
    return %c0_i32, %c0_i32_0 : i32, i32
  }
  func.func @transform_11(%arg0: i32) -> (i32, i32) {
    %c0_i32 = arith.constant 0 : i32
    %c0_i32_0 = arith.constant 0 : i32
    %c0_i32_1 = arith.constant 0 : i32
    return %c0_i32, %c0_i32_0 : i32, i32
  }
  func.func @transform_12(%arg0: i32) -> (i32, i32) {
    %c0_i32 = arith.constant 0 : i32
    %c0_i32_0 = arith.constant 0 : i32
    %c0_i32_1 = arith.constant 0 : i32
    return %c0_i32, %c0_i32_0 : i32, i32
  }
  func.func @transform_13(%arg0: i32) -> (i32, i32) {
    %c0_i32 = arith.constant 0 : i32
    %c0_i32_0 = arith.constant 0 : i32
    %c0_i32_1 = arith.constant 0 : i32
    return %c0_i32, %c0_i32_0 : i32, i32
  }
  func.func @transform_14(%arg0: i32) -> (i32, i32) {
    %c0_i32 = arith.constant 0 : i32
    %c0_i32_0 = arith.constant 0 : i32
    %c0_i32_1 = arith.constant 0 : i32
    return %c0_i32, %c0_i32_0 : i32, i32
  }
  func.func @transform_15(%arg0: i32) -> (i32, i32) {
    %c0_i32 = arith.constant 0 : i32
    %c0_i32_0 = arith.constant 0 : i32
    %c0_i32_1 = arith.constant 0 : i32
    return %c0_i32, %c0_i32_0 : i32, i32
  }
}

</mosaic_0001>

<bundles_post_ra>
// kernel: tpu_custom_call.1
= control target key start
LH: loop header
LB: loop body
LE: loop exit
PB: predicated region body
PF: predicated region fallthrough
CT: control target
= control target key end

     0   :  { %20 = vsyncpa [#allocation3], 0  ;;  %s6135_s0 = inlined_call_operand.vmem [shape: bf16[48,32], index: 0, kind: input, shape index: {}]   ;;  %s6136_s1 = inlined_call_operand.hbm [shape: bf16[32,32], index: 1, kind: input, shape index: {}]   ;;  %s6137_s2 = inlined_call_operand.vmem [shape: f32[48,32], index: 2, kind: input, shape index: {}]   ;;  %s6138_s3 = inlined_call_operand.vmem [shape: bf16[2,32,96], index: 3, kind: input, shape index: {}]   ;;  %s6139_s4 = inlined_call_operand.vmem [shape: f32[2,2,128], index: 4, kind: input, shape index: {}]   ;;  %s6140_s5 = inlined_call_operand.vmem [shape: bf16[2,32,32], index: 5, kind: input, shape index: {}]   ;;  %s6141_s6 = inlined_call_operand.hbm [shape: bf16[2,32,128], index: 6, kind: input, shape index: {}]   ;;  %s6142_s7 = inlined_call_operand.vmem [shape: bf16[2,128,32], index: 7, kind: input, shape index: {}]   ;;  %s6143_s8 = inlined_call_operand.hbm [shape: f32[3,8,32], index: 8, kind: input, shape index: {}]   ;;  %s6144_s9 = inlined_call_operand.vmem [shape: f32[48,192], index: 9, kind: input, shape index: {}]   ;;  %s6145_s10 = inlined_call_operand.vmem [shape: f32[192,32], index: 10, kind: input, shape index: {}]   ;;  %s6146_s11 = inlined_call_operand.vmem [shape: f32[192,192], index: 11, kind: input, shape index: {}]   ;;  %s6147_s12 = inlined_call_operand.vmem [shape: f32[2,48], index: 12, kind: input, shape index: {}]   ;;  %s6148_s13 = inlined_call_operand.hbm [shape: bf16[32,128], index: 13, kind: input, shape index: {}]   ;;  %s6149_s14 = inlined_call_operand.vmem [shape: f32[1,128], index: 14, kind: input, shape index: {}]   ;;  %s6150_s15 = inlined_call_operand.hbm [shape: f32[2,128], index: 15, kind: output, shape index: {}]  }
   0x1   :  { %21 = vsyncpa [#allocation6], 0 }
   0x2   :  { %22 = vsyncpa [#allocation9], 0 }
   0x3   :  { %23 = vsyncpa [#allocation4], 0  ;;  %s4113_s18 = smov [#allocation5]   ;;  %s4114_s20 = smov [#allocation2]  }
   0x4   :  { %s51_s19 = sshll.u32 %s4113_s18, 4  ;;  %s31_s21 = sshll.u32 %s4114_s20, 4  ;;  %s52_s19 = int_to_ptr.vmem [resolvable:$true] %s51_s19  ;;  %s32_s21 = int_to_ptr.vmem [resolvable:$true] %s31_s21 }
   0x5   :  { %s4013_s22 = scalar_lea.vmem %s52_s19, 512  ;;  %p4018_p1 = scmp.lt.s32.totalorder %s52_s19, %s52_s19 }
   0x6   :  { %p4014_p0 = scmp.ne.s32.totalorder %s52_s19, %s4013_s22  ;;  %p4019_p2 = scmp.lt.s32.totalorder %s4013_s22, %s4013_s22 }
   0x8   :  { %p4020_p3 = por %p4019_p2, %p4018_p1 }
   0xa   :  { %p4021_p4 = pnand %p4020_p3, %p4014_p0 }
   0xc   :  { %4024 = shalt.err (!%p4021_p4)
}
   0xd   :  { %s4115_s23 = smov 64   ;;  %s4116_s24 = smov 4  }
   0xe   :  { %57 = dma.hbm_to_vmem [thread:$0]  %s6141_s6, 512, %s52_s19, [#allocation6], %s4115_s23, %s4115_s23, %s4116_s24  }
   0xf   :  { %s4033_s27 = scalar_lea.vmem %s32_s21, 256  ;;  %p4038_p6 = scmp.lt.s32.totalorder %s32_s21, %s32_s21 }
  0x10   :  { %p4034_p5 = scmp.ne.s32.totalorder %s32_s21, %s4033_s27  ;;  %p4039_p7 = scmp.lt.s32.totalorder %s4033_s27, %s4033_s27 }
  0x12   :  { %p4040_p8 = por %p4039_p7, %p4038_p6 }
  0x14   :  { %p4041_p9 = pnand %p4040_p8, %p4034_p5 }
  0x16   :  { %4044 = shalt.err (!%p4041_p9)
}
  0x17   :  { %37 = dma.hbm_to_vmem [thread:$0]  %s6136_s1, 256, %s32_s21, [#allocation3], %s4115_s23, %s4115_s23, %s4116_s24  }
  0x18   :  { %s4117_s30 = smov [#allocation7]  }
  0x19   :  { %s65_s16 = sshll.u32 %s4117_s30, 4  ;;  %s66_s16 = int_to_ptr.vmem [resolvable:$true] %s65_s16 }
  0x1a   :  { %s4053_s17 = scalar_lea.vmem %s66_s16, 384  ;;  %p4058_p11 = scmp.lt.s32.totalorder %s66_s16, %s66_s16 }
  0x1b   :  { %p4054_p10 = scmp.ne.s32.totalorder %s66_s16, %s4053_s17  ;;  %p4059_p12 = scmp.lt.s32.totalorder %s4053_s17, %s4053_s17 }
  0x1d   :  { %p4060_p13 = por %p4059_p12, %p4058_p11 }
  0x1f   :  { %p4061_p0 = pnand %p4060_p13, %p4054_p10 }
  0x21   :  { %4064 = shalt.err (!%p4061_p0)
}
  0x22   :  { %s4118_s6 = smov 128   ;;  %s4119_s18 = smov 8  }
  0x23   :  { %71 = dma.hbm_to_vmem [thread:$0]  %s6143_s8, 384, %s66_s16, [#allocation6], %s4118_s6, %s4118_s6, %s4119_s18  }
  0x24   :  { %s4120_s22 = smov [#allocation8]  }
  0x25   :  { %s85_s25 = sshll.u32 %s4120_s22, 4  ;;  %s86_s25 = int_to_ptr.vmem [resolvable:$true] %s85_s25 }
  0x26   :  { %s4073_s1 = scalar_lea.vmem %s86_s25, 256  ;;  %p4078_p2 = scmp.lt.s32.totalorder %s86_s25, %s86_s25 }
  0x27   :  { %p4074_p1 = scmp.ne.s32.totalorder %s86_s25, %s4073_s1  ;;  %p4079_p3 = scmp.lt.s32.totalorder %s4073_s1, %s4073_s1 }
  0x29   :  { %p4080_p4 = por %p4079_p3, %p4078_p2 }
  0x2b   :  { %p4081_p5 = pnand %p4080_p4, %p4074_p1 }
  0x2d   :  { %4084 = shalt.err (!%p4081_p5)
}
  0x2e   :  { %91 = dma.hbm_to_vmem [thread:$0]  %s6148_s13, 256, %s86_s25, [#allocation9], %s4115_s23, %s4115_s23, %s4116_s24  }
  0x2f   :  { %4105 = dma.done.wait [#allocation3], 256  }
  0x30   :  { %4106 = vsyncadd [#allocation3], 4294967040 }
  0x31   :  { %4107 = dma.done.wait [#allocation6], 896  }
  0x32   :  { %4108 = vsyncadd [#allocation6], 4294966400 }
  0x33   :  { %4109 = dma.done.wait [#allocation9], 256  }
  0x34   :  { %4110 = vsyncadd [#allocation9], 4294967040  ;;  %v6151_v0 = vmov 0.0   ;;  %vm4122_vm0 = vmmov 0   ;;  %v3762_v1 = vld [vmem:[#allocation2 + $0x8] sm:$0xff]   ;;  %v3763_v2 = vld [vmem:[#allocation2] sm:$0xff]  }
  0x35   :  { %3558 = vmatprep.subr.bf16.mxu0 %v6151_v0  ;;  %3562 = vmatprep.mubr.msk.bf16.mxu0 %vm4122_vm0, %v6151_v0  ;;  %v3764_v3 = vld [vmem:[%s6135_s0] sm:$0xff]   ;;  %vm150_vm1 = vcmask 261120   ;;  %v3765_v4 = vld [vmem:[%s6135_s0 + $0x8] sm:$0xff]   ;;  %v3766_v5 = vld [vmem:[%s6135_s0 + $0x10] sm:$0xff]   ;;  %s4123_s28 = smov 32   ;;  %s4124_s20 = smov 96  }
  0x36   :  { %3574 = vmatprep.subr.bf16.mxu1 %v6151_v0  ;;  %3578 = vmatprep.mubr.msk.bf16.mxu1 %vm4122_vm0, %v6151_v0  ;;  %v117_v6 = vld [vmem:[%s6137_s2] sm:$0xff]  ;;  %v118_v10 = vld [vmem:[%s6137_s2 + $0x8] sm:$0xff]  ;;  %v119_v15 = vld [vmem:[%s6137_s2 + $0x10] sm:$0xff]  ;;  %vm899_vm2 = vcmask 523264   ;;  %vm3110_vm3 = vcmask 392192   ;;  %vm3187_vm4 = vcmask 254976  }
  0x37   :  { %3559 = vmatpush3.bf16.msra.mxu0 %v3762_v1  ;;  %v120_v20 = vld [vmem:[%s6137_s2 + $0x18] sm:$0xff]  ;;  %v121_v25 = vld [vmem:[%s6137_s2 + $0x20] sm:$0xff]  ;;  %v122_v30 = vld [vmem:[%s6137_s2 + $0x28] sm:$0xff]  ;;  %vm3279_vm5 = vcmask 1041408  }
  0x38   :  { %3560 = vmatprep.subr.bf16.mxu0 %v6151_v0 }
  0x3b   :  { %3561 = vmatpush3.bf16.msra.mxu0 %v3763_v2 }
  0x3c   :  { %798 = vmatprep.subr.mxu0 %v6151_v0 }
  0x3e   :  { %3563 = vmatmul.mubr.msk.bf16.vlgmr.msra.gmra.mxu0 %vm150_vm1, %v3764_v3  ;;  %v3767_v3 = vld [vmem:[%s6138_s3 + $0x8] sm:$0xff]  }
  0x3f   :  { %3566 = vmatprep.mubr.msk.bf16.mxu0 %vm4122_vm0, %v6151_v0  ;;  %3575 = vmatpush3.bf16.msra.mxu1 %v3767_v3 }
  0x40   :  { %3576 = vmatprep.subr.bf16.mxu1 %v6151_v0 }
  0x46   :  { %3567 = vmatmul.mubr.msk.bf16.gmra.mxu0 %vm150_vm1, %v3765_v4  ;;  %v3768_v4 = vld [vmem:[%s6138_s3] sm:$0xff]  }
  0x47   :  { %3570 = vmatprep.mubr.msk.bf16.mxu0 %vm4122_vm0, %v6151_v0  ;;  %3577 = vmatpush3.bf16.msra.mxu1 %v3768_v4 }
  0x4e   :  { %3571 = vmatmul.mubr.msk.bf16.gmra.mxu0 %vm150_vm1, %v3766_v5  ;;  %v4340_v5 = vld [vmem:[%s6145_s10 + $0x70] sm:$0xff] }
  0x4f   :  { %862 = vmatprep.mubr.f32.mxu0 %v6151_v0 }
  0xfe   :  { %v194_v7 = vpop.f32.mrf.mxu0 }
  0xff   :  { %v4255_v8 = vadd.f32 %v194_v7, %v117_v6  ;;  %v4347_v6 = vld [vmem:[%s6145_s10 + $0x68] sm:$0xff]  ;;  %v4352_v7 = vld [vmem:[%s6145_s10 + $0x78] sm:$0xff] }
 0x100   :  { %v3564_v9 = vpop.f32.mrf.mxu0 }
 0x101   :  { %v255_v11 = vsel %vm150_vm1, %v4255_v8, 0.0  ;;  %v4361_v9 = vld [vmem:[%s6145_s10 + $0x58] sm:$0xff] }
 0x102   :  { %256 = vadd.xlane.f32.xlu0 %v255_v11  ;;  %v197_v12 = vpop.f32.mrf.mxu0  ;;  %v4375_v11 = vld [vmem:[%s6145_s10 + $0x48] sm:$0xff] }
 0x103   :  { %v4262_v13 = vadd.f32 %v197_v12, %v118_v10  ;;  %v4366_v10 = vld [vmem:[%s6145_s10 + $0x60] sm:$0xff]  ;;  %v4380_v12 = vld [vmem:[%s6145_s10 + $0x50] sm:$0xff] }
 0x104   :  { %v3565_v14 = vpop.f32.mrf.mxu0 }
 0x105   :  { %v258_v16 = vsel %vm150_vm1, %v4262_v13, 0.0  ;;  %v4389_v14 = vld [vmem:[%s6145_s10 + $0x38] sm:$0xff] }
 0x106   :  { %259 = vadd.xlane.f32.xlu0 %v258_v16  ;;  %v202_v17 = vpop.f32.mrf.mxu0  ;;  %v4403_v16 = vld [vmem:[%s6145_s10 + $0x28] sm:$0xff] }
 0x107   :  { %v4269_v18 = vadd.f32 %v202_v17, %v119_v15  ;;  %v4394_v15 = vld [vmem:[%s6145_s10 + $0x40] sm:$0xff]  ;;  %v4408_v17 = vld [vmem:[%s6145_s10 + $0x30] sm:$0xff] }
 0x108   :  { %v3568_v19 = vpop.f32.mrf.mxu0 }
 0x109   :  { %v261_v21 = vsel %vm150_vm1, %v4269_v18, 0.0  ;;  %v4417_v19 = vld [vmem:[%s6145_s10 + $0x18] sm:$0xff] }
 0x10a   :  { %262 = vadd.xlane.f32.xlu1 %v261_v21  ;;  %v205_v22 = vpop.f32.mrf.mxu0  ;;  %v4431_v21 = vld [vmem:[%s6145_s10 + $0x8] sm:$0xff] }
 0x10b   :  { %v4276_v23 = vadd.f32 %v205_v22, %v120_v20  ;;  %v4422_v20 = vld [vmem:[%s6145_s10 + $0x20] sm:$0xff]  ;;  %v4436_v22 = vld [vmem:[%s6145_s10 + $0x10] sm:$0xff] }
 0x10c   :  { %v3569_v24 = vpop.f32.mrf.mxu0 }
 0x10d   :  { %v264_v26 = vsel %vm150_vm1, %v4276_v23, 0.0  ;;  %v4445_v24 = vld [vmem:[%s6145_s10] sm:$0xff] }
 0x10e   :  { %265 = vadd.xlane.f32.xlu1 %v264_v26  ;;  %v210_v27 = vpop.f32.mrf.mxu0  ;;  %v4459_v26 = vld [vmem:[%s6145_s10 + $0xb0] sm:$0xff] }
 0x10f   :  { %v4283_v28 = vadd.f32 %v210_v27, %v121_v25  ;;  %v4452_v25 = vld [vmem:[%s6145_s10 + $0xb8] sm:$0xff]  ;;  %v4466_v27 = vld [vmem:[%s6145_s10 + $0xa8] sm:$0xff] }
 0x110   :  { %v3572_v29 = vpop.f32.mrf.mxu0 }
 0x111   :  { %v267_v31 = vsel %vm150_vm1, %v4283_v28, 0.0  ;;  %v4473_v29 = vld [vmem:[%s6145_s10 + $0xa0] sm:$0xff] }
 0x112   :  { %268 = vadd.xlane.f32.xlu0 %v267_v31  ;;  %v213_v32 = vpop.f32.mrf.mxu0  ;;  %v4487_v31 = vld [vmem:[%s6145_s10 + $0x90] sm:$0xff] }
 0x113   :  { %v4290_v33 = vadd.f32 %v213_v32, %v122_v30  ;;  %v4480_v30 = vld [vmem:[%s6145_s10 + $0x98] sm:$0xff]  ;;  %v4494_v32 = vld [vmem:[%s6145_s10 + $0x88] sm:$0xff] }
 0x114   :  { %v3573_v34 = vpop.f32.mrf.mxu0 }
 0x115   :  { %v270_v35 = vsel %vm150_vm1, %v4290_v33, 0.0  ;;  %v4501_v34 = vld [vmem:[%s6145_s10 + $0x80] sm:$0xff] }
 0x116   :  { %271 = vadd.xlane.f32.xlu1 %v270_v35 }
 0x18b   :  { %v257_v36 = vpop.xlane.xlu0 %256 }
 0x18c   :  { %v274_v37 = vmul.f32 0.03125, %v257_v36 }
 0x18e   :  { %v4295_v38 = vsub.f32 %v4255_v8, %v274_v37 }
 0x18f   :  { %v260_v39 = vpop.xlane.xlu0 %259 }
 0x190   :  { %v275_v40 = vmul.f32 0.03125, %v260_v39  ;;  %v286_v41 = vmul.f32 %v4295_v38, %v4295_v38 }
 0x192   :  { %v4300_v42 = vsub.f32 %v4262_v13, %v275_v40  ;;  %v292_v43 = vsel %vm150_vm1, %v286_v41, 0.0 }
 0x193   :  { %v263_v44 = vpop.xlane.xlu1 %262  ;;  %293 = vadd.xlane.f32.xlu0 %v292_v43 }
 0x194   :  { %v276_v45 = vmul.f32 0.03125, %v263_v44  ;;  %v287_v46 = vmul.f32 %v4300_v42, %v4300_v42 }
 0x196   :  { %v4306_v47 = vsub.f32 %v4269_v18, %v276_v45  ;;  %v295_v48 = vsel %vm150_vm1, %v287_v46, 0.0 }
 0x197   :  { %v266_v49 = vpop.xlane.xlu1 %265  ;;  %296 = vadd.xlane.f32.xlu1 %v295_v48 }
 0x198   :  { %v277_v50 = vmul.f32 0.03125, %v266_v49  ;;  %v288_v51 = vmul.f32 %v4306_v47, %v4306_v47 }
 0x19a   :  { %v4312_v52 = vsub.f32 %v4276_v23, %v277_v50  ;;  %v298_v53 = vsel %vm150_vm1, %v288_v51, 0.0 }
 0x19b   :  { %299 = vadd.xlane.f32.xlu0 %v298_v53  ;;  %v269_v54 = vpop.xlane.xlu0 %268 }
 0x19c   :  { %v278_v55 = vmul.f32 0.03125, %v269_v54  ;;  %v289_v56 = vmul.f32 %v4312_v52, %v4312_v52 }
 0x19e   :  { %v4318_v57 = vsub.f32 %v4283_v28, %v278_v55  ;;  %v301_v58 = vsel %vm150_vm1, %v289_v56, 0.0 }
 0x19f   :  { %302 = vadd.xlane.f32.xlu1 %v301_v58  ;;  %v272_v59 = vpop.xlane.xlu1 %271  ;;  %v3312_v58 = vld [vmem:[#allocation7] ss:$0 sm:$0xff] }
 0x1a0   :  { %v279_v60 = vmul.f32 0.03125, %v272_v59  ;;  %v290_v61 = vmul.f32 %v4318_v57, %v4318_v57 }
 0x1a2   :  { %v4324_v62 = vsub.f32 %v4290_v33, %v279_v60  ;;  %v304_v63 = vsel %vm150_vm1, %v290_v61, 0.0 }
 0x1a3   :  { %305 = vadd.xlane.f32.xlu0 %v304_v63 }
 0x1a4   :  { %v291_v1 = vmul.f32 %v4324_v62, %v4324_v62 }
 0x1a6   :  { %v307_v2 = vsel %vm150_vm1, %v291_v1, 0.0 }
 0x1a7   :  { %308 = vadd.xlane.f32.xlu1 %v307_v2  ;;  %v3313_v2 = vld [vmem:[#allocation7 + $0x1] ss:$0 sm:$0xff] }
 0x1b8   :  { %496 = vrot.lane.b32.xlu1 %v4340_v5, %s4123_s28 }
 0x1b9   :  { %498 = vrot.lane.b32.xlu0 %v4352_v7, %s4123_s28 }
 0x1bc   :  { %494 = vrot.lane.b32.xlu1 %v4347_v6, %s4123_s28 }
 0x1bd   :  { %490 = vrot.lane.b32.xlu0 %v4361_v9, %s4123_s28 }
 0x1c0   :  { %492 = vrot.lane.b32.xlu1 %v4366_v10, %s4123_s28 }
 0x1c1   :  { %486 = vrot.lane.b32.xlu0 %v4375_v11, %s4123_s28 }
 0x1c4   :  { %488 = vrot.lane.b32.xlu1 %v4380_v12, %s4123_s28 }
 0x1c5   :  { %482 = vrot.lane.b32.xlu0 %v4389_v14, %s4123_s28 }
 0x1c8   :  { %484 = vrot.lane.b32.xlu1 %v4394_v15, %s4123_s28 }
 0x1c9   :  { %478 = vrot.lane.b32.xlu0 %v4403_v16, %s4123_s28 }
 0x1cc   :  { %480 = vrot.lane.b32.xlu1 %v4408_v17, %s4123_s28 }
 0x1cd   :  { %474 = vrot.lane.b32.xlu0 %v4417_v19, %s4123_s28 }
 0x1d0   :  { %476 = vrot.lane.b32.xlu1 %v4422_v20, %s4123_s28 }
 0x1d1   :  { %470 = vrot.lane.b32.xlu0 %v4431_v21, %s4123_s28 }
 0x1d4   :  { %472 = vrot.lane.b32.xlu1 %v4436_v22, %s4123_s28 }
 0x1d8   :  { %468 = vrot.lane.b32.xlu1 %v4445_v24, %s4123_s28 }
 0x1dc   :  { %514 = vrot.lane.b32.xlu1 %v4452_v25, %s4123_s28 }
 0x1e0   :  { %512 = vrot.lane.b32.xlu1 %v4459_v26, %s4123_s28 }
 0x1e4   :  { %510 = vrot.lane.b32.xlu1 %v4466_v27, %s4123_s28 }
 0x1e8   :  { %508 = vrot.lane.b32.xlu1 %v4473_v29, %s4123_s28 }
 0x1ec   :  { %506 = vrot.lane.b32.xlu1 %v4480_v30, %s4123_s28 }
 0x1f0   :  { %504 = vrot.lane.b32.xlu1 %v4487_v31, %s4123_s28 }
 0x1f4   :  { %502 = vrot.lane.b32.xlu1 %v4494_v32, %s4123_s28 }
 0x1f8   :  { %500 = vrot.lane.b32.xlu1 %v4501_v34, %s4123_s28 }
 0x21c   :  { %v294_v35 = vpop.xlane.xlu0 %293 }
 0x21d   :  { %v310_v36 = vmul.f32 0.03125, %v294_v35 }
 0x21f   :  { %v316_v37 = vadd.f32 1e-05, %v310_v36 }
 0x220   :  { %v297_v39 = vpop.xlane.xlu1 %296 }
 0x221   :  { %3797 = vrsqrt.f32 %v316_v37  ;;  %v311_v40 = vmul.f32 0.03125, %v297_v39 }
 0x223   :  { %v317_v41 = vadd.f32 1e-05, %v311_v40 }
 0x224   :  { %v300_v43 = vpop.xlane.xlu0 %299 }
 0x225   :  { %3799 = vrsqrt.f32 %v317_v41  ;;  %v312_v44 = vmul.f32 0.03125, %v300_v43 }
 0x227   :  { %v318_v45 = vadd.f32 1e-05, %v312_v44 }
 0x228   :  { %v303_v46 = vpop.xlane.xlu1 %302 }
 0x229   :  { %3801 = vrsqrt.f32 %v318_v45  ;;  %v313_v48 = vmul.f32 0.03125, %v303_v46 }
 0x22b   :  { %v319_v49 = vadd.f32 1e-05, %v313_v48 }
 0x22c   :  { %v306_v50 = vpop.xlane.xlu0 %305 }
 0x22d   :  { %3803 = vrsqrt.f32 %v319_v49  ;;  %v314_v51 = vmul.f32 0.03125, %v306_v50 }
 0x22e   :  { %v3798_v53 = vpop.eup %3797 }
 0x22f   :  { %v320_v54 = vadd.f32 1e-05, %v314_v51  ;;  %v328_v55 = vmul.f32 %v3798_v53, %v4295_v38 }
 0x230   :  { %v309_v56 = vpop.xlane.xlu1 %308 }
 0x231   :  { %3805 = vrsqrt.f32 %v320_v54  ;;  %v315_v59 = vmul.f32 0.03125, %v309_v56  ;;  %v338_v1 = vmul.f32 %v3312_v58, %v328_v55 }
 0x232   :  { %v3800_v60 = vpop.eup %3799 }
 0x233   :  { %v321_v61 = vadd.f32 1e-05, %v315_v59  ;;  %v329_v63 = vmul.f32 %v3800_v60, %v4300_v42  ;;  %v348_v35 = vadd.f32 %v3313_v2, %v338_v1  ;;  %v3314_v1 = vld [vmem:[%s6139_s4] ss:$0 sm:$0xff] }
 0x234   :  { %v4518_v55 = vpop.permute.xlu1 %496 }
 0x235   :  { %3807 = vrsqrt.f32 %v321_v61  ;;  %v339_v3 = vmul.f32 %v3312_v58, %v329_v63 }
 0x236   :  { %v3802_v4 = vpop.eup %3801 }
 0x237   :  { %v349_v36 = vadd.f32 %v3313_v2, %v339_v3  ;;  %v330_v37 = vmul.f32 %v3802_v4, %v4306_v47 }
 0x238   :  { %v4520_v56 = vpop.permute.xlu1 %494 }
 0x239   :  { %v354_v39 = vpack.c.bf16 %v349_v36, %v348_v35  ;;  %v340_v41 = vmul.f32 %v3312_v58, %v330_v37 }
 0x23a   :  { %v3804_v40 = vpop.eup %3803 }
 0x23b   :  { %3579 = vmatmul.mubr.msk.bf16.vlgmr.msra.gmra.mxu1 %vm150_vm1, %v354_v39  ;;  %v331_v38 = vmul.f32 %v3804_v40, %v4312_v52  ;;  %v350_v44 = vadd.f32 %v3313_v2, %v340_v41 }
 0x23c   :  { %3582 = vmatprep.mubr.msk.bf16.mxu1 %vm4122_vm0, %v6151_v0 }
 0x23d   :  { %v341_v42 = vmul.f32 %v3312_v58, %v331_v38 }
 0x23e   :  { %v3806_v43 = vpop.eup %3805 }
 0x23f   :  { %v351_v45 = vadd.f32 %v3313_v2, %v341_v42  ;;  %v332_v46 = vmul.f32 %v3806_v43, %v4318_v57  ;;  %v4522_v57 = vpop.permute.xlu1 %492 }
 0x241   :  { %v355_v48 = vpack.c.bf16 %v351_v45, %v350_v44  ;;  %v342_v50 = vmul.f32 %v3312_v58, %v332_v46  ;;  %v4552_v45 = vpop.permute.xlu0 %498 }
 0x242   :  { %v3808_v49 = vpop.eup %3807 }
 0x243   :  { %3583 = vmatmul.mubr.msk.bf16.gmra.mxu1 %vm150_vm1, %v355_v48  ;;  %v333_v47 = vmul.f32 %v3808_v49, %v4324_v62  ;;  %v352_v51 = vadd.f32 %v3313_v2, %v342_v50  ;;  %v4524_v59 = vpop.permute.xlu1 %488 }
 0x244   :  { %3586 = vmatprep.mubr.msk.bf16.mxu1 %vm4122_vm0, %v6151_v0 }
 0x245   :  { %v343_v52 = vmul.f32 %v3312_v58, %v333_v47 }
 0x247   :  { %v353_v53 = vadd.f32 %v3313_v2, %v343_v52  ;;  %v4526_v60 = vpop.permute.xlu1 %484 }
 0x248   :  { %6171 = vst [vmem:[#allocation15_spill] sm:$0xff] %v4526_v60 }
 0x249   :  { %v356_v54 = vpack.c.bf16 %v353_v53, %v352_v51 }
 0x24b   :  { %3587 = vmatmul.mubr.msk.bf16.gmra.mxu1 %vm150_vm1, %v356_v54  ;;  %v4528_v62 = vpop.permute.xlu1 %480 }
 0x24c   :  { %6172 = vst [vmem:[#allocation16_spill] sm:$0xff] %v4528_v62 }
 0x24f   :  { %v4530_v61 = vpop.permute.xlu1 %476 }
 0x250   :  { %6173 = vst [vmem:[#allocation17_spill] sm:$0xff] %v4530_v61 }
 0x253   :  { %v4532_v58 = vpop.permute.xlu1 %472 }
 0x254   :  { %6174 = vst [vmem:[#allocation18_spill] sm:$0xff] %v4532_v58 }
 0x257   :  { %v4534_v63 = vpop.permute.xlu1 %468 }
 0x258   :  { %6175 = vst [vmem:[#allocation19_spill] sm:$0xff] %v4534_v63 }
 0x25b   :  { %v4539_v2 = vpop.permute.xlu1 %514 }
 0x25c   :  { %6176 = vst [vmem:[#allocation20_spill] sm:$0xff] %v4539_v2 }
 0x25f   :  { %v4546_v39 = vpop.permute.xlu1 %512 }
 0x260   :  { %6177 = vst [vmem:[#allocation21_spill] sm:$0xff] %v4546_v39 }
 0x263   :  { %v4548_v42 = vpop.permute.xlu1 %510 }
 0x264   :  { %6178 = vst [vmem:[#allocation22_spill] sm:$0xff] %v4548_v42 }
 0x267   :  { %v4561_v52 = vpop.permute.xlu1 %508 }
 0x268   :  { %6179 = vst [vmem:[#allocation23_spill] sm:$0xff] %v4561_v52 }
 0x2fb   :  { %v421_v3 = vpop.f32.mrf.mxu1 }
 0x2fc   :  { %v4541_v4 = vadd.f32 %v3314_v1, %v421_v3 }
 0x2fd   :  { %v3580_v35 = vpop.f32.mrf.mxu1 }
 0x2fe   :  { %v546_v36 = vmul.f32 %v4528_v62, %v4541_v4 }
 0x2ff   :  { %v424_v37 = vpop.f32.mrf.mxu1 }
 0x300   :  { %696 = vrot.lane.b32.xlu1 %v546_v36, %s4124_s20  ;;  %v4563_v53 = vadd.f32 %v3314_v1, %v424_v37  ;;  %v4575_v37 = vpop.permute.xlu1 %506 }
 0x301   :  { %v3581_v40 = vpop.f32.mrf.mxu1  ;;  %6180 = vst [vmem:[#allocation24_spill] sm:$0xff] %v4575_v37 }
 0x302   :  { %v553_v40 = vmul.f32 %v4520_v56, %v4563_v53 }
 0x303   :  { %v429_v38 = vpop.f32.mrf.mxu1 }
 0x304   :  { %v4554_v48 = vadd.f32 %v3314_v1, %v429_v38 }
 0x305   :  { %v3584_v41 = vpop.f32.mrf.mxu1 }
 0x306   :  { %v554_v54 = vmul.f32 %v4518_v55, %v4554_v48  ;;  %v542_v38 = vmul.f32 %v4532_v58, %v4554_v48  ;;  %v4579_v41 = vpop.permute.xlu0 %490 }
 0x307   :  { %v432_v43 = vpop.f32.mrf.mxu1 }
 0x308   :  { %v4550_v44 = vadd.f32 %v3314_v1, %v432_v43 }
 0x309   :  { %v3585_v46 = vpop.f32.mrf.mxu1 }
 0x30a   :  { %v555_v49 = vmul.f32 %v4552_v45, %v4550_v44  ;;  %v552_v46 = vmul.f32 %v4522_v57, %v4541_v4 }
 0x30b   :  { %v437_v47 = vpop.f32.mrf.mxu1 }
 0x30c   :  { %v4558_v50 = vadd.f32 %v3314_v1, %v437_v47  ;;  %714 = vrot.lane.b32.xlu0 %v555_v49, %s4124_s20  ;;  %v540_v49 = vmul.f32 %v4534_v63, %v4541_v4  ;;  %v4589_v47 = vpop.permute.xlu1 %504 }
 0x30d   :  { %v3588_v51 = vpop.f32.mrf.mxu1  ;;  %6181 = vst [vmem:[#allocation25_spill] sm:$0xff] %v4589_v47 }
 0x30e   :  { %v544_v3 = vmul.f32 %v4530_v61, %v4558_v50 }
 0x30f   :  { %v440_v35 = vpop.f32.mrf.mxu1 }
 0x310   :  { %712 = vrot.lane.b32.xlu0 %v554_v54, %s4124_s20  ;;  %692 = vrot.lane.b32.xlu1 %v544_v3, %s4124_s20  ;;  %v4581_v43 = vadd.f32 %v3314_v1, %v440_v35  ;;  %v562_v54 = vmul.f32 %v4546_v39, %v4558_v50  ;;  %v4595_v1 = vpop.permute.xlu0 %486  ;;  %v4599_v3 = vpop.permute.xlu1 %502  ;;  %v550_v35 = vmul.f32 %v4524_v59, %v4558_v50 }
 0x311   :  { %v3589_v36 = vpop.f32.mrf.mxu1  ;;  %6182 = vst [vmem:[#allocation26_spill] sm:$0xff] %v4595_v1  ;;  %6183 = vst [vmem:[#allocation27_spill] sm:$0xff] %v4599_v3 }
 0x312   :  { %v551_v51 = vmul.f32 %v4579_v41, %v4581_v43  ;;  %v560_v36 = vmul.f32 %v4561_v52, %v4554_v48 }
 0x314   :  { %710 = vrot.lane.b32.xlu0 %v553_v40, %s4124_s20  ;;  %688 = vrot.lane.b32.xlu1 %v542_v38, %s4124_s20  ;;  %v4607_v40 = vpop.permute.xlu0 %482  ;;  %v558_v38 = vmul.f32 %v4589_v47, %v4541_v4  ;;  %v6189_v47 = vmov 0.0  }
 0x315   :  { %6184 = vst [vmem:[#allocation28_spill] sm:$0xff] %v4607_v40 }
 0x318   :  { %708 = vrot.lane.b32.xlu0 %v552_v46, %s4124_s20  ;;  %684 = vrot.lane.b32.xlu1 %v540_v49, %s4124_s20  ;;  %v549_v46 = vmul.f32 %v4595_v1, %v4550_v44  ;;  %v4613_v49 = vpop.permute.xlu1 %500  ;;  %v228_v1 = vld [vmem:[%s6144_s9 + $0x58] sm:$0xff] }
 0x319   :  { %6185 = vst [vmem:[#allocation29_spill] sm:$0xff] %v4613_v49 }
 0x31c   :  { %706 = vrot.lane.b32.xlu0 %v551_v51, %s4124_s20  ;;  %728 = vrot.lane.b32.xlu1 %v562_v54, %s4124_s20  ;;  %v556_v51 = vmul.f32 %v4613_v49, %v4558_v50  ;;  %v548_v54 = vmul.f32 %v4526_v60, %v4554_v48  ;;  %v1005_v60 = vld [vmem:[%s6146_s11 + $0x168] sm:$0xff] }
 0x320   :  { %704 = vrot.lane.b32.xlu0 %v550_v35, %s4124_s20  ;;  %724 = vrot.lane.b32.xlu1 %v560_v36, %s4124_s20  ;;  %v4621_v35 = vpop.permute.xlu0 %478  ;;  %v547_v36 = vmul.f32 %v4607_v40, %v4563_v53 }
 0x321   :  { %6186 = vst [vmem:[#allocation30_spill] sm:$0xff] %v4621_v35 }
 0x324   :  { %702 = vrot.lane.b32.xlu0 %v549_v46, %s4124_s20  ;;  %720 = vrot.lane.b32.xlu1 %v558_v38, %s4124_s20  ;;  %v4628_v46 = vpop.permute.xlu0 %474  ;;  %v545_v38 = vmul.f32 %v4621_v35, %v4581_v43 }
 0x325   :  { %6187 = vst [vmem:[#allocation31_spill] sm:$0xff] %v4628_v46  ;;  %v543_v0 = vmul.f32 %v4628_v46, %v4550_v44 }
 0x328   :  { %700 = vrot.lane.b32.xlu0 %v548_v54, %s4124_s20  ;;  %716 = vrot.lane.b32.xlu1 %v556_v51, %s4124_s20  ;;  %v4635_v49 = vpop.permute.xlu0 %470  ;;  %v563_v54 = vmul.f32 %v4539_v2, %v4581_v43 }
 0x329   :  { %6188 = vst [vmem:[#allocation32_spill] sm:$0xff] %v4635_v49  ;;  %v541_v51 = vmul.f32 %v4635_v49, %v4563_v53 }
 0x32c   :  { %698 = vrot.lane.b32.xlu0 %v547_v36, %s4124_s20  ;;  %v561_v36 = vmul.f32 %v4548_v42, %v4550_v44 }
 0x330   :  { %694 = vrot.lane.b32.xlu0 %v545_v38, %s4124_s20  ;;  %v559_v38 = vmul.f32 %v4575_v37, %v4563_v53  ;;  %v985_v37 = vld [vmem:[%s6146_s11 + $0xc8] sm:$0xff] }
 0x334   :  { %690 = vrot.lane.b32.xlu0 %v543_v0, %s4124_s20  ;;  %v557_v0 = vmul.f32 %v4599_v3, %v4581_v43  ;;  %v986_v3 = vld [vmem:[%s6146_s11 + $0xd0] sm:$0xff] }
 0x338   :  { %686 = vrot.lane.b32.xlu0 %v541_v51, %s4124_s20 }
 0x33c   :  { %730 = vrot.lane.b32.xlu0 %v563_v54, %s4124_s20 }
 0x340   :  { %726 = vrot.lane.b32.xlu0 %v561_v36, %s4124_s20 }
 0x344   :  { %722 = vrot.lane.b32.xlu0 %v559_v38, %s4124_s20 }
 0x348   :  { %718 = vrot.lane.b32.xlu0 %v557_v0, %s4124_s20 }
 0x37e   :  { %v715_v51 = vpop.permute.xlu0 %714 }
 0x37f   :  { %3320 = vmatpush1.xpose.msk.msra.mxu0 %vm150_vm1, %v715_v51 }
 0x380   :  { %800 = vmatprep.subr.mxu0 %v6189_v47 }
 0x382   :  { %v713_v54 = vpop.permute.xlu0 %712 }
 0x383   :  { %3321 = vmatpush1.xpose.msk.msra.mxu0 %vm150_vm1, %v713_v54 }
 0x384   :  { %802 = vmatprep.subr.mxu0 %v6189_v47 }
 0x386   :  { %v711_v36 = vpop.permute.xlu0 %710 }
 0x387   :  { %3322 = vmatpush1.xpose.msk.msra.mxu0 %vm150_vm1, %v711_v36 }
 0x388   :  { %804 = vmatprep.subr.mxu0 %v6189_v47 }
 0x38a   :  { %v709_v38 = vpop.permute.xlu0 %708 }
 0x38b   :  { %3323 = vmatpush1.xpose.msk.msra.mxu0 %vm150_vm1, %v709_v38 }
 0x38c   :  { %806 = vmatprep.subr.mxu0 %v6189_v47 }
 0x38e   :  { %v707_v0 = vpop.permute.xlu0 %706 }
 0x38f   :  { %3324 = vmatpush1.xpose.msk.msra.mxu0 %vm150_vm1, %v707_v0  ;;  %v697_v0 = vpop.permute.xlu1 %696 }
 0x390   :  { %808 = vmatprep.subr.mxu0 %v6189_v47 }
 0x392   :  { %v705_v51 = vpop.permute.xlu0 %704 }
 0x393   :  { %3325 = vmatpush1.xpose.msk.msra.mxu0 %vm150_vm1, %v705_v51 }
 0x394   :  { %810 = vmatprep.subr.mxu0 %v6189_v47 }
 0x396   :  { %v703_v54 = vpop.permute.xlu0 %702 }
 0x397   :  { %3326 = vmatpush1.xpose.msk.msra.mxu0 %vm150_vm1, %v703_v54  ;;  %v693_v54 = vpop.permute.xlu1 %692 }
 0x398   :  { %812 = vmatprep.subr.mxu0 %v6189_v47 }
 0x39a   :  { %v701_v36 = vpop.permute.xlu0 %700 }
 0x39b   :  { %3327 = vmatpush1.xpose.msk.msra.mxu0 %vm150_vm1, %v701_v36 }
 0x39c   :  { %814 = vmatprep.subr.mxu0 %v6189_v47 }
 0x39e   :  { %v699_v38 = vpop.permute.xlu0 %698 }
 0x39f   :  { %3328 = vmatpush1.xpose.msk.msra.mxu0 %vm150_vm1, %v699_v38  ;;  %v689_v38 = vpop.permute.xlu1 %688 }
 0x3a0   :  { %816 = vmatprep.subr.mxu0 %v6189_v47 }
 0x3a2   :  { %v695_v51 = vpop.permute.xlu0 %694 }
 0x3a3   :  { %3329 = vmatpush1.xpose.msk.msra.mxu0 %vm150_vm1, %v697_v0 }
 0x3a4   :  { %818 = vmatprep.subr.mxu0 %v6189_v47 }
 0x3a6   :  { %v691_v36 = vpop.permute.xlu0 %690 }
 0x3a7   :  { %3330 = vmatpush1.xpose.msk.msra.mxu0 %vm150_vm1, %v695_v51  ;;  %v685_v51 = vpop.permute.xlu1 %684 }
 0x3a8   :  { %820 = vmatprep.subr.mxu0 %v6189_v47 }
 0x3aa   :  { %v687_v0 = vpop.permute.xlu0 %686 }
 0x3ab   :  { %3331 = vmatpush1.xpose.msk.msra.mxu0 %vm150_vm1, %v693_v54 }
 0x3ac   :  { %822 = vmatprep.subr.mxu0 %v6189_v47 }
 0x3ae   :  { %v731_v54 = vpop.permute.xlu0 %730 }
 0x3af   :  { %3332 = vmatpush1.xpose.msk.msra.mxu0 %vm150_vm1, %v691_v36  ;;  %v729_v36 = vpop.permute.xlu1 %728 }
 0x3b0   :  { %824 = vmatprep.subr.mxu0 %v6189_v47 }
 0x3b3   :  { %3333 = vmatpush1.xpose.msk.msra.mxu0 %vm150_vm1, %v689_v38  ;;  %v727_v38 = vpop.permute.xlu0 %726 }
 0x3b4   :  { %826 = vmatprep.subr.mxu0 %v6189_v47 }
 0x3b7   :  { %3334 = vmatpush1.xpose.msk.msra.mxu0 %vm150_vm1, %v687_v0  ;;  %v725_v0 = vpop.permute.xlu1 %724 }
 0x3b8   :  { %828 = vmatprep.subr.mxu0 %v6189_v47 }
 0x3bb   :  { %3335 = vmatpush1.xpose.msk.msra.mxu0 %vm150_vm1, %v685_v51  ;;  %v723_v51 = vpop.permute.xlu0 %722 }
 0x3bc   :  { %846 = vmatprep.subr.mxu0 %v6189_v47 }
 0x3bf   :  { %3336 = vmatpush2.xpose.msk.msra.mxu0 %vm150_vm1, %v731_v54  ;;  %v721_v54 = vpop.permute.xlu1 %720 }
 0x3c0   :  { %848 = vmatprep.subr.mxu0 %v6189_v47 }
 0x3c3   :  { %3337 = vmatpush2.xpose.msk.msra.mxu0 %vm150_vm1, %v729_v36  ;;  %v719_v36 = vpop.permute.xlu0 %718 }
 0x3c4   :  { %850 = vmatprep.subr.mxu0 %v6189_v47 }
 0x3c7   :  { %3338 = vmatpush2.xpose.msk.msra.mxu0 %vm150_vm1, %v727_v38  ;;  %v717_v38 = vpop.permute.xlu1 %716 }
 0x3c8   :  { %852 = vmatprep.subr.mxu0 %v6189_v47 }
 0x3cb   :  { %3339 = vmatpush2.xpose.msk.msra.mxu0 %vm150_vm1, %v725_v0  ;;  %v991_v0 = vld [vmem:[%s6146_s11 + $0xf8] sm:$0xff] }
 0x3cc   :  { %854 = vmatprep.subr.mxu0 %v6189_v47  ;;  %1026 = vmatprep.subr.mxu1 %v991_v0  ;;  %v984_v0 = vld [vmem:[%s6146_s11 + $0xc0] sm:$0xff] }
 0x3cf   :  { %3340 = vmatpush2.xpose.msk.msra.mxu0 %vm150_vm1, %v723_v51  ;;  %v990_v51 = vld [vmem:[%s6146_s11 + $0xf0] sm:$0xff] }
 0x3d0   :  { %856 = vmatprep.subr.mxu0 %v6189_v47  ;;  %1027 = vmatpush1.msra.mxu1 %v990_v51  ;;  %v983_v51 = vld [vmem:[%s6146_s11 + $0xb8] sm:$0xff] }
 0x3d3   :  { %3341 = vmatpush2.xpose.msk.msra.mxu0 %vm150_vm1, %v721_v54  ;;  %v989_v54 = vld [vmem:[%s6146_s11 + $0xe8] sm:$0xff] }
 0x3d4   :  { %858 = vmatprep.subr.mxu0 %v6189_v47  ;;  %1028 = vmatprep.subr.mxu1 %v989_v54  ;;  %v982_v54 = vld [vmem:[%s6146_s11 + $0xb0] sm:$0xff] }
 0x3d7   :  { %3342 = vmatpush2.xpose.msk.msra.mxu0 %vm150_vm1, %v719_v36  ;;  %v988_v36 = vld [vmem:[%s6146_s11 + $0xe0] sm:$0xff] }
 0x3d8   :  { %860 = vmatprep.subr.mxu0 %v6189_v47  ;;  %1029 = vmatpush1.msra.mxu1 %v988_v36  ;;  %v981_v36 = vld [vmem:[%s6146_s11 + $0xa8] sm:$0xff] }
 0x3db   :  { %3343 = vmatpush2.xpose.msk.msra.mxu0 %vm150_vm1, %v717_v38  ;;  %v987_v38 = vld [vmem:[%s6146_s11 + $0xd8] sm:$0xff] }
 0x3dc   :  { %3590 = vmatprep.subr.bf16.mxu0 %v6189_v47  ;;  %1030 = vmatprep.subr.mxu1 %v987_v38  ;;  %v980_v38 = vld [vmem:[%s6146_s11 + $0xa0] sm:$0xff] }
 0x3dd   :  { %1031 = vmatpush1.msra.mxu1 %v986_v3  ;;  %v979_v3 = vld [vmem:[%s6146_s11 + $0x98] sm:$0xff] }
 0x3de   :  { %3344 = vmatmul.mubr.msk.f32.vlgmr.msra.gmra.mxu0 %vm150_vm1, %v4541_v4  ;;  %1032 = vmatprep.subr.mxu1 %v985_v37  ;;  %v978_v37 = vld [vmem:[%s6146_s11 + $0x90] sm:$0xff] }
 0x3df   :  { %868 = vmatprep.mubr.f32.mxu0 %v6189_v47  ;;  %1033 = vmatpush1.msra.mxu1 %v984_v0  ;;  %v977_v0 = vld [vmem:[%s6146_s11 + $0x88] sm:$0xff] }
 0x3e0   :  { %1034 = vmatprep.subr.mxu1 %v983_v51  ;;  %v976_v51 = vld [vmem:[%s6146_s11 + $0x80] sm:$0xff] }
 0x3e1   :  { %1035 = vmatpush1.msra.mxu1 %v982_v54  ;;  %v975_v54 = vld [vmem:[%s6146_s11 + $0x78] sm:$0xff] }
 0x3e2   :  { %3345 = vmatmul.mubr.msk.f32.gmra.mxu0 %vm150_vm1, %v4563_v53  ;;  %1036 = vmatprep.subr.mxu1 %v981_v36  ;;  %v974_v36 = vld [vmem:[%s6146_s11 + $0x70] sm:$0xff] }
 0x3e3   :  { %874 = vmatprep.mubr.f32.mxu0 %v6189_v47  ;;  %1037 = vmatpush1.msra.mxu1 %v980_v38  ;;  %v973_v38 = vld [vmem:[%s6146_s11 + $0x68] sm:$0xff] }
 0x3e4   :  { %1038 = vmatprep.subr.mxu1 %v979_v3  ;;  %v972_v3 = vld [vmem:[%s6146_s11 + $0x60] sm:$0xff] }
 0x3e5   :  { %1039 = vmatpush1.msra.mxu1 %v978_v37  ;;  %v971_v37 = vld [vmem:[%s6146_s11 + $0x58] sm:$0xff] }
 0x3e6   :  { %3346 = vmatmul.mubr.msk.f32.gmra.mxu0 %vm150_vm1, %v4554_v48  ;;  %1040 = vmatprep.subr.mxu1 %v977_v0  ;;  %v970_v0 = vld [vmem:[%s6146_s11 + $0x50] sm:$0xff] }
 0x3e7   :  { %880 = vmatprep.mubr.f32.mxu0 %v6189_v47  ;;  %1041 = vmatpush1.msra.mxu1 %v976_v51  ;;  %v969_v51 = vld [vmem:[%s6146_s11 + $0x48] sm:$0xff] }
 0x3e8   :  { %1042 = vmatprep.subr.mxu1 %v975_v54  ;;  %v968_v54 = vld [vmem:[%s6146_s11 + $0x40] sm:$0xff] }
 0x3e9   :  { %1043 = vmatpush1.msra.mxu1 %v974_v36  ;;  %v967_v36 = vld [vmem:[%s6146_s11 + $0x38] sm:$0xff] }
 0x3ea   :  { %3347 = vmatmul.mubr.msk.f32.gmra.mxu0 %vm150_vm1, %v4550_v44  ;;  %1044 = vmatprep.subr.mxu1 %v973_v38  ;;  %v966_v38 = vld [vmem:[%s6146_s11 + $0x30] sm:$0xff] }
 0x3eb   :  { %886 = vmatprep.mubr.f32.mxu0 %v6189_v47  ;;  %1045 = vmatpush1.msra.mxu1 %v972_v3  ;;  %v965_v3 = vld [vmem:[%s6146_s11 + $0x28] sm:$0xff] }
 0x3ec   :  { %1046 = vmatprep.subr.mxu1 %v971_v37  ;;  %v964_v37 = vld [vmem:[%s6146_s11 + $0x20] sm:$0xff] }
 0x3ed   :  { %1047 = vmatpush1.msra.mxu1 %v970_v0  ;;  %v963_v0 = vld [vmem:[%s6146_s11 + $0x18] sm:$0xff] }
 0x3ee   :  { %3348 = vmatmul.mubr.msk.f32.gmra.mxu0 %vm150_vm1, %v4558_v50  ;;  %1048 = vmatprep.subr.mxu1 %v969_v51 }
 0x3ef   :  { %892 = vmatprep.mubr.f32.mxu0 %v6189_v47  ;;  %1049 = vmatpush1.msra.mxu1 %v968_v54  ;;  %v218_v54 = vld [vmem:[%s6144_s9 + $0x8] sm:$0xff] }
 0x3f0   :  { %1050 = vmatprep.subr.mxu1 %v967_v36  ;;  %v217_v36 = vld [vmem:[%s6144_s9] sm:$0xff] }
 0x3f1   :  { %1051 = vmatpush1.msra.mxu1 %v966_v38 }
 0x3f2   :  { %3349 = vmatmul.mubr.msk.f32.gmra.mxu0 %vm150_vm1, %v4581_v43  ;;  %1052 = vmatprep.subr.mxu1 %v965_v3  ;;  %v220_v3 = vld [vmem:[%s6144_s9 + $0x18] sm:$0xff] }
 0x3f3   :  { %3594 = vmatprep.mubr.msk.bf16.mxu0 %vm4122_vm0, %v6189_v47  ;;  %1053 = vmatpush1.msra.mxu1 %v964_v37  ;;  %v219_v37 = vld [vmem:[%s6144_s9 + $0x10] sm:$0xff] }
 0x3f4   :  { %1054 = vmatprep.subr.mxu1 %v963_v0 }
 0x49e   :  { %v864_v51 = vpop.f32.mrf.mxu0 }
 0x49f   :  { %v4815_v38 = vadd.f32 %v864_v51, %v217_v36  ;;  %v221_v36 = vld [vmem:[%s6144_s9 + $0x20] sm:$0xff] }
 0x4a0   :  { %v866_v42 = vpop.f32.mrf.mxu0 }
 0x4a1   :  { %v4813_v52 = vadd.f32 %v866_v42, %v218_v54  ;;  %v222_v54 = vld [vmem:[%s6144_s9 + $0x28] sm:$0xff] }
 0x4a2   :  { %v870_v2 = vpop.f32.mrf.mxu0 }
 0x4a3   :  { %v900_v0 = vsel %vm899_vm2, %v4813_v52, -inf  ;;  %v4828_v42 = vadd.f32 %v870_v2, %v219_v37  ;;  %v223_v37 = vld [vmem:[%s6144_s9 + $0x30] sm:$0xff] }
 0x4a4   :  { %v872_v39 = vpop.f32.mrf.mxu0  ;;  %v901_v49 = vmax.f32 %v4815_v38, %v900_v0 }
 0x4a5   :  { %v4826_v63 = vadd.f32 %v872_v39, %v220_v3 }
 0x4a6   :  { %v876_v51 = vpop.f32.mrf.mxu0  ;;  %902 = vmax.xlane.f32.xlu0 %v901_v49  ;;  %v224_v49 = vld [vmem:[%s6144_s9 + $0x38] sm:$0xff] }
 0x4a7   :  { %v904_v46 = vsel %vm899_vm2, %v4826_v63, -inf  ;;  %v4841_v2 = vadd.f32 %v876_v51, %v221_v36  ;;  %v226_v36 = vld [vmem:[%s6144_s9 + $0x48] sm:$0xff] }
 0x4a8   :  { %v878_v58 = vpop.f32.mrf.mxu0  ;;  %v905_v0 = vmax.f32 %v4828_v42, %v904_v46 }
 0x4a9   :  { %v4839_v39 = vadd.f32 %v878_v58, %v222_v54 }
 0x4aa   :  { %v882_v3 = vpop.f32.mrf.mxu0  ;;  %906 = vmax.xlane.f32.xlu1 %v905_v0  ;;  %v225_v0 = vld [vmem:[%s6144_s9 + $0x40] sm:$0xff] }
 0x4ab   :  { %v908_v35 = vsel %vm899_vm2, %v4839_v39, -inf  ;;  %v4854_v51 = vadd.f32 %v882_v3, %v223_v37 }
 0x4ac   :  { %v884_v61 = vpop.f32.mrf.mxu0  ;;  %v909_v46 = vmax.f32 %v4841_v2, %v908_v35 }
 0x4ad   :  { %v4852_v58 = vadd.f32 %v884_v61, %v224_v49  ;;  %v962_v61 = vld [vmem:[%s6146_s11 + $0x10] sm:$0xff]  ;;  %v961_v49 = vld [vmem:[%s6146_s11 + $0x8] sm:$0xff] }
 0x4ae   :  { %v888_v54 = vpop.f32.mrf.mxu0  ;;  %910 = vmax.xlane.f32.xlu0 %v909_v46  ;;  %1055 = vmatpush1.msra.mxu1 %v962_v61  ;;  %v1006_v61 = vld [vmem:[%s6146_s11 + $0x170] sm:$0xff] }
 0x4af   :  { %v912_v40 = vsel %vm899_vm2, %v4852_v58, -inf  ;;  %v4873_v37 = vadd.f32 %v888_v54, %v225_v0  ;;  %1056 = vmatprep.subr.mxu1 %v961_v49  ;;  %v1007_v54 = vld [vmem:[%s6146_s11 + $0x178] sm:$0xff] }
 0x4b0   :  { %v890_v62 = vpop.f32.mrf.mxu0  ;;  %v913_v35 = vmax.f32 %v4854_v51, %v912_v40  ;;  %v960_v40 = vld [vmem:[%s6146_s11] sm:$0xff] }
 0x4b1   :  { %v4868_v3 = vadd.f32 %v890_v62, %v226_v36  ;;  %v227_v62 = vld [vmem:[%s6144_s9 + $0x50] sm:$0xff]  ;;  %1057 = vmatpush1.msra.mxu1 %v960_v40 }
 0x4b2   :  { %v894_v46 = vpop.f32.mrf.mxu0  ;;  %914 = vmax.xlane.f32.xlu0 %v913_v35  ;;  %1074 = vmatprep.subr.mxu1 %v1007_v54 }
 0x4b3   :  { %v916_v36 = vsel %vm899_vm2, %v4868_v3, -inf  ;;  %1075 = vmatpush2.msra.mxu1 %v1006_v61  ;;  %v4898_v40 = vadd.f32 %v894_v46, %v227_v62  ;;  %v1002_v46 = vld [vmem:[%s6146_s11 + $0x150] sm:$0xff]  ;;  %v1000_v62 = vld [vmem:[%s6146_s11 + $0x140] sm:$0xff] }
 0x4b4   :  { %v896_v0 = vpop.f32.mrf.mxu0  ;;  %v917_v35 = vmax.f32 %v4873_v37, %v916_v36  ;;  %1076 = vmatprep.subr.mxu1 %v1005_v60  ;;  %v1004_v36 = vld [vmem:[%s6146_s11 + $0x160] sm:$0xff]  ;;  %v1001_v60 = vld [vmem:[%s6146_s11 + $0x148] sm:$0xff]  ;;  %v998_v61 = vld [vmem:[%s6146_s11 + $0x130] sm:$0xff] }
 0x4b5   :  { %v4893_v49 = vadd.f32 %v896_v0, %v228_v1  ;;  %1077 = vmatpush2.msra.mxu1 %v1004_v36  ;;  %v1003_v1 = vld [vmem:[%s6146_s11 + $0x158] sm:$0xff]  ;;  %v997_v36 = vld [vmem:[%s6146_s11 + $0x128] sm:$0xff] }
 0x4b6   :  { %918 = vmax.xlane.f32.xlu0 %v917_v35  ;;  %1078 = vmatprep.subr.mxu1 %v1003_v1  ;;  %v999_v35 = vld [vmem:[%s6146_s11 + $0x138] sm:$0xff] }
 0x4b7   :  { %v920_v54 = vsel %vm899_vm2, %v4893_v49, -inf  ;;  %1079 = vmatpush2.msra.mxu1 %v1002_v46  ;;  %v995_v1 = vld [vmem:[%s6146_s11 + $0x118] sm:$0xff]  ;;  %v993_v46 = vld [vmem:[%s6146_s11 + $0x108] sm:$0xff] }
 0x4b8   :  { %v921_v0 = vmax.f32 %v4898_v40, %v920_v54  ;;  %1080 = vmatprep.subr.mxu1 %v1001_v60  ;;  %v996_v54 = vld [vmem:[%s6146_s11 + $0x120] sm:$0xff] }
 0x4b9   :  { %1081 = vmatpush2.msra.mxu1 %v1000_v62  ;;  %v992_v60 = vld [vmem:[%s6146_s11 + $0x100] sm:$0xff] }
 0x4ba   :  { %922 = vmax.xlane.f32.xlu1 %v921_v0  ;;  %1082 = vmatprep.subr.mxu1 %v999_v35  ;;  %v994_v0 = vld [vmem:[%s6146_s11 + $0x110] sm:$0xff] }
 0x4bb   :  { %1083 = vmatpush2.msra.mxu1 %v998_v61 }
 0x4bc   :  { %1084 = vmatprep.subr.mxu1 %v997_v36 }
 0x4bd   :  { %1085 = vmatpush2.msra.mxu1 %v996_v54 }
 0x4be   :  { %1086 = vmatprep.subr.mxu1 %v995_v1 }
 0x4bf   :  { %1087 = vmatpush2.msra.mxu1 %v994_v0 }
 0x4c0   :  { %1088 = vmatprep.subr.mxu1 %v993_v46 }
 0x4c1   :  { %1089 = vmatpush2.msra.mxu1 %v992_v60 }
 0x4c2   :  { %1265 = vmatprep.subr.mxu1 %v6189_v47 }
 0x4cb   :  { %592 = vrot.lane.b32.xlu1 %v4340_v5, %s4115_s23 }
 0x4cc   :  { %594 = vrot.lane.b32.xlu0 %v4352_v7, %s4115_s23 }
 0x4cf   :  { %590 = vrot.lane.b32.xlu1 %v4347_v6, %s4115_s23 }
 0x4d0   :  { %586 = vrot.lane.b32.xlu0 %v4361_v9, %s4115_s23 }
 0x4d3   :  { %588 = vrot.lane.b32.xlu1 %v4366_v10, %s4115_s23 }
 0x4d4   :  { %582 = vrot.lane.b32.xlu0 %v4375_v11, %s4115_s23 }
 0x4d7   :  { %584 = vrot.lane.b32.xlu1 %v4380_v12, %s4115_s23 }
 0x4d8   :  { %578 = vrot.lane.b32.xlu0 %v4389_v14, %s4115_s23 }
 0x4db   :  { %580 = vrot.lane.b32.xlu1 %v4394_v15, %s4115_s23 }
 0x4dc   :  { %574 = vrot.lane.b32.xlu0 %v4403_v16, %s4115_s23 }
 0x4df   :  { %576 = vrot.lane.b32.xlu1 %v4408_v17, %s4115_s23 }
 0x4e0   :  { %570 = vrot.lane.b32.xlu0 %v4417_v19, %s4115_s23 }
 0x4e3   :  { %572 = vrot.lane.b32.xlu1 %v4422_v20, %s4115_s23 }
 0x4e4   :  { %566 = vrot.lane.b32.xlu0 %v4431_v21, %s4115_s23 }
 0x4e7   :  { %568 = vrot.lane.b32.xlu1 %v4436_v22, %s4115_s23 }
 0x4e8   :  { %610 = vrot.lane.b32.xlu0 %v4452_v25, %s4115_s23 }
 0x4eb   :  { %564 = vrot.lane.b32.xlu1 %v4445_v24, %s4115_s23 }
 0x4ec   :  { %606 = vrot.lane.b32.xlu0 %v4466_v27, %s4115_s23 }
 0x4ef   :  { %608 = vrot.lane.b32.xlu1 %v4459_v26, %s4115_s23 }
 0x4f0   :  { %602 = vrot.lane.b32.xlu0 %v4480_v30, %s4115_s23 }
 0x4f3   :  { %604 = vrot.lane.b32.xlu1 %v4473_v29, %s4115_s23 }
 0x4f4   :  { %598 = vrot.lane.b32.xlu0 %v4494_v32, %s4115_s23 }
 0x4f7   :  { %600 = vrot.lane.b32.xlu1 %v4487_v31, %s4115_s23 }
 0x4fb   :  { %596 = vrot.lane.b32.xlu1 %v4501_v34, %s4115_s23 }
 0x52f   :  { %v903_v5 = vpop.xlane.xlu0 %902 }
 0x530   :  { %v924_v6 = vsub.f32 %v4815_v38, %v903_v5  ;;  %v925_v7 = vsub.f32 %v4813_v52, %v903_v5 }
 0x532   :  { %v936_v9 = vmul.f32 1.442695, %v924_v6  ;;  %v938_v10 = vmul.f32 1.442695, %v925_v7 }
 0x533   :  { %v907_v11 = vpop.xlane.xlu1 %906 }
 0x534   :  { %3809 = vpow2.f32 %v936_v9  ;;  %v926_v12 = vsub.f32 %v4828_v42, %v907_v11  ;;  %v927_v14 = vsub.f32 %v4826_v63, %v907_v11 }
 0x535   :  { %3811 = vpow2.f32 %v938_v10 }
 0x536   :  { %v940_v15 = vmul.f32 1.442695, %v926_v12  ;;  %v942_v16 = vmul.f32 1.442695, %v927_v14 }
 0x537   :  { %v911_v17 = vpop.xlane.xlu0 %910 }
 0x538   :  { %3813 = vpow2.f32 %v940_v15  ;;  %v928_v19 = vsub.f32 %v4841_v2, %v911_v17  ;;  %v929_v20 = vsub.f32 %v4839_v39, %v911_v17 }
 0x539   :  { %3815 = vpow2.f32 %v942_v16 }
 0x53a   :  { %v944_v21 = vmul.f32 1.442695, %v928_v19  ;;  %v946_v22 = vmul.f32 1.442695, %v929_v20 }
 0x53b   :  { %v915_v24 = vpop.xlane.xlu0 %914 }
 0x53c   :  { %3817 = vpow2.f32 %v944_v21  ;;  %v930_v25 = vsub.f32 %v4854_v51, %v915_v24  ;;  %v931_v26 = vsub.f32 %v4852_v58, %v915_v24 }
 0x53d   :  { %3819 = vpow2.f32 %v946_v22 }
 0x53e   :  { %v948_v27 = vmul.f32 1.442695, %v930_v25  ;;  %v950_v29 = vmul.f32 1.442695, %v931_v26 }
 0x53f   :  { %v919_v30 = vpop.xlane.xlu0 %918 }
 0x540   :  { %3821 = vpow2.f32 %v948_v27  ;;  %v932_v31 = vsub.f32 %v4873_v37, %v919_v30  ;;  %v933_v32 = vsub.f32 %v4868_v3, %v919_v30 }
 0x541   :  { %v5001_v34 = vpop.eup %3809  ;;  %3823 = vpow2.f32 %v950_v29 }
 0x542   :  { %v5003_v63 = vpop.eup %3811  ;;  %v952_v52 = vmul.f32 1.442695, %v932_v31  ;;  %v954_v38 = vmul.f32 1.442695, %v933_v32 }
 0x543   :  { %3350 = vmatprep.mubr.msk.f32.mxu1 %vm899_vm2, %v5003_v63  ;;  %v923_v42 = vpop.xlane.xlu1 %922  ;;  %v5007_v39 = vpop.permute.xlu0 %594 }
 0x544   :  { %3825 = vpow2.f32 %v952_v52  ;;  %v934_v2 = vsub.f32 %v4898_v40, %v923_v42  ;;  %v935_v58 = vsub.f32 %v4893_v49, %v923_v42  ;;  %1091 = vmatmul.mubr.f32.vlgmr.msra.gmra.mxu1 %v5001_v34  ;;  %v651_v51 = vmul.f32 %v5007_v39, %v4550_v44 }
 0x545   :  { %v5014_v3 = vpop.eup %3813  ;;  %3827 = vpow2.f32 %v954_v38 }
 0x546   :  { %v5016_v37 = vpop.eup %3815  ;;  %v956_v62 = vmul.f32 1.442695, %v934_v2  ;;  %v958_v35 = vmul.f32 1.442695, %v935_v58  ;;  %1205 = vrot.lane.b32.xlu0 %v651_v51, %s4115_s23 }
 0x547   :  { %3351 = vmatprep.mubr.msk.f32.mxu1 %vm899_vm2, %v5016_v37  ;;  %v5021_v40 = vpop.permute.xlu1 %592  ;;  %v5023_v49 = vpop.permute.xlu0 %586 }
 0x548   :  { %3829 = vpow2.f32 %v956_v62  ;;  %1097 = vmatmul.mubr.f32.gmra.mxu1 %v5014_v3  ;;  %v650_v61 = vmul.f32 %v5021_v40, %v4554_v48  ;;  %v647_v10 = vmul.f32 %v5023_v49, %v4581_v43 }
 0x549   :  { %v5028_v36 = vpop.eup %3817  ;;  %3831 = vpow2.f32 %v958_v35 }
 0x54a   :  { %v5030_v54 = vpop.eup %3819  ;;  %1203 = vrot.lane.b32.xlu1 %v650_v61, %s4115_s23 }
 0x54b   :  { %3352 = vmatprep.mubr.msk.f32.mxu1 %vm899_vm2, %v5030_v54  ;;  %v5035_v1 = vpop.permute.xlu1 %590  ;;  %v5037_v0 = vpop.permute.xlu0 %582 }
 0x54c   :  { %1103 = vmatmul.mubr.f32.gmra.mxu1 %v5028_v36  ;;  %v649_v46 = vmul.f32 %v5035_v1, %v4563_v53  ;;  %v645_v17 = vmul.f32 %v5037_v0, %v4550_v44 }
 0x54d   :  { %v5042_v60 = vpop.eup %3821 }
 0x54e   :  { %v5044_v5 = vpop.eup %3823  ;;  %1201 = vrot.lane.b32.xlu0 %v649_v46, %s4115_s23 }
 0x54f   :  { %3353 = vmatprep.mubr.msk.f32.mxu1 %vm899_vm2, %v5044_v5  ;;  %v5049_v6 = vpop.permute.xlu1 %588  ;;  %v5051_v7 = vpop.permute.xlu0 %578 }
 0x550   :  { %1109 = vmatmul.mubr.f32.gmra.mxu1 %v5042_v60  ;;  %v648_v9 = vmul.f32 %v5049_v6, %v4541_v4  ;;  %v643_v25 = vmul.f32 %v5051_v7, %v4563_v53 }
 0x551   :  { %v5058_v11 = vpop.eup %3825 }
 0x552   :  { %v5060_v12 = vpop.eup %3827  ;;  %1199 = vrot.lane.b32.xlu1 %v648_v9, %s4115_s23  ;;  %1197 = vrot.lane.b32.xlu0 %v647_v10, %s4115_s23 }
 0x553   :  { %3354 = vmatprep.mubr.msk.f32.mxu1 %vm899_vm2, %v5060_v12  ;;  %v5066_v14 = vpop.permute.xlu1 %584  ;;  %v5068_v15 = vpop.permute.xlu0 %574 }
 0x554   :  { %1115 = vmatmul.mubr.f32.gmra.mxu1 %v5058_v11  ;;  %v646_v16 = vmul.f32 %v5066_v14, %v4558_v50  ;;  %v641_v29 = vmul.f32 %v5068_v15, %v4581_v43 }
 0x555   :  { %v5075_v19 = vpop.eup %3829 }
 0x556   :  { %v5077_v20 = vpop.eup %3831  ;;  %1195 = vrot.lane.b32.xlu1 %v646_v16, %s4115_s23  ;;  %1193 = vrot.lane.b32.xlu0 %v645_v17, %s4115_s23 }
 0x557   :  { %3355 = vmatprep.mubr.msk.f32.mxu1 %vm899_vm2, %v5077_v20  ;;  %v5083_v21 = vpop.permute.xlu1 %580  ;;  %v5085_v22 = vpop.permute.xlu0 %570 }
 0x558   :  { %v644_v24 = vmul.f32 %v5083_v21, %v4554_v48  ;;  %1121 = vmatmul.mubr.f32.gmra.mxu1 %v5075_v19  ;;  %v639_v52 = vmul.f32 %v5085_v22, %v4550_v44 }
 0x55a   :  { %1191 = vrot.lane.b32.xlu1 %v644_v24, %s4115_s23  ;;  %1189 = vrot.lane.b32.xlu0 %v643_v25, %s4115_s23 }
 0x55b   :  { %v5094_v26 = vpop.permute.xlu1 %576  ;;  %v5096_v27 = vpop.permute.xlu0 %566 }
 0x55c   :  { %v642_v30 = vmul.f32 %v5094_v26, %v4541_v4  ;;  %v637_v2 = vmul.f32 %v5096_v27, %v4563_v53 }
 0x55e   :  { %1187 = vrot.lane.b32.xlu1 %v642_v30, %s4115_s23  ;;  %1185 = vrot.lane.b32.xlu0 %v641_v29, %s4115_s23 }
 0x55f   :  { %v5104_v31 = vpop.permute.xlu1 %572  ;;  %v5106_v32 = vpop.permute.xlu0 %610 }
 0x560   :  { %v640_v38 = vmul.f32 %v5104_v31, %v4558_v50  ;;  %v659_v35 = vmul.f32 %v5106_v32, %v4581_v43 }
 0x562   :  { %1183 = vrot.lane.b32.xlu1 %v640_v38, %s4115_s23  ;;  %1181 = vrot.lane.b32.xlu0 %v639_v52, %s4115_s23  ;;  %v3769_v38 = vld [vmem:[%s6140_s5 + $0x8] sm:$0xff]  }
 0x563   :  { %v5114_v42 = vpop.permute.xlu1 %568  ;;  %v5120_v51 = vpop.permute.xlu0 %606  ;;  %3591 = vmatpush3.bf16.msra.mxu0 %v3769_v38 }
 0x564   :  { %v638_v58 = vmul.f32 %v5114_v42, %v4554_v48  ;;  %v657_v10 = vmul.f32 %v5120_v51, %v4550_v44  ;;  %3592 = vmatprep.subr.bf16.mxu0 %v6189_v47 }
 0x566   :  { %1179 = vrot.lane.b32.xlu1 %v638_v58, %s4115_s23  ;;  %1177 = vrot.lane.b32.xlu0 %v637_v2, %s4115_s23 }
 0x567   :  { %v5124_v62 = vpop.permute.xlu1 %564  ;;  %v5132_v46 = vpop.permute.xlu0 %602 }
 0x568   :  { %v636_v61 = vmul.f32 %v5124_v62, %v4541_v4  ;;  %v655_v24 = vmul.f32 %v5132_v46, %v4563_v53 }
 0x56a   :  { %1175 = vrot.lane.b32.xlu1 %v636_v61, %s4115_s23  ;;  %1221 = vrot.lane.b32.xlu0 %v659_v35, %s4115_s23 }
 0x56b   :  { %v5134_v9 = vpop.permute.xlu1 %608  ;;  %v5148_v29 = vpop.permute.xlu0 %598 }
 0x56c   :  { %v658_v16 = vmul.f32 %v5134_v9, %v4558_v50  ;;  %v653_v30 = vmul.f32 %v5148_v29, %v4581_v43 }
 0x56e   :  { %1219 = vrot.lane.b32.xlu1 %v658_v16, %s4115_s23  ;;  %1217 = vrot.lane.b32.xlu0 %v657_v10, %s4115_s23 }
 0x56f   :  { %v5142_v17 = vpop.permute.xlu1 %604 }
 0x570   :  { %v656_v25 = vmul.f32 %v5142_v17, %v4554_v48 }
 0x572   :  { %1215 = vrot.lane.b32.xlu1 %v656_v25, %s4115_s23  ;;  %1213 = vrot.lane.b32.xlu0 %v655_v24, %s4115_s23 }
 0x573   :  { %v5152_v44 = vpop.permute.xlu1 %600 }
 0x574   :  { %v654_v52 = vmul.f32 %v5152_v44, %v4541_v4 }
 0x576   :  { %1211 = vrot.lane.b32.xlu1 %v654_v52, %s4115_s23  ;;  %1209 = vrot.lane.b32.xlu0 %v653_v30, %s4115_s23 }
 0x577   :  { %v5160_v53 = vpop.permute.xlu1 %596 }
 0x578   :  { %v652_v48 = vmul.f32 %v5160_v53, %v4558_v50 }
 0x57a   :  { %1207 = vrot.lane.b32.xlu1 %v652_v48, %s4115_s23 }
 0x5b8   :  { %v1206_v43 = vpop.permute.xlu0 %1205 }
 0x5b9   :  { %1266 = vmatpush1.msra.mxu1 %v1206_v43 }
 0x5ba   :  { %1267 = vmatprep.subr.mxu1 %v6189_v47 }
 0x5bc   :  { %v1204_v4 = vpop.permute.xlu1 %1203 }
 0x5bd   :  { %1268 = vmatpush1.msra.mxu1 %v1204_v4 }
 0x5be   :  { %1269 = vmatprep.subr.mxu1 %v6189_v47 }
 0x5c0   :  { %v1202_v2 = vpop.permute.xlu0 %1201 }
 0x5c1   :  { %1270 = vmatpush1.msra.mxu1 %v1202_v2 }
 0x5c2   :  { %1271 = vmatprep.subr.mxu1 %v6189_v47 }
 0x5c4   :  { %v1200_v50 = vpop.permute.xlu1 %1199  ;;  %v1198_v58 = vpop.permute.xlu0 %1197 }
 0x5c5   :  { %1272 = vmatpush1.msra.mxu1 %v1200_v50 }
 0x5c6   :  { %1273 = vmatprep.subr.mxu1 %v6189_v47 }
 0x5c7   :  { %1274 = vmatpush1.msra.mxu1 %v1198_v58 }
 0x5c8   :  { %v1196_v35 = vpop.permute.xlu1 %1195  ;;  %1275 = vmatprep.subr.mxu1 %v6189_v47  ;;  %v1194_v61 = vpop.permute.xlu0 %1193 }
 0x5c9   :  { %1276 = vmatpush1.msra.mxu1 %v1196_v35 }
 0x5ca   :  { %1277 = vmatprep.subr.mxu1 %v6189_v47 }
 0x5cb   :  { %1278 = vmatpush1.msra.mxu1 %v1194_v61 }
 0x5cc   :  { %v1192_v10 = vpop.permute.xlu1 %1191  ;;  %1279 = vmatprep.subr.mxu1 %v6189_v47  ;;  %v1190_v16 = vpop.permute.xlu0 %1189 }
 0x5cd   :  { %1280 = vmatpush1.msra.mxu1 %v1192_v10 }
 0x5ce   :  { %1281 = vmatprep.subr.mxu1 %v6189_v47 }
 0x5cf   :  { %1282 = vmatpush1.msra.mxu1 %v1190_v16 }
 0x5d0   :  { %v1188_v24 = vpop.permute.xlu1 %1187  ;;  %1283 = vmatprep.subr.mxu1 %v6189_v47  ;;  %v1186_v25 = vpop.permute.xlu0 %1185 }
 0x5d1   :  { %1284 = vmatpush1.msra.mxu1 %v1188_v24 }
 0x5d2   :  { %1285 = vmatprep.subr.mxu1 %v6189_v47 }
 0x5d3   :  { %1286 = vmatpush1.msra.mxu1 %v1186_v25 }
 0x5d4   :  { %v1184_v30 = vpop.permute.xlu1 %1183  ;;  %1287 = vmatprep.subr.mxu1 %v6189_v47  ;;  %v1182_v52 = vpop.permute.xlu0 %1181 }
 0x5d5   :  { %1288 = vmatpush1.msra.mxu1 %v1184_v30 }
 0x5d6   :  { %1289 = vmatprep.subr.mxu1 %v6189_v47 }
 0x5d7   :  { %1290 = vmatpush1.msra.mxu1 %v1182_v52 }
 0x5d8   :  { %v1180_v48 = vpop.permute.xlu1 %1179  ;;  %1291 = vmatprep.subr.mxu1 %v6189_v47  ;;  %v1178_v38 = vpop.permute.xlu0 %1177 }
 0x5d9   :  { %1292 = vmatpush1.msra.mxu1 %v1180_v48 }
 0x5da   :  { %1293 = vmatprep.subr.mxu1 %v6189_v47 }
 0x5db   :  { %1294 = vmatpush1.msra.mxu1 %v1178_v38 }
 0x5dc   :  { %v1176_v43 = vpop.permute.xlu1 %1175  ;;  %1295 = vmatprep.subr.mxu1 %v6189_v47  ;;  %v1222_v4 = vpop.permute.xlu0 %1221 }
 0x5dd   :  { %1296 = vmatpush1.msra.mxu1 %v1176_v43 }
 0x5de   :  { %1313 = vmatprep.subr.mxu1 %v6189_v47 }
 0x5df   :  { %1314 = vmatpush2.msra.mxu1 %v1222_v4 }
 0x5e0   :  { %v1220_v2 = vpop.permute.xlu1 %1219  ;;  %1315 = vmatprep.subr.mxu1 %v6189_v47  ;;  %v1218_v50 = vpop.permute.xlu0 %1217 }
 0x5e1   :  { %1316 = vmatpush2.msra.mxu1 %v1220_v2 }
 0x5e2   :  { %1317 = vmatprep.subr.mxu1 %v6189_v47 }
 0x5e3   :  { %1318 = vmatpush2.msra.mxu1 %v1218_v50 }
 0x5e4   :  { %v1216_v58 = vpop.permute.xlu1 %1215  ;;  %1319 = vmatprep.subr.mxu1 %v6189_v47  ;;  %v1214_v35 = vpop.permute.xlu0 %1213 }
 0x5e5   :  { %1320 = vmatpush2.msra.mxu1 %v1216_v58 }
 0x5e6   :  { %1321 = vmatprep.subr.mxu1 %v6189_v47 }
 0x5e7   :  { %1322 = vmatpush2.msra.mxu1 %v1214_v35 }
 0x5e8   :  { %v1212_v61 = vpop.permute.xlu1 %1211  ;;  %1323 = vmatprep.subr.mxu1 %v6189_v47  ;;  %v1210_v10 = vpop.permute.xlu0 %1209 }
 0x5e9   :  { %1324 = vmatpush2.msra.mxu1 %v1212_v61 }
 0x5ea   :  { %1325 = vmatprep.subr.mxu1 %v6189_v47 }
 0x5eb   :  { %1326 = vmatpush2.msra.mxu1 %v1210_v10 }
 0x5ec   :  { %v1208_v16 = vpop.permute.xlu1 %1207  ;;  %1327 = vmatprep.subr.mxu1 %v6189_v47 }
 0x5ed   :  { %1328 = vmatpush2.msra.mxu1 %v1208_v16 }
 0x5ee   :  { %3606 = vmatprep.subr.bf16.mxu1 %v6189_v47 }
 0x604   :  { %v1092_v24 = vpop.f32.mrf.mxu1 }
 0x605   :  { %3833 = vrcp.f32 %v1092_v24 }
 0x606   :  { %v1094_v25 = vpop.f32.mrf.mxu1 }
 0x607   :  { %3835 = vrcp.f32 %v1094_v25 }
 0x608   :  { %v1098_v30 = vpop.f32.mrf.mxu1 }
 0x609   :  { %3837 = vrcp.f32 %v1098_v30 }
 0x60a   :  { %v1100_v52 = vpop.f32.mrf.mxu1 }
 0x60b   :  { %3839 = vrcp.f32 %v1100_v52 }
 0x60c   :  { %v1104_v48 = vpop.f32.mrf.mxu1 }
 0x60d   :  { %3841 = vrcp.f32 %v1104_v48 }
 0x60e   :  { %v1106_v38 = vpop.f32.mrf.mxu1 }
 0x60f   :  { %3843 = vrcp.f32 %v1106_v38 }
 0x610   :  { %v1110_v43 = vpop.f32.mrf.mxu1 }
 0x611   :  { %3845 = vrcp.f32 %v1110_v43 }
 0x612   :  { %v1112_v4 = vpop.f32.mrf.mxu1  ;;  %v3834_v2 = vpop.eup %3833 }
 0x613   :  { %3847 = vrcp.f32 %v1112_v4  ;;  %v1139_v10 = vmul.f32 %v3834_v2, %v5001_v34 }
 0x614   :  { %v3836_v50 = vpop.eup %3835  ;;  %v1116_v58 = vpop.f32.mrf.mxu1 }
 0x615   :  { %v1140_v35 = vmul.f32 %v3836_v50, %v5003_v63  ;;  %3849 = vrcp.f32 %v1116_v58 }
 0x616   :  { %v1118_v61 = vpop.f32.mrf.mxu1  ;;  %v3838_v16 = vpop.eup %3837 }
 0x617   :  { %3851 = vrcp.f32 %v1118_v61  ;;  %3356 = vmatprep.mubr.msk.f32.mxu1 %vm899_vm2, %v1140_v35  ;;  %v1141_v48 = vmul.f32 %v3838_v16, %v5014_v3 }
 0x618   :  { %v3840_v24 = vpop.eup %3839  ;;  %v1122_v25 = vpop.f32.mrf.mxu1  ;;  %1330 = vmatmul.mubr.f32.vlgmr.msra.gmra.mxu1 %v1139_v10 }
 0x619   :  { %v1142_v30 = vmul.f32 %v3840_v24, %v5016_v37  ;;  %3853 = vrcp.f32 %v1122_v25 }
 0x61a   :  { %v1124_v52 = vpop.f32.mrf.mxu1  ;;  %v3842_v38 = vpop.eup %3841 }
 0x61b   :  { %3855 = vrcp.f32 %v1124_v52  ;;  %3357 = vmatprep.mubr.msk.f32.mxu1 %vm899_vm2, %v1142_v30  ;;  %v1143_v43 = vmul.f32 %v3842_v38, %v5028_v36 }
 0x61c   :  { %v3844_v63 = vpop.eup %3843  ;;  %1335 = vmatmul.mubr.f32.gmra.mxu1 %v1141_v48 }
 0x61d   :  { %v1144_v34 = vmul.f32 %v3844_v63, %v5030_v54 }
 0x61e   :  { %v3846_v4 = vpop.eup %3845 }
 0x61f   :  { %3358 = vmatprep.mubr.msk.f32.mxu1 %vm899_vm2, %v1144_v34  ;;  %v1145_v50 = vmul.f32 %v3846_v4, %v5042_v60  ;;  %v3770_v60 = vld [vmem:[%s6140_s5] sm:$0xff]  }
 0x620   :  { %v3848_v2 = vpop.eup %3847  ;;  %1340 = vmatmul.mubr.f32.gmra.mxu1 %v1143_v43  ;;  %3593 = vmatpush3.bf16.msra.mxu0 %v3770_v60 }
 0x621   :  { %v1146_v37 = vmul.f32 %v3848_v2, %v5044_v5  ;;  %3622 = vmatprep.subr.bf16.mxu0 %v6189_v47  ;;  %v3362_v2 = vld [vmem:[#allocation7 + $0x2] ss:$0 sm:$0xff] }
 0x622   :  { %v3850_v3 = vpop.eup %3849 }
 0x623   :  { %3359 = vmatprep.mubr.msk.f32.mxu1 %vm899_vm2, %v1146_v37  ;;  %v1147_v54 = vmul.f32 %v3850_v3, %v5058_v11 }
 0x624   :  { %v3852_v58 = vpop.eup %3851  ;;  %1345 = vmatmul.mubr.f32.gmra.mxu1 %v1145_v50 }
 0x625   :  { %v1148_v35 = vmul.f32 %v3852_v58, %v5060_v12 }
 0x626   :  { %v3854_v61 = vpop.eup %3853 }
 0x627   :  { %3360 = vmatprep.mubr.msk.f32.mxu1 %vm899_vm2, %v1148_v35  ;;  %v1149_v5 = vmul.f32 %v3854_v61, %v5075_v19 }
 0x628   :  { %v3856_v36 = vpop.eup %3855  ;;  %1350 = vmatmul.mubr.f32.gmra.mxu1 %v1147_v54 }
 0x629   :  { %v1150_v10 = vmul.f32 %v3856_v36, %v5077_v20 }
 0x62b   :  { %3361 = vmatprep.mubr.msk.f32.mxu1 %vm899_vm2, %v1150_v10 }
 0x62c   :  { %1355 = vmatmul.mubr.f32.gmra.mxu1 %v1149_v5 }
 0x62d   :  { %3610 = vmatprep.mubr.msk.bf16.mxu1 %vm4122_vm0, %v6189_v47 }
 0x6d8   :  { %v1331_v11 = vpop.f32.mrf.mxu1 }
 0x6da   :  { %v1333_v12 = vpop.f32.mrf.mxu1 }
 0x6dc   :  { %v1336_v16 = vpop.f32.mrf.mxu1 }
 0x6dd   :  { %v1360_v24 = vpack.c.bf16 %v1336_v16, %v1331_v11 }
 0x6de   :  { %v1338_v20 = vpop.f32.mrf.mxu1 }
 0x6df   :  { %3595 = vmatmul.mubr.msk.bf16.vlgmr.msra.gmra.mxu0 %vm150_vm1, %v1360_v24 }
 0x6e0   :  { %v1341_v19 = vpop.f32.mrf.mxu1  ;;  %3598 = vmatprep.mubr.msk.bf16.mxu0 %vm4122_vm0, %v6189_v47 }
 0x6e2   :  { %v1343_v25 = vpop.f32.mrf.mxu1 }
 0x6e4   :  { %v1346_v30 = vpop.f32.mrf.mxu1 }
 0x6e5   :  { %v1361_v52 = vpack.c.bf16 %v1346_v30, %v1341_v19 }
 0x6e6   :  { %v1348_v48 = vpop.f32.mrf.mxu1 }
 0x6e7   :  { %3599 = vmatmul.mubr.msk.bf16.gmra.mxu0 %vm150_vm1, %v1361_v52 }
 0x6e8   :  { %v1351_v38 = vpop.f32.mrf.mxu1  ;;  %3602 = vmatprep.mubr.msk.bf16.mxu0 %vm4122_vm0, %v6189_v47 }
 0x6ea   :  { %v1353_v63 = vpop.f32.mrf.mxu1 }
 0x6ec   :  { %v1356_v34 = vpop.f32.mrf.mxu1 }
 0x6ed   :  { %v1362_v43 = vpack.c.bf16 %v1356_v34, %v1351_v38 }
 0x6ee   :  { %v1358_v4 = vpop.f32.mrf.mxu1 }
 0x6ef   :  { %3603 = vmatmul.mubr.msk.bf16.gmra.mxu0 %vm150_vm1, %v1362_v43 }
 0x6f0   :  { %3638 = vmatprep.mubr.msk.bf16.mxu0 %vm4122_vm0, %v6189_v47 }
 0x79f   :  { %v1427_v37 = vpop.f32.mrf.mxu0 }
 0x7a0   :  { %v1428_v50 = vadd.f32 %v3362_v2, %v1427_v37 }
 0x7a1   :  { %v3596_v3 = vpop.f32.mrf.mxu0 }
 0x7a2   :  { %v5227_v58 = vadd.f32 %v1428_v50, %v4255_v8 }
 0x7a3   :  { %v1430_v35 = vpop.f32.mrf.mxu0 }
 0x7a4   :  { %v1431_v54 = vadd.f32 %v3362_v2, %v1430_v35  ;;  %v1458_v61 = vsel %vm150_vm1, %v5227_v58, 0.0 }
 0x7a5   :  { %1459 = vadd.xlane.f32.xlu0 %v1458_v61  ;;  %v3597_v36 = vpop.f32.mrf.mxu0 }
 0x7a6   :  { %v5232_v10 = vadd.f32 %v1431_v54, %v4262_v13 }
 0x7a7   :  { %v1435_v5 = vpop.f32.mrf.mxu0 }
 0x7a8   :  { %v1436_v60 = vadd.f32 %v3362_v2, %v1435_v5  ;;  %v1461_v11 = vsel %vm150_vm1, %v5232_v10, 0.0 }
 0x7a9   :  { %1462 = vadd.xlane.f32.xlu1 %v1461_v11  ;;  %v3600_v12 = vpop.f32.mrf.mxu0 }
 0x7aa   :  { %v5237_v8 = vadd.f32 %v1436_v60, %v4269_v18 }
 0x7ab   :  { %v1438_v16 = vpop.f32.mrf.mxu0 }
 0x7ac   :  { %v1439_v24 = vadd.f32 %v3362_v2, %v1438_v16  ;;  %v1464_v20 = vsel %vm150_vm1, %v5237_v8, 0.0 }
 0x7ad   :  { %1465 = vadd.xlane.f32.xlu0 %v1464_v20  ;;  %v3601_v19 = vpop.f32.mrf.mxu0 }
 0x7ae   :  { %v5242_v13 = vadd.f32 %v1439_v24, %v4276_v23 }
 0x7af   :  { %v1443_v25 = vpop.f32.mrf.mxu0 }
 0x7b0   :  { %v1444_v30 = vadd.f32 %v3362_v2, %v1443_v25  ;;  %v1467_v52 = vsel %vm150_vm1, %v5242_v13, 0.0 }
 0x7b1   :  { %1468 = vadd.xlane.f32.xlu0 %v1467_v52  ;;  %v3604_v48 = vpop.f32.mrf.mxu0 }
 0x7b2   :  { %v5247_v18 = vadd.f32 %v1444_v30, %v4283_v28 }
 0x7b3   :  { %v1446_v38 = vpop.f32.mrf.mxu0 }
 0x7b4   :  { %v1447_v63 = vadd.f32 %v3362_v2, %v1446_v38  ;;  %v1470_v34 = vsel %vm150_vm1, %v5247_v18, 0.0 }
 0x7b5   :  { %1471 = vadd.xlane.f32.xlu0 %v1470_v34  ;;  %v3605_v43 = vpop.f32.mrf.mxu0 }
 0x7b6   :  { %v5252_v23 = vadd.f32 %v1447_v63, %v4290_v33 }
 0x7b8   :  { %v1473_v4 = vsel %vm150_vm1, %v5252_v23, 0.0 }
 0x7b9   :  { %1474 = vadd.xlane.f32.xlu1 %v1473_v4 }
 0x82e   :  { %v1460_v37 = vpop.xlane.xlu0 %1459 }
 0x82f   :  { %v1476_v50 = vmul.f32 0.03125, %v1460_v37 }
 0x831   :  { %v5257_v3 = vsub.f32 %v5227_v58, %v1476_v50 }
 0x832   :  { %v1463_v28 = vpop.xlane.xlu1 %1462 }
 0x833   :  { %v1477_v35 = vmul.f32 0.03125, %v1463_v28  ;;  %v1488_v2 = vmul.f32 %v5257_v3, %v5257_v3 }
 0x835   :  { %v5262_v54 = vsub.f32 %v5232_v10, %v1477_v35  ;;  %v1494_v33 = vsel %vm150_vm1, %v1488_v2, 0.0  ;;  %v3771_v35 = vld [vmem:[#allocation5 + $0x8] sm:$0xff]   ;;  %v3772_v2 = vld [vmem:[#allocation5] sm:$0xff]  }
 0x836   :  { %v1466_v61 = vpop.xlane.xlu0 %1465  ;;  %1495 = vadd.xlane.f32.xlu0 %v1494_v33  ;;  %3607 = vmatpush3.bf16.msra.mxu1 %v3771_v35  ;;  %v3773_v33 = vld [vmem:[%s6142_s7 + $0x38] sm:$0xff]  }
 0x837   :  { %v1478_v36 = vmul.f32 0.03125, %v1466_v61  ;;  %v1489_v5 = vmul.f32 %v5262_v54, %v5262_v54  ;;  %3608 = vmatprep.subr.bf16.mxu1 %v6189_v47  ;;  %3623 = vmatpush3.bf16.msra.mxu0 %v3773_v33  ;;  %v3774_v61 = vld [vmem:[%s6142_s7 + $0x30] sm:$0xff]  }
 0x838   :  { %3624 = vmatprep.subr.bf16.mxu0 %v6189_v47 }
 0x839   :  { %v5268_v60 = vsub.f32 %v5237_v8, %v1478_v36  ;;  %v1497_v11 = vsel %vm150_vm1, %v1489_v5, 0.0  ;;  %v3775_v36 = vld [vmem:[%s6142_s7 + $0x28] sm:$0xff]   ;;  %v3776_v5 = vld [vmem:[%s6142_s7 + $0x20] sm:$0xff]  }
 0x83a   :  { %v1469_v12 = vpop.xlane.xlu0 %1468  ;;  %1498 = vadd.xlane.f32.xlu1 %v1497_v11  ;;  %3609 = vmatpush3.bf16.msra.mxu1 %v3772_v2  ;;  %v3777_v11 = vld [vmem:[%s6142_s7 + $0x18] sm:$0xff]  }
 0x83b   :  { %v1479_v16 = vmul.f32 0.03125, %v1469_v12  ;;  %v1490_v24 = vmul.f32 %v5268_v60, %v5268_v60  ;;  %3650 = vmatprep.subr.bf16.mxu1 %v6189_v47  ;;  %3625 = vmatpush3.bf16.msra.mxu0 %v3774_v61  ;;  %v3368_v61 = vld [vmem:[#allocation7 + $0x3] ss:$0 sm:$0xff] }
 0x83c   :  { %3626 = vmatprep.subr.bf16.mxu0 %v6189_v47 }
 0x83d   :  { %v5274_v20 = vsub.f32 %v5242_v13, %v1479_v16  ;;  %v1500_v19 = vsel %vm150_vm1, %v1490_v24, 0.0 }
 0x83e   :  { %1501 = vadd.xlane.f32.xlu0 %v1500_v19  ;;  %v1472_v25 = vpop.xlane.xlu0 %1471 }
 0x83f   :  { %v1480_v30 = vmul.f32 0.03125, %v1472_v25  ;;  %v1491_v52 = vmul.f32 %v5274_v20, %v5274_v20  ;;  %3627 = vmatpush3.bf16.msra.mxu0 %v3775_v36 }
 0x840   :  { %3628 = vmatprep.subr.bf16.mxu0 %v6189_v47 }
 0x841   :  { %v5280_v48 = vsub.f32 %v5247_v18, %v1480_v30  ;;  %v1503_v38 = vsel %vm150_vm1, %v1491_v52, 0.0 }
 0x842   :  { %1504 = vadd.xlane.f32.xlu1 %v1503_v38  ;;  %v1475_v63 = vpop.xlane.xlu1 %1474 }
 0x843   :  { %v1481_v34 = vmul.f32 0.03125, %v1475_v63  ;;  %v1492_v43 = vmul.f32 %v5280_v48, %v5280_v48  ;;  %3629 = vmatpush3.bf16.msra.mxu0 %v3776_v5 }
 0x844   :  { %3630 = vmatprep.subr.bf16.mxu0 %v6189_v47 }
 0x845   :  { %v5286_v4 = vsub.f32 %v5252_v23, %v1481_v34  ;;  %v1506_v37 = vsel %vm150_vm1, %v1492_v43, 0.0 }
 0x846   :  { %1507 = vadd.xlane.f32.xlu0 %v1506_v37 }
 0x847   :  { %v1493_v50 = vmul.f32 %v5286_v4, %v5286_v4  ;;  %3631 = vmatpush3.bf16.msra.mxu0 %v3777_v11 }
 0x848   :  { %3632 = vmatprep.subr.bf16.mxu0 %v6189_v47 }
 0x849   :  { %v1509_v28 = vsel %vm150_vm1, %v1493_v50, 0.0 }
 0x84a   :  { %1510 = vadd.xlane.f32.xlu1 %v1509_v28 }
 0x8bf   :  { %v1496_v12 = vpop.xlane.xlu0 %1495 }
 0x8c0   :  { %v1512_v16 = vmul.f32 0.03125, %v1496_v12 }
 0x8c2   :  { %v1518_v24 = vadd.f32 1e-05, %v1512_v16 }
 0x8c3   :  { %v1499_v19 = vpop.xlane.xlu1 %1498 }
 0x8c4   :  { %3857 = vrsqrt.f32 %v1518_v24  ;;  %v1513_v25 = vmul.f32 0.03125, %v1499_v19  ;;  %v3369_v19 = vld [vmem:[#allocation7 + $0x4] ss:$0 sm:$0xff] }
 0x8c6   :  { %v1519_v30 = vadd.f32 1e-05, %v1513_v25 }
 0x8c7   :  { %v1502_v52 = vpop.xlane.xlu0 %1501 }
 0x8c8   :  { %3859 = vrsqrt.f32 %v1519_v30  ;;  %v1514_v38 = vmul.f32 0.03125, %v1502_v52 }
 0x8ca   :  { %v1520_v63 = vadd.f32 1e-05, %v1514_v38 }
 0x8cb   :  { %v1505_v34 = vpop.xlane.xlu1 %1504 }
 0x8cc   :  { %3861 = vrsqrt.f32 %v1520_v63  ;;  %v1515_v43 = vmul.f32 0.03125, %v1505_v34 }
 0x8ce   :  { %v1521_v37 = vadd.f32 1e-05, %v1515_v43 }
 0x8cf   :  { %v1508_v50 = vpop.xlane.xlu0 %1507 }
 0x8d0   :  { %3863 = vrsqrt.f32 %v1521_v37  ;;  %v1516_v28 = vmul.f32 0.03125, %v1508_v50 }
 0x8d1   :  { %v3858_v35 = vpop.eup %3857 }
 0x8d2   :  { %v1530_v2 = vmul.f32 %v3858_v35, %v5257_v3  ;;  %v1522_v33 = vadd.f32 1e-05, %v1516_v28 }
 0x8d3   :  { %v1511_v36 = vpop.xlane.xlu1 %1510 }
 0x8d4   :  { %3865 = vrsqrt.f32 %v1522_v33  ;;  %v1517_v5 = vmul.f32 0.03125, %v1511_v36  ;;  %v1540_v12 = vmul.f32 %v3368_v61, %v1530_v2 }
 0x8d5   :  { %v3860_v11 = vpop.eup %3859 }
 0x8d6   :  { %v1531_v16 = vmul.f32 %v3860_v11, %v5262_v54  ;;  %v1523_v24 = vadd.f32 1e-05, %v1517_v5  ;;  %v1550_v52 = vadd.f32 %v3369_v19, %v1540_v12 }
 0x8d8   :  { %v1541_v25 = vmul.f32 %v3368_v61, %v1531_v16  ;;  %3867 = vrsqrt.f32 %v1523_v24  ;;  %v3945_v24 = vld [vmem:[%s6146_s11 + $0xf8] sm:$0xff] }
 0x8d9   :  { %v3862_v30 = vpop.eup %3861 }
 0x8da   :  { %v1551_v38 = vadd.f32 %v3369_v19, %v1541_v25  ;;  %v1532_v63 = vmul.f32 %v3862_v30, %v5268_v60 }
 0x8dc   :  { %v1556_v34 = vpack.c.bf16 %v1551_v38, %v1550_v52  ;;  %v1542_v37 = vmul.f32 %v3368_v61, %v1532_v63 }
 0x8dd   :  { %v3864_v3 = vpop.eup %3863 }
 0x8de   :  { %3611 = vmatmul.mubr.msk.bf16.vlgmr.msra.gmra.mxu1 %vm150_vm1, %v1556_v34  ;;  %v1533_v43 = vmul.f32 %v3864_v3, %v5274_v20  ;;  %v1552_v28 = vadd.f32 %v3369_v19, %v1542_v37 }
 0x8df   :  { %3614 = vmatprep.mubr.msk.bf16.mxu1 %vm4122_vm0, %v6189_v47 }
 0x8e0   :  { %v1543_v54 = vmul.f32 %v3368_v61, %v1533_v43 }
 0x8e1   :  { %v3866_v50 = vpop.eup %3865 }
 0x8e2   :  { %v1553_v35 = vadd.f32 %v3369_v19, %v1543_v54  ;;  %v1534_v2 = vmul.f32 %v3866_v50, %v5280_v48  ;;  %v3778_v48 = vld [vmem:[%s6142_s7 + $0x10] sm:$0xff]  }
 0x8e3   :  { %3633 = vmatpush3.bf16.msra.mxu0 %v3778_v48  ;;  %v3950_v48 = vld [vmem:[%s6146_s11 + $0xd0] sm:$0xff] }
 0x8e4   :  { %v1557_v33 = vpack.c.bf16 %v1553_v35, %v1552_v28  ;;  %v1544_v5 = vmul.f32 %v3368_v61, %v1534_v2  ;;  %3634 = vmatprep.subr.bf16.mxu0 %v6189_v47  ;;  %v3946_v2 = vld [vmem:[%s6146_s11 + $0xf0] sm:$0xff] }
 0x8e5   :  { %v3868_v36 = vpop.eup %3867 }
 0x8e6   :  { %3615 = vmatmul.mubr.msk.bf16.gmra.mxu1 %vm150_vm1, %v1557_v33  ;;  %v1535_v60 = vmul.f32 %v3868_v36, %v5286_v4  ;;  %v1554_v11 = vadd.f32 %v3369_v19, %v1544_v5  ;;  %v3779_v4 = vld [vmem:[%s6142_s7 + $0x8] sm:$0xff]   ;;  %v3948_v5 = vld [vmem:[%s6146_s11 + $0xe0] sm:$0xff] }
 0x8e7   :  { %3618 = vmatprep.mubr.msk.bf16.mxu1 %vm4122_vm0, %v6189_v47  ;;  %3635 = vmatpush3.bf16.msra.mxu0 %v3779_v4  ;;  %v3947_v36 = vld [vmem:[%s6146_s11 + $0xe8] sm:$0xff] }
 0x8e8   :  { %v1545_v20 = vmul.f32 %v3368_v61, %v1535_v60  ;;  %3636 = vmatprep.subr.bf16.mxu0 %v6189_v47  ;;  %v3780_v61 = vld [vmem:[%s6142_s7] sm:$0xff]  }
 0x8ea   :  { %v1555_v12 = vadd.f32 %v3369_v19, %v1545_v20  ;;  %v3370_v19 = vld [vmem:[%s6139_s4 + $0x1] ss:$0 sm:$0xff] }
 0x8eb   :  { %3637 = vmatpush3.bf16.msra.mxu0 %v3780_v61  ;;  %v3951_v61 = vld [vmem:[%s6146_s11 + $0xc8] sm:$0xff] }
 0x8ec   :  { %v1558_v16 = vpack.c.bf16 %v1555_v12, %v1554_v11  ;;  %2345 = vmatprep.subr.mxu0 %v3945_v24  ;;  %v3949_v12 = vld [vmem:[%s6146_s11 + $0xd8] sm:$0xff] }
 0x8ee   :  { %3619 = vmatmul.mubr.msk.bf16.gmra.mxu1 %vm150_vm1, %v1558_v16 }
 0x8ef   :  { %3654 = vmatprep.mubr.msk.bf16.mxu1 %vm4122_vm0, %v6189_v47 }
 0x99e   :  { %v1623_v25 = vpop.f32.mrf.mxu1 }
 0x99f   :  { %v1624_v52 = vadd.f32 %v3370_v19, %v1623_v25  ;;  %v3952_v25 = vld [vmem:[%s6146_s11 + $0xc0] sm:$0xff] }
 0x9a0   :  { %v3612_v30 = vpop.f32.mrf.mxu1 }
 0x9a1   :  { %v1646_v3 = vmax.f32 %v1624_v52, 0.0  ;;  %v3953_v52 = vld [vmem:[%s6146_s11 + $0xb8] sm:$0xff] }
 0x9a2   :  { %v1626_v38 = vpop.f32.mrf.mxu1 }
 0x9a3   :  { %v1627_v63 = vadd.f32 %v3370_v19, %v1626_v38 }
 0x9a4   :  { %v3613_v34 = vpop.f32.mrf.mxu1 }
 0x9a5   :  { %v1647_v43 = vmax.f32 %v1627_v63, 0.0  ;;  %v3954_v63 = vld [vmem:[%s6146_s11 + $0xb0] sm:$0xff] }
 0x9a6   :  { %v1631_v37 = vpop.f32.mrf.mxu1 }
 0x9a7   :  { %v1652_v54 = vpack.c.bf16 %v1647_v43, %v1646_v3  ;;  %v1632_v28 = vadd.f32 %v3370_v19, %v1631_v37  ;;  %v3955_v3 = vld [vmem:[%s6146_s11 + $0xa8] sm:$0xff]  ;;  %v3956_v37 = vld [vmem:[%s6146_s11 + $0xa0] sm:$0xff] }
 0x9a8   :  { %v3616_v50 = vpop.f32.mrf.mxu1 }
 0x9a9   :  { %3639 = vmatmul.mubr.bf16.vlgmr.msra.gmra.mxu0 %v1652_v54  ;;  %v1648_v20 = vmax.f32 %v1632_v28, 0.0  ;;  %v3957_v28 = vld [vmem:[%s6146_s11 + $0x98] sm:$0xff] }
 0x9aa   :  { %v1634_v35 = vpop.f32.mrf.mxu1  ;;  %3642 = vmatprep.mubr.msk.bf16.mxu0 %vm4122_vm0, %v6189_v47  ;;  %2346 = vmatpush1.msra.mxu0 %v3946_v2  ;;  %v3959_v2 = vld [vmem:[%s6146_s11 + $0x88] sm:$0xff] }
 0x9ab   :  { %v1635_v33 = vadd.f32 %v3370_v19, %v1634_v35  ;;  %2347 = vmatprep.subr.mxu0 %v3947_v36  ;;  %v3961_v36 = vld [vmem:[%s6146_s11 + $0x78] sm:$0xff] }
 0x9ac   :  { %v3617_v60 = vpop.f32.mrf.mxu1  ;;  %2348 = vmatpush1.msra.mxu0 %v3948_v5  ;;  %v3963_v5 = vld [vmem:[%s6146_s11 + $0x68] sm:$0xff] }
 0x9ad   :  { %v1649_v11 = vmax.f32 %v1635_v33, 0.0  ;;  %2349 = vmatprep.subr.mxu0 %v3949_v12  ;;  %v3960_v33 = vld [vmem:[%s6146_s11 + $0x80] sm:$0xff]  ;;  %v3962_v60 = vld [vmem:[%s6146_s11 + $0x70] sm:$0xff] }
 0x9ae   :  { %v1639_v16 = vpop.f32.mrf.mxu1  ;;  %2350 = vmatpush1.msra.mxu0 %v3950_v48  ;;  %v3966_v12 = vld [vmem:[%s6146_s11 + $0x50] sm:$0xff]  ;;  %v3968_v48 = vld [vmem:[%s6146_s11 + $0x40] sm:$0xff] }
 0x9af   :  { %v1653_v4 = vpack.c.bf16 %v1649_v11, %v1648_v20  ;;  %2351 = vmatprep.subr.mxu0 %v3951_v61  ;;  %v1640_v30 = vadd.f32 %v3370_v19, %v1639_v16  ;;  %v3964_v20 = vld [vmem:[%s6146_s11 + $0x60] sm:$0xff]  ;;  %v3965_v11 = vld [vmem:[%s6146_s11 + $0x58] sm:$0xff]  ;;  %v3967_v16 = vld [vmem:[%s6146_s11 + $0x48] sm:$0xff] }
 0x9b0   :  { %v3620_v24 = vpop.f32.mrf.mxu1  ;;  %2352 = vmatpush1.msra.mxu0 %v3952_v25  ;;  %v3970_v61 = vld [vmem:[%s6146_s11 + $0x30] sm:$0xff]  ;;  %v3972_v25 = vld [vmem:[%s6146_s11 + $0x20] sm:$0xff] }
 0x9b1   :  { %3643 = vmatmul.mubr.bf16.gmra.mxu0 %v1653_v4  ;;  %2353 = vmatprep.subr.mxu0 %v3953_v52  ;;  %v1650_v54 = vmax.f32 %v1640_v30, 0.0  ;;  %v3969_v4 = vld [vmem:[%s6146_s11 + $0x38] sm:$0xff]  ;;  %v3971_v24 = vld [vmem:[%s6146_s11 + $0x28] sm:$0xff]  ;;  %v3974_v52 = vld [vmem:[%s6146_s11 + $0x10] sm:$0xff] }
 0x9b2   :  { %v1642_v38 = vpop.f32.mrf.mxu1  ;;  %3646 = vmatprep.mubr.msk.bf16.mxu0 %vm4122_vm0, %v6189_v47  ;;  %2354 = vmatpush1.msra.mxu0 %v3954_v63  ;;  %v3973_v30 = vld [vmem:[%s6146_s11 + $0x18] sm:$0xff]  ;;  %v3976_v63 = vld [vmem:[%s6146_s11] sm:$0xff] }
 0x9b3   :  { %v1643_v34 = vadd.f32 %v3370_v19, %v1642_v38  ;;  %2355 = vmatprep.subr.mxu0 %v3955_v3  ;;  %v3958_v19 = vld [vmem:[%s6146_s11 + $0x90] sm:$0xff]  ;;  %v3975_v38 = vld [vmem:[%s6146_s11 + $0x8] sm:$0xff] }
 0x9b4   :  { %v3621_v43 = vpop.f32.mrf.mxu1  ;;  %2356 = vmatpush1.msra.mxu0 %v3956_v37  ;;  %v3978_v3 = vld [vmem:[%s6146_s11 + $0x170] sm:$0xff]  ;;  %v3980_v37 = vld [vmem:[%s6146_s11 + $0x160] sm:$0xff] }
 0x9b5   :  { %v1651_v50 = vmax.f32 %v1643_v34, 0.0  ;;  %2357 = vmatprep.subr.mxu0 %v3957_v28  ;;  %v3977_v34 = vld [vmem:[%s6146_s11 + $0x178] sm:$0xff]  ;;  %v3979_v43 = vld [vmem:[%s6146_s11 + $0x168] sm:$0xff] }
 0x9b6   :  { %2358 = vmatpush1.msra.mxu0 %v3958_v19  ;;  %v3983_v28 = vld [vmem:[%s6146_s11 + $0x148] sm:$0xff]  ;;  %v3984_v19 = vld [vmem:[%s6146_s11 + $0x140] sm:$0xff] }
 0x9b7   :  { %v1654_v35 = vpack.c.bf16 %v1651_v50, %v1650_v54  ;;  %2359 = vmatprep.subr.mxu0 %v3959_v2  ;;  %v3981_v54 = vld [vmem:[%s6146_s11 + $0x158] sm:$0xff]  ;;  %v3982_v50 = vld [vmem:[%s6146_s11 + $0x150] sm:$0xff] }
 0x9b8   :  { %2360 = vmatpush1.msra.mxu0 %v3960_v33  ;;  %v3986_v2 = vld [vmem:[%s6146_s11 + $0x130] sm:$0xff]  ;;  %v3987_v33 = vld [vmem:[%s6146_s11 + $0x128] sm:$0xff] }
 0x9b9   :  { %3647 = vmatmul.mubr.bf16.gmra.mxu0 %v1654_v35  ;;  %2361 = vmatprep.subr.mxu0 %v3961_v36  ;;  %v3985_v35 = vld [vmem:[%s6146_s11 + $0x138] sm:$0xff]  ;;  %v3988_v36 = vld [vmem:[%s6146_s11 + $0x120] sm:$0xff] }
 0x9ba   :  { %2362 = vmatpush1.msra.mxu0 %v3962_v60  ;;  %v3989_v60 = vld [vmem:[%s6146_s11 + $0x118] sm:$0xff] }
 0x9bb   :  { %2363 = vmatprep.subr.mxu0 %v3963_v5  ;;  %v3990_v5 = vld [vmem:[%s6146_s11 + $0x110] sm:$0xff] }
 0x9bc   :  { %2364 = vmatpush1.msra.mxu0 %v3964_v20  ;;  %v3991_v20 = vld [vmem:[%s6146_s11 + $0x108] sm:$0xff] }
 0x9bd   :  { %2365 = vmatprep.subr.mxu0 %v3965_v11  ;;  %v3992_v11 = vld [vmem:[%s6146_s11 + $0x100] sm:$0xff] }
 0x9be   :  { %2366 = vmatpush1.msra.mxu0 %v3966_v12  ;;  %v3376_v12 = vld [vmem:[#allocation7 + $0x5] ss:$0 sm:$0xff] }
 0x9bf   :  { %2367 = vmatprep.subr.mxu0 %v3967_v16 }
 0x9c0   :  { %2368 = vmatpush1.msra.mxu0 %v3968_v48 }
 0x9c1   :  { %2369 = vmatprep.subr.mxu0 %v3969_v4 }
 0x9c2   :  { %2370 = vmatpush1.msra.mxu0 %v3970_v61 }
 0x9c3   :  { %2371 = vmatprep.subr.mxu0 %v3971_v24 }
 0x9c4   :  { %2372 = vmatpush1.msra.mxu0 %v3972_v25 }
 0x9c5   :  { %2373 = vmatprep.subr.mxu0 %v3973_v30 }
 0x9c6   :  { %2374 = vmatpush1.msra.mxu0 %v3974_v52 }
 0x9c7   :  { %2375 = vmatprep.subr.mxu0 %v3975_v38 }
 0x9c8   :  { %2376 = vmatpush1.msra.mxu0 %v3976_v63 }
 0x9c9   :  { %2393 = vmatprep.subr.mxu0 %v3977_v34 }
 0x9ca   :  { %2394 = vmatpush2.msra.mxu0 %v3978_v3 }
 0x9cb   :  { %2395 = vmatprep.subr.mxu0 %v3979_v43 }
 0x9cc   :  { %2396 = vmatpush2.msra.mxu0 %v3980_v37 }
 0x9cd   :  { %2397 = vmatprep.subr.mxu0 %v3981_v54 }
 0x9ce   :  { %2398 = vmatpush2.msra.mxu0 %v3982_v50 }
 0x9cf   :  { %2399 = vmatprep.subr.mxu0 %v3983_v28 }
 0x9d0   :  { %2400 = vmatpush2.msra.mxu0 %v3984_v19 }
 0x9d1   :  { %2401 = vmatprep.subr.mxu0 %v3985_v35 }
 0x9d2   :  { %2402 = vmatpush2.msra.mxu0 %v3986_v2 }
 0x9d3   :  { %2403 = vmatprep.subr.mxu0 %v3987_v33 }
 0x9d4   :  { %2404 = vmatpush2.msra.mxu0 %v3988_v36 }
 0x9d5   :  { %2405 = vmatprep.subr.mxu0 %v3989_v60 }
 0x9d6   :  { %2406 = vmatpush2.msra.mxu0 %v3990_v5 }
 0x9d7   :  { %2407 = vmatprep.subr.mxu0 %v3991_v20 }
 0x9d8   :  { %2408 = vmatpush2.msra.mxu0 %v3992_v11 }
 0x9d9   :  { %2584 = vmatprep.subr.mxu0 %v6189_v47 }
 0xa69   :  { %v1758_v16 = vpop.f32.mrf.mxu0 }
 0xa6a   :  { %v1759_v48 = vadd.f32 %v3376_v12, %v1758_v16 }
 0xa6b   :  { %v3640_v4 = vpop.f32.mrf.mxu0 }
 0xa6c   :  { %v5493_v61 = vadd.f32 %v1759_v48, %v5227_v58 }
 0xa6d   :  { %v1761_v24 = vpop.f32.mrf.mxu0 }
 0xa6e   :  { %v1762_v25 = vadd.f32 %v3376_v12, %v1761_v24  ;;  %v1790_v30 = vsel %vm150_vm1, %v5493_v61, 0.0 }
 0xa6f   :  { %1791 = vadd.xlane.f32.xlu0 %v1790_v30  ;;  %v3641_v52 = vpop.f32.mrf.mxu0 }
 0xa70   :  { %v5498_v38 = vadd.f32 %v1762_v25, %v5232_v10 }
 0xa71   :  { %v1766_v63 = vpop.f32.mrf.mxu0 }
 0xa72   :  { %v1767_v34 = vadd.f32 %v3376_v12, %v1766_v63  ;;  %v1793_v3 = vsel %vm150_vm1, %v5498_v38, 0.0 }
 0xa73   :  { %1794 = vadd.xlane.f32.xlu1 %v1793_v3  ;;  %v3644_v43 = vpop.f32.mrf.mxu0 }
 0xa74   :  { %v5503_v58 = vadd.f32 %v1767_v34, %v5237_v8 }
 0xa75   :  { %v1769_v37 = vpop.f32.mrf.mxu0 }
 0xa76   :  { %v1770_v54 = vadd.f32 %v3376_v12, %v1769_v37  ;;  %v1796_v50 = vsel %vm150_vm1, %v5503_v58, 0.0 }
 0xa77   :  { %1797 = vadd.xlane.f32.xlu0 %v1796_v50  ;;  %v3645_v28 = vpop.f32.mrf.mxu0 }
 0xa78   :  { %v5508_v10 = vadd.f32 %v1770_v54, %v5242_v13 }
 0xa79   :  { %v1774_v19 = vpop.f32.mrf.mxu0 }
 0xa7a   :  { %v1775_v35 = vadd.f32 %v3376_v12, %v1774_v19  ;;  %v1799_v2 = vsel %vm150_vm1, %v5508_v10, 0.0 }
 0xa7b   :  { %1800 = vadd.xlane.f32.xlu1 %v1799_v2  ;;  %v3648_v33 = vpop.f32.mrf.mxu0 }
 0xa7c   :  { %v5513_v8 = vadd.f32 %v1775_v35, %v5247_v18 }
 0xa7d   :  { %v1777_v36 = vpop.f32.mrf.mxu0 }
 0xa7e   :  { %v1778_v60 = vadd.f32 %v3376_v12, %v1777_v36  ;;  %v1802_v5 = vsel %vm150_vm1, %v5513_v8, 0.0 }
 0xa7f   :  { %1803 = vadd.xlane.f32.xlu0 %v1802_v5  ;;  %v3649_v20 = vpop.f32.mrf.mxu0 }
 0xa80   :  { %v5518_v13 = vadd.f32 %v1778_v60, %v5252_v23 }
 0xa82   :  { %v1805_v11 = vsel %vm150_vm1, %v5518_v13, 0.0 }
 0xa83   :  { %1806 = vadd.xlane.f32.xlu1 %v1805_v11 }
 0xaf8   :  { %v1792_v16 = vpop.xlane.xlu0 %1791 }
 0xaf9   :  { %v1808_v48 = vmul.f32 0.03125, %v1792_v16 }
 0xafb   :  { %v1814_v4 = vsub.f32 %v5493_v61, %v1808_v48 }
 0xafc   :  { %v1795_v18 = vpop.xlane.xlu1 %1794 }
 0xafd   :  { %v1809_v24 = vmul.f32 0.03125, %v1795_v18  ;;  %v1820_v25 = vmul.f32 %v1814_v4, %v1814_v4 }
 0xaff   :  { %v5524_v12 = vsub.f32 %v5498_v38, %v1809_v24  ;;  %v1826_v30 = vsel %vm150_vm1, %v1820_v25, 0.0  ;;  %v3781_v24 = vld [vmem:[%s6138_s3 + $0x18] sm:$0xff]   ;;  %v3782_v25 = vld [vmem:[%s6138_s3 + $0x10] sm:$0xff]   ;;  %s4125_s3 = smov [#allocation10]  }
 0xb00   :  { %v1798_v52 = vpop.xlane.xlu0 %1797  ;;  %1827 = vadd.xlane.f32.xlu0 %v1826_v30  ;;  %3651 = vmatpush3.bf16.msra.mxu1 %v3781_v24  ;;  %s3293_s25 = sshll.u32 %s4125_s3, 4  ;;  %s3294_s25 = int_to_ptr.vmem [resolvable:$true] %s3293_s25 }
 0xb01   :  { %v1810_v23 = vmul.f32 0.03125, %v1798_v52  ;;  %v1821_v63 = vmul.f32 %v5524_v12, %v5524_v12  ;;  %3652 = vmatprep.subr.bf16.mxu1 %v6189_v47  ;;  %p4090_p7 = scmp.lt.s32.totalorder %s3294_s25, %s3294_s25 }
 0xb03   :  { %v5530_v34 = vsub.f32 %v5503_v58, %v1810_v23  ;;  %v1829_v3 = vsel %vm150_vm1, %v1821_v63, 0.0 }
 0xb04   :  { %v1801_v43 = vpop.xlane.xlu1 %1800  ;;  %1830 = vadd.xlane.f32.xlu1 %v1829_v3  ;;  %3653 = vmatpush3.bf16.msra.mxu1 %v3782_v25 }
 0xb05   :  { %v1811_v37 = vmul.f32 0.03125, %v1801_v43  ;;  %v1822_v54 = vmul.f32 %v5530_v34, %v5530_v34  ;;  %2166 = vmatprep.subr.mxu1 %v6189_v47 }
 0xb07   :  { %v5536_v50 = vsub.f32 %v5508_v10, %v1811_v37  ;;  %v1832_v28 = vsel %vm150_vm1, %v1822_v54, 0.0 }
 0xb08   :  { %1833 = vadd.xlane.f32.xlu0 %v1832_v28  ;;  %v1804_v19 = vpop.xlane.xlu0 %1803 }
 0xb09   :  { %v1812_v35 = vmul.f32 0.03125, %v1804_v19  ;;  %v1823_v2 = vmul.f32 %v5536_v50, %v5536_v50 }
 0xb0b   :  { %v5542_v33 = vsub.f32 %v5513_v8, %v1812_v35  ;;  %v1835_v36 = vsel %vm150_vm1, %v1823_v2, 0.0 }
 0xb0c   :  { %1836 = vadd.xlane.f32.xlu1 %v1835_v36  ;;  %v1807_v60 = vpop.xlane.xlu1 %1806 }
 0xb0d   :  { %v1813_v5 = vmul.f32 0.03125, %v1807_v60  ;;  %v1824_v20 = vmul.f32 %v5542_v33, %v5542_v33 }
 0xb0f   :  { %v1819_v11 = vsub.f32 %v5518_v13, %v1813_v5  ;;  %v1838_v16 = vsel %vm150_vm1, %v1824_v20, 0.0 }
 0xb10   :  { %1839 = vadd.xlane.f32.xlu0 %v1838_v16 }
 0xb11   :  { %v1825_v48 = vmul.f32 %v1819_v11, %v1819_v11 }
 0xb13   :  { %v1841_v18 = vsel %vm150_vm1, %v1825_v48, 0.0  ;;  %v3385_v48 = vld [vmem:[#allocation7 + $0x8] ss:$0 sm:$0xff] }
 0xb14   :  { %1842 = vadd.xlane.f32.xlu1 %v1841_v18 }
 0xb89   :  { %v1828_v30 = vpop.xlane.xlu0 %1827 }
 0xb8a   :  { %v1844_v52 = vmul.f32 0.03125, %v1828_v30 }
 0xb8c   :  { %v1850_v23 = vadd.f32 1e-05, %v1844_v52 }
 0xb8d   :  { %v1831_v63 = vpop.xlane.xlu1 %1830 }
 0xb8e   :  { %3869 = vrsqrt.f32 %v1850_v23  ;;  %v1845_v3 = vmul.f32 0.03125, %v1831_v63  ;;  %v3386_v63 = vld [vmem:[#allocation7 + $0x9] ss:$0 sm:$0xff] }
 0xb90   :  { %v1851_v43 = vadd.f32 1e-05, %v1845_v3 }
 0xb91   :  { %v1834_v37 = vpop.xlane.xlu0 %1833 }
 0xb92   :  { %3871 = vrsqrt.f32 %v1851_v43  ;;  %v1846_v54 = vmul.f32 0.03125, %v1834_v37 }
 0xb94   :  { %v1852_v28 = vadd.f32 1e-05, %v1846_v54 }
 0xb95   :  { %v1837_v19 = vpop.xlane.xlu1 %1836 }
 0xb96   :  { %3873 = vrsqrt.f32 %v1852_v28  ;;  %v1847_v35 = vmul.f32 0.03125, %v1837_v19 }
 0xb98   :  { %v1853_v2 = vadd.f32 1e-05, %v1847_v35 }
 0xb99   :  { %v1840_v36 = vpop.xlane.xlu0 %1839 }
 0xb9a   :  { %3875 = vrsqrt.f32 %v1853_v2  ;;  %v1848_v60 = vmul.f32 0.03125, %v1840_v36 }
 0xb9b   :  { %v3870_v5 = vpop.eup %3869 }
 0xb9c   :  { %v1862_v20 = vmul.f32 %v3870_v5, %v1814_v4  ;;  %v1854_v16 = vadd.f32 1e-05, %v1848_v60 }
 0xb9d   :  { %v1843_v18 = vpop.xlane.xlu1 %1842 }
 0xb9e   :  { %3877 = vrsqrt.f32 %v1854_v16  ;;  %v1849_v24 = vmul.f32 0.03125, %v1843_v18  ;;  %v1872_v30 = vmul.f32 %v3385_v48, %v1862_v20 }
 0xb9f   :  { %v3872_v25 = vpop.eup %3871 }
 0xba0   :  { %v1863_v52 = vmul.f32 %v3872_v25, %v5524_v12  ;;  %v1855_v23 = vadd.f32 1e-05, %v1849_v24  ;;  %v1882_v37 = vadd.f32 %v3386_v63, %v1872_v30 }
 0xba2   :  { %v1873_v3 = vmul.f32 %v3385_v48, %v1863_v52  ;;  %3879 = vrsqrt.f32 %v1855_v23 }
 0xba3   :  { %v3874_v43 = vpop.eup %3873 }
 0xba4   :  { %v1883_v54 = vadd.f32 %v3386_v63, %v1873_v3  ;;  %v1864_v28 = vmul.f32 %v3874_v43, %v5530_v34 }
 0xba6   :  { %v1888_v19 = vpack.c.bf16 %v1883_v54, %v1882_v37  ;;  %v1874_v2 = vmul.f32 %v3385_v48, %v1864_v28 }
 0xba7   :  { %v3876_v4 = vpop.eup %3875 }
 0xba8   :  { %3655 = vmatmul.mubr.msk.bf16.vlgmr.msra.gmra.mxu1 %vm150_vm1, %v1888_v19  ;;  %v1865_v35 = vmul.f32 %v3876_v4, %v5536_v50  ;;  %v1884_v60 = vadd.f32 %v3386_v63, %v1874_v2 }
 0xba9   :  { %3658 = vmatprep.mubr.msk.bf16.mxu1 %vm4122_vm0, %v6189_v47 }
 0xbaa   :  { %v1875_v12 = vmul.f32 %v3385_v48, %v1865_v35 }
 0xbab   :  { %v3878_v36 = vpop.eup %3877 }
 0xbac   :  { %v1885_v5 = vadd.f32 %v3386_v63, %v1875_v12  ;;  %v1866_v20 = vmul.f32 %v3878_v36, %v5542_v33 }
 0xbae   :  { %v1889_v16 = vpack.c.bf16 %v1885_v5, %v1884_v60  ;;  %v1876_v24 = vmul.f32 %v3385_v48, %v1866_v20 }
 0xbaf   :  { %v3880_v18 = vpop.eup %3879 }
 0xbb0   :  { %3659 = vmatmul.mubr.msk.bf16.gmra.mxu1 %vm150_vm1, %v1889_v16  ;;  %v1867_v34 = vmul.f32 %v3880_v18, %v1819_v11  ;;  %v1886_v25 = vadd.f32 %v3386_v63, %v1876_v24  ;;  %v3392_v11 = vld [vmem:[%s6139_s4 + $0x2] ss:$0 sm:$0xff]  ;;  %v6190_v24 = vld [vmem:[#allocation15_spill] sm:$0xff] }
 0xbb1   :  { %3662 = vmatprep.mubr.msk.bf16.mxu1 %vm4122_vm0, %v6189_v47 }
 0xbb2   :  { %v1877_v50 = vmul.f32 %v3385_v48, %v1867_v34 }
 0xbb4   :  { %v1887_v30 = vadd.f32 %v3386_v63, %v1877_v50 }
 0xbb6   :  { %v1890_v52 = vpack.c.bf16 %v1887_v30, %v1886_v25  ;;  %v6192_v30 = vld [vmem:[#allocation16_spill] sm:$0xff] }
 0xbb8   :  { %3663 = vmatmul.mubr.msk.bf16.gmra.mxu1 %vm150_vm1, %v1890_v52  ;;  %v6193_v52 = vld [vmem:[#allocation28_spill] sm:$0xff] }
 0xbb9   :  { %2230 = vmatprep.mubr.f32.mxu1 %v6189_v47 }
 0xc68   :  { %v1957_v23 = vpop.f32.mrf.mxu1 }
 0xc69   :  { %v5582_v2 = vadd.f32 %v3392_v11, %v1957_v23  ;;  %v6194_v23 = vld [vmem:[#allocation17_spill] sm:$0xff] }
 0xc6a   :  { %v3656_v3 = vpop.f32.mrf.mxu1 }
 0xc6b   :  { %v1992_v20 = vmul.f32 %v5582_v2, %v4522_v57  ;;  %v6191_v57 = vld [vmem:[#allocation26_spill] sm:$0xff] }
 0xc6c   :  { %v1960_v33 = vpop.f32.mrf.mxu1 }
 0xc6d   :  { %v5575_v48 = vadd.f32 %v3392_v11, %v1960_v33  ;;  %v6195_v33 = vld [vmem:[#allocation30_spill] sm:$0xff] }
 0xc6e   :  { %v3657_v43 = vpop.f32.mrf.mxu1 }
 0xc6f   :  { %v1993_v12 = vmul.f32 %v5575_v48, %v4520_v56 }
 0xc70   :  { %v1965_v37 = vpop.f32.mrf.mxu1 }
 0xc71   :  { %v5573_v54 = vadd.f32 %v3392_v11, %v1965_v37 }
 0xc72   :  { %v3660_v28 = vpop.f32.mrf.mxu1 }
 0xc73   :  { %v1994_v63 = vmul.f32 %v5573_v54, %v4518_v55  ;;  %v1988_v50 = vmul.f32 %v5573_v54, %v6190_v24  ;;  %v6197_v28 = vld [vmem:[#allocation31_spill] sm:$0xff] }
 0xc74   :  { %v1968_v19 = vpop.f32.mrf.mxu1 }
 0xc75   :  { %v5579_v4 = vadd.f32 %v3392_v11, %v1968_v19  ;;  %2080 = vrot.lane.b32.xlu1 %v1994_v63, %s4124_s20  ;;  %v6198_v19 = vld [vmem:[#allocation19_spill] sm:$0xff] }
 0xc76   :  { %v3661_v35 = vpop.f32.mrf.mxu1 }
 0xc77   :  { %v1995_v36 = vmul.f32 %v5579_v4, %v4552_v45  ;;  %v1989_v25 = vmul.f32 %v5579_v4, %v6191_v57  ;;  %v1983_v63 = vmul.f32 %v5579_v4, %v6197_v28  ;;  %v1980_v35 = vmul.f32 %v5582_v2, %v6198_v19 }
 0xc78   :  { %v1973_v60 = vpop.f32.mrf.mxu1 }
 0xc79   :  { %2078 = vrot.lane.b32.xlu1 %v1993_v12, %s4124_s20  ;;  %2082 = vrot.lane.b32.xlu0 %v1995_v36, %s4124_s20  ;;  %v5590_v5 = vadd.f32 %v3392_v11, %v1973_v60  ;;  %v6199_v12 = vld [vmem:[#allocation32_spill] sm:$0xff]  ;;  %v6200_v60 = vld [vmem:[#allocation21_spill] sm:$0xff] }
 0xc7a   :  { %v3664_v55 = vpop.f32.mrf.mxu1  ;;  %v1981_v36 = vmul.f32 %v5575_v48, %v6199_v12 }
 0xc7b   :  { %v1990_v45 = vmul.f32 %v5590_v5, %v4524_v59  ;;  %v1986_v59 = vmul.f32 %v5582_v2, %v6192_v30  ;;  %v1984_v3 = vmul.f32 %v5590_v5, %v6194_v23  ;;  %v2002_v55 = vmul.f32 %v5590_v5, %v6200_v60 }
 0xc7c   :  { %v1976_v16 = vpop.f32.mrf.mxu1 }
 0xc7d   :  { %v5594_v18 = vadd.f32 %v3392_v11, %v1976_v16  ;;  %2076 = vrot.lane.b32.xlu1 %v1992_v20, %s4124_s20  ;;  %v6196_v11 = vld [vmem:[#allocation18_spill] sm:$0xff]  ;;  %v6201_v20 = vld [vmem:[#allocation20_spill] sm:$0xff] }
 0xc7e   :  { %v3665_v56 = vpop.f32.mrf.mxu1  ;;  %v1982_v37 = vmul.f32 %v5573_v54, %v6196_v11 }
 0xc7f   :  { %v1991_v34 = vmul.f32 %v5594_v18, %v4579_v41  ;;  %v1987_v41 = vmul.f32 %v5575_v48, %v6193_v52  ;;  %v1985_v43 = vmul.f32 %v5594_v18, %v6195_v33  ;;  %v2003_v16 = vmul.f32 %v5594_v18, %v6201_v20  ;;  %v6202_v56 = vld [vmem:[#allocation23_spill] sm:$0xff] }
 0xc81   :  { %2072 = vrot.lane.b32.xlu1 %v1990_v45, %s4124_s20  ;;  %2074 = vrot.lane.b32.xlu0 %v1991_v34, %s4124_s20  ;;  %v2000_v45 = vmul.f32 %v5573_v54, %v6202_v56  ;;  %v6203_v34 = vld [vmem:[#allocation22_spill] sm:$0xff] }
 0xc82   :  { %v2001_v24 = vmul.f32 %v5579_v4, %v6203_v34 }
 0xc85   :  { %2068 = vrot.lane.b32.xlu1 %v1988_v50, %s4124_s20  ;;  %2070 = vrot.lane.b32.xlu0 %v1989_v25, %s4124_s20  ;;  %v6204_v50 = vld [vmem:[#allocation25_spill] sm:$0xff]  ;;  %v6205_v25 = vld [vmem:[#allocation24_spill] sm:$0xff] }
 0xc86   :  { %v1998_v57 = vmul.f32 %v5582_v2, %v6204_v50  ;;  %v1999_v30 = vmul.f32 %v5575_v48, %v6205_v25 }
 0xc89   :  { %2064 = vrot.lane.b32.xlu1 %v1986_v59, %s4124_s20  ;;  %2066 = vrot.lane.b32.xlu0 %v1987_v41, %s4124_s20  ;;  %v6206_v59 = vld [vmem:[#allocation29_spill] sm:$0xff]  ;;  %v6207_v41 = vld [vmem:[#allocation27_spill] sm:$0xff] }
 0xc8a   :  { %v1996_v52 = vmul.f32 %v5590_v5, %v6206_v59  ;;  %v1997_v23 = vmul.f32 %v5594_v18, %v6207_v41 }
 0xc8d   :  { %2060 = vrot.lane.b32.xlu1 %v1984_v3, %s4124_s20  ;;  %2062 = vrot.lane.b32.xlu0 %v1985_v43, %s4124_s20 }
 0xc91   :  { %2056 = vrot.lane.b32.xlu1 %v1982_v37, %s4124_s20  ;;  %2058 = vrot.lane.b32.xlu0 %v1983_v63, %s4124_s20 }
 0xc95   :  { %2052 = vrot.lane.b32.xlu1 %v1980_v35, %s4124_s20  ;;  %2054 = vrot.lane.b32.xlu0 %v1981_v36, %s4124_s20 }
 0xc99   :  { %2096 = vrot.lane.b32.xlu1 %v2002_v55, %s4124_s20  ;;  %2098 = vrot.lane.b32.xlu0 %v2003_v16, %s4124_s20 }
 0xc9d   :  { %2092 = vrot.lane.b32.xlu1 %v2000_v45, %s4124_s20  ;;  %2094 = vrot.lane.b32.xlu0 %v2001_v24, %s4124_s20 }
 0xca1   :  { %2088 = vrot.lane.b32.xlu1 %v1998_v57, %s4124_s20  ;;  %2090 = vrot.lane.b32.xlu0 %v1999_v30, %s4124_s20 }
 0xca5   :  { %2084 = vrot.lane.b32.xlu1 %v1996_v52, %s4124_s20  ;;  %2086 = vrot.lane.b32.xlu0 %v1997_v23, %s4124_s20  ;;  %v3993_v23 = vld [vmem:[%s6144_s9 + $0x8] sm:$0xff]  ;;  %s4085_s20 = scalar_lea.vmem %s3294_s25, 32 }
 0xca6   :  { %p4086_p6 = scmp.ne.s32.totalorder %s3294_s25, %s4085_s20  ;;  %p4091_p8 = scmp.lt.s32.totalorder %s4085_s20, %s4085_s20 }
 0xca8   :  { %p4092_p9 = por %p4091_p8, %p4090_p7 }
 0xcaa   :  { %p4093_p10 = pnand %p4092_p9, %p4086_p6 }
 0xce7   :  { %v2081_v3 = vpop.permute.xlu1 %2080 }
 0xceb   :  { %v2083_v33 = vpop.permute.xlu0 %2082  ;;  %v2079_v43 = vpop.permute.xlu1 %2078 }
 0xcec   :  { %3398 = vmatpush1.xpose.msk.msra.mxu1 %vm150_vm1, %v2083_v33  ;;  %v3994_v33 = vld [vmem:[%s6144_s9] sm:$0xff] }
 0xced   :  { %2168 = vmatprep.subr.mxu1 %v6189_v47 }
 0xcef   :  { %v2077_v11 = vpop.permute.xlu1 %2076 }
 0xcf0   :  { %3399 = vmatpush1.xpose.msk.msra.mxu1 %vm150_vm1, %v2081_v3 }
 0xcf1   :  { %2170 = vmatprep.subr.mxu1 %v6189_v47 }
 0xcf3   :  { %v2075_v37 = vpop.permute.xlu0 %2074  ;;  %v2073_v28 = vpop.permute.xlu1 %2072 }
 0xcf4   :  { %3400 = vmatpush1.xpose.msk.msra.mxu1 %vm150_vm1, %v2079_v43 }
 0xcf5   :  { %2172 = vmatprep.subr.mxu1 %v6189_v47 }
 0xcf7   :  { %v2071_v63 = vpop.permute.xlu0 %2070  ;;  %v2069_v19 = vpop.permute.xlu1 %2068 }
 0xcf8   :  { %3401 = vmatpush1.xpose.msk.msra.mxu1 %vm150_vm1, %v2077_v11 }
 0xcf9   :  { %2174 = vmatprep.subr.mxu1 %v6189_v47 }
 0xcfb   :  { %v2067_v35 = vpop.permute.xlu0 %2066  ;;  %v2065_v12 = vpop.permute.xlu1 %2064 }
 0xcfc   :  { %3402 = vmatpush1.xpose.msk.msra.mxu1 %vm150_vm1, %v2075_v37 }
 0xcfd   :  { %2176 = vmatprep.subr.mxu1 %v6189_v47 }
 0xcff   :  { %v2063_v36 = vpop.permute.xlu0 %2062  ;;  %v2061_v60 = vpop.permute.xlu1 %2060 }
 0xd00   :  { %3403 = vmatpush1.xpose.msk.msra.mxu1 %vm150_vm1, %v2073_v28 }
 0xd01   :  { %2178 = vmatprep.subr.mxu1 %v6189_v47 }
 0xd03   :  { %v2059_v55 = vpop.permute.xlu0 %2058  ;;  %v2057_v20 = vpop.permute.xlu1 %2056 }
 0xd04   :  { %3404 = vmatpush1.xpose.msk.msra.mxu1 %vm150_vm1, %v2071_v63 }
 0xd05   :  { %2180 = vmatprep.subr.mxu1 %v6189_v47 }
 0xd07   :  { %v2055_v16 = vpop.permute.xlu0 %2054  ;;  %v2053_v56 = vpop.permute.xlu1 %2052 }
 0xd08   :  { %3405 = vmatpush1.xpose.msk.msra.mxu1 %vm150_vm1, %v2069_v19  ;;  %v3995_v19 = vld [vmem:[%s6144_s9 + $0x18] sm:$0xff] }
 0xd09   :  { %2182 = vmatprep.subr.mxu1 %v6189_v47 }
 0xd0b   :  { %v2099_v45 = vpop.permute.xlu0 %2098  ;;  %v2097_v34 = vpop.permute.xlu1 %2096 }
 0xd0c   :  { %3406 = vmatpush1.xpose.msk.msra.mxu1 %vm150_vm1, %v2067_v35 }
 0xd0d   :  { %2184 = vmatprep.subr.mxu1 %v6189_v47 }
 0xd0f   :  { %v2095_v24 = vpop.permute.xlu0 %2094  ;;  %v2093_v50 = vpop.permute.xlu1 %2092 }
 0xd10   :  { %3407 = vmatpush1.xpose.msk.msra.mxu1 %vm150_vm1, %v2065_v12  ;;  %v3996_v12 = vld [vmem:[%s6144_s9 + $0x10] sm:$0xff] }
 0xd11   :  { %2186 = vmatprep.subr.mxu1 %v6189_v47 }
 0xd13   :  { %v2091_v57 = vpop.permute.xlu0 %2090  ;;  %v2089_v25 = vpop.permute.xlu1 %2088 }
 0xd14   :  { %3408 = vmatpush1.xpose.msk.msra.mxu1 %vm150_vm1, %v2063_v36 }
 0xd15   :  { %2188 = vmatprep.subr.mxu1 %v6189_v47 }
 0xd17   :  { %v2087_v30 = vpop.permute.xlu0 %2086  ;;  %v2085_v59 = vpop.permute.xlu1 %2084 }
 0xd18   :  { %3409 = vmatpush1.xpose.msk.msra.mxu1 %vm150_vm1, %v2061_v60 }
 0xd19   :  { %2190 = vmatprep.subr.mxu1 %v6189_v47 }
 0xd1c   :  { %3410 = vmatpush1.xpose.msk.msra.mxu1 %vm150_vm1, %v2059_v55 }
 0xd1d   :  { %2192 = vmatprep.subr.mxu1 %v6189_v47 }
 0xd20   :  { %3411 = vmatpush1.xpose.msk.msra.mxu1 %vm150_vm1, %v2057_v20 }
 0xd21   :  { %2194 = vmatprep.subr.mxu1 %v6189_v47 }
 0xd24   :  { %3412 = vmatpush1.xpose.msk.msra.mxu1 %vm150_vm1, %v2055_v16 }
 0xd25   :  { %2196 = vmatprep.subr.mxu1 %v6189_v47 }
 0xd28   :  { %3413 = vmatpush1.xpose.msk.msra.mxu1 %vm150_vm1, %v2053_v56  ;;  %v3997_v56 = vld [vmem:[%s6144_s9 + $0x28] sm:$0xff] }
 0xd29   :  { %2214 = vmatprep.subr.mxu1 %v6189_v47 }
 0xd2c   :  { %3414 = vmatpush2.xpose.msk.msra.mxu1 %vm150_vm1, %v2099_v45 }
 0xd2d   :  { %2216 = vmatprep.subr.mxu1 %v6189_v47 }
 0xd30   :  { %3415 = vmatpush2.xpose.msk.msra.mxu1 %vm150_vm1, %v2097_v34  ;;  %v3998_v34 = vld [vmem:[%s6144_s9 + $0x20] sm:$0xff] }
 0xd31   :  { %2218 = vmatprep.subr.mxu1 %v6189_v47 }
 0xd34   :  { %3416 = vmatpush2.xpose.msk.msra.mxu1 %vm150_vm1, %v2095_v24 }
 0xd35   :  { %2220 = vmatprep.subr.mxu1 %v6189_v47 }
 0xd38   :  { %3417 = vmatpush2.xpose.msk.msra.mxu1 %vm150_vm1, %v2093_v50 }
 0xd39   :  { %2222 = vmatprep.subr.mxu1 %v6189_v47 }
 0xd3c   :  { %3418 = vmatpush2.xpose.msk.msra.mxu1 %vm150_vm1, %v2091_v57 }
 0xd3d   :  { %2224 = vmatprep.subr.mxu1 %v6189_v47 }
 0xd40   :  { %3419 = vmatpush2.xpose.msk.msra.mxu1 %vm150_vm1, %v2089_v25 }
 0xd41   :  { %2226 = vmatprep.subr.mxu1 %v6189_v47 }
 0xd44   :  { %3420 = vmatpush2.xpose.msk.msra.mxu1 %vm150_vm1, %v2087_v30 }
 0xd45   :  { %2228 = vmatprep.subr.mxu1 %v6189_v47 }
 0xd48   :  { %3421 = vmatpush2.xpose.msk.msra.mxu1 %vm150_vm1, %v2085_v59  ;;  %v3999_v59 = vld [vmem:[%s6144_s9 + $0x38] sm:$0xff] }
 0xd49   :  { %3666 = vmatprep.subr.bf16.mxu1 %v6189_v47 }
 0xd4b   :  { %3422 = vmatmul.mubr.msk.f32.vlgmr.msra.gmra.mxu1 %vm150_vm1, %v5582_v2 }
 0xd4c   :  { %2236 = vmatprep.mubr.f32.mxu1 %v6189_v47 }
 0xd4f   :  { %3423 = vmatmul.mubr.msk.f32.gmra.mxu1 %vm150_vm1, %v5575_v48 }
 0xd50   :  { %2242 = vmatprep.mubr.f32.mxu1 %v6189_v47 }
 0xd53   :  { %3424 = vmatmul.mubr.msk.f32.gmra.mxu1 %vm150_vm1, %v5573_v54 }
 0xd54   :  { %2248 = vmatprep.mubr.f32.mxu1 %v6189_v47 }
 0xd57   :  { %3425 = vmatmul.mubr.msk.f32.gmra.mxu1 %vm150_vm1, %v5579_v4 }
 0xd58   :  { %2254 = vmatprep.mubr.f32.mxu1 %v6189_v47 }
 0xd5b   :  { %3426 = vmatmul.mubr.msk.f32.gmra.mxu1 %vm150_vm1, %v5590_v5 }
 0xd5c   :  { %2260 = vmatprep.mubr.f32.mxu1 %v6189_v47 }
 0xd5f   :  { %3427 = vmatmul.mubr.msk.f32.gmra.mxu1 %vm150_vm1, %v5594_v18 }
 0xd60   :  { %3670 = vmatprep.mubr.msk.bf16.mxu1 %vm4122_vm0, %v6189_v47 }
 0xe0b   :  { %v2232_v52 = vpop.f32.mrf.mxu1 }
 0xe0c   :  { %v5732_v43 = vadd.f32 %v3994_v33, %v2232_v52 }
 0xe0d   :  { %v2234_v41 = vpop.f32.mrf.mxu1 }
 0xe0e   :  { %v5727_v3 = vadd.f32 %v3993_v23, %v2234_v41  ;;  %v4000_v41 = vld [vmem:[%s6144_s9 + $0x30] sm:$0xff] }
 0xe0f   :  { %v2238_v11 = vpop.f32.mrf.mxu1 }
 0xe10   :  { %v2267_v37 = vsel %vm899_vm2, %v5727_v3, -inf  ;;  %v5745_v36 = vadd.f32 %v3996_v12, %v2238_v11  ;;  %v4002_v12 = vld [vmem:[%s6144_s9 + $0x40] sm:$0xff] }
 0xe11   :  { %v2268_v28 = vmax.f32 %v5732_v43, %v2267_v37  ;;  %v2240_v63 = vpop.f32.mrf.mxu1 }
 0xe12   :  { %v5740_v35 = vadd.f32 %v3995_v19, %v2240_v63  ;;  %v4001_v63 = vld [vmem:[%s6144_s9 + $0x48] sm:$0xff] }
 0xe13   :  { %v2244_v60 = vpop.f32.mrf.mxu1  ;;  %2269 = vmax.xlane.f32.xlu0 %v2268_v28 }
 0xe14   :  { %v2271_v55 = vsel %vm899_vm2, %v5740_v35, -inf  ;;  %v5758_v24 = vadd.f32 %v3998_v34, %v2244_v60  ;;  %v4003_v34 = vld [vmem:[%s6144_s9 + $0x58] sm:$0xff] }
 0xe15   :  { %v2272_v20 = vmax.f32 %v5745_v36, %v2271_v55  ;;  %v2246_v16 = vpop.f32.mrf.mxu1 }
 0xe16   :  { %v5753_v45 = vadd.f32 %v3997_v56, %v2246_v16 }
 0xe17   :  { %v2250_v50 = vpop.f32.mrf.mxu1  ;;  %2273 = vmax.xlane.f32.xlu1 %v2272_v20 }
 0xe18   :  { %v2275_v57 = vsel %vm899_vm2, %v5753_v45, -inf  ;;  %v5771_v23 = vadd.f32 %v4000_v41, %v2250_v50  ;;  %v2018_v41 = vmul.f32 %v5573_v54, %v5021_v40  ;;  %v2016_v40 = vmul.f32 %v5582_v2, %v5049_v6 }
 0xe19   :  { %v2276_v25 = vmax.f32 %v5758_v24, %v2275_v57  ;;  %v2252_v30 = vpop.f32.mrf.mxu1  ;;  %v4004_v57 = vld [vmem:[%s6144_s9 + $0x50] sm:$0xff]  ;;  %v2012_v6 = vmul.f32 %v5573_v54, %v5083_v21  ;;  %v2008_v21 = vmul.f32 %v5590_v5, %v5104_v31  ;;  %v2004_v31 = vmul.f32 %v5582_v2, %v5124_v62 }
 0xe1a   :  { %v5766_v52 = vadd.f32 %v3999_v59, %v2252_v30  ;;  %v2024_v62 = vmul.f32 %v5573_v54, %v5142_v17 }
 0xe1b   :  { %v2256_v33 = vpop.f32.mrf.mxu1  ;;  %2277 = vmax.xlane.f32.xlu0 %v2276_v25 }
 0xe1c   :  { %v2279_v11 = vsel %vm899_vm2, %v5766_v52, -inf  ;;  %v5784_v60 = vadd.f32 %v4002_v12, %v2256_v33  ;;  %v2019_v33 = vmul.f32 %v5579_v4, %v5007_v39  ;;  %v2013_v39 = vmul.f32 %v5579_v4, %v5037_v0 }
 0xe1d   :  { %v2280_v37 = vmax.f32 %v5771_v23, %v2279_v11  ;;  %v2258_v28 = vpop.f32.mrf.mxu1  ;;  %v2017_v11 = vmul.f32 %v5575_v48, %v5035_v1  ;;  %v2014_v1 = vmul.f32 %v5590_v5, %v5066_v14  ;;  %v2009_v0 = vmul.f32 %v5594_v18, %v5068_v15 }
 0xe1e   :  { %v5779_v19 = vadd.f32 %v4001_v63, %v2258_v28  ;;  %v2010_v14 = vmul.f32 %v5582_v2, %v5094_v26  ;;  %v2005_v15 = vmul.f32 %v5575_v48, %v5096_v27  ;;  %v2006_v26 = vmul.f32 %v5573_v54, %v5114_v42 }
 0xe1f   :  { %v2262_v55 = vpop.f32.mrf.mxu1  ;;  %2281 = vmax.xlane.f32.xlu0 %v2280_v37  ;;  %v2015_v37 = vmul.f32 %v5594_v18, %v5023_v49  ;;  %v2011_v49 = vmul.f32 %v5575_v48, %v5051_v7  ;;  %v2007_v7 = vmul.f32 %v5579_v4, %v5085_v22  ;;  %v2027_v22 = vmul.f32 %v5594_v18, %v5106_v32 }
 0xe20   :  { %v2283_v20 = vsel %vm899_vm2, %v5779_v19, -inf  ;;  %v5797_v25 = vadd.f32 %v4004_v57, %v2262_v55  ;;  %v2025_v27 = vmul.f32 %v5579_v4, %v5120_v51  ;;  %v2026_v42 = vmul.f32 %v5590_v5, %v5134_v9 }
 0xe21   :  { %v2284_v16 = vmax.f32 %v5784_v60, %v2283_v20  ;;  %v2264_v56 = vpop.f32.mrf.mxu1  ;;  %v2023_v32 = vmul.f32 %v5575_v48, %v5132_v46  ;;  %v2021_v51 = vmul.f32 %v5594_v18, %v5148_v29  ;;  %v2022_v9 = vmul.f32 %v5582_v2, %v5152_v44 }
 0xe22   :  { %v5792_v50 = vadd.f32 %v4003_v34, %v2264_v56  ;;  %v2020_v46 = vmul.f32 %v5590_v5, %v5160_v53 }
 0xe23   :  { %2285 = vmax.xlane.f32.xlu0 %v2284_v16 }
 0xe24   :  { %v2287_v30 = vsel %vm899_vm2, %v5792_v50, -inf }
 0xe25   :  { %v2288_v59 = vmax.f32 %v5797_v25, %v2287_v30 }
 0xe27   :  { %2289 = vmax.xlane.f32.xlu1 %v2288_v59 }
 0xe38   :  { %2522 = vrot.lane.b32.xlu1 %v2018_v41, %s4115_s23 }
 0xe39   :  { %2524 = vrot.lane.b32.xlu0 %v2019_v33, %s4115_s23 }
 0xe3c   :  { %2520 = vrot.lane.b32.xlu1 %v2017_v11, %s4115_s23 }
 0xe3d   :  { %2516 = vrot.lane.b32.xlu0 %v2015_v37, %s4115_s23 }
 0xe40   :  { %2518 = vrot.lane.b32.xlu1 %v2016_v40, %s4115_s23 }
 0xe41   :  { %2512 = vrot.lane.b32.xlu0 %v2013_v39, %s4115_s23 }
 0xe44   :  { %2514 = vrot.lane.b32.xlu1 %v2014_v1, %s4115_s23 }
 0xe45   :  { %2508 = vrot.lane.b32.xlu0 %v2011_v49, %s4115_s23 }
 0xe48   :  { %2510 = vrot.lane.b32.xlu1 %v2012_v6, %s4115_s23 }
 0xe49   :  { %2504 = vrot.lane.b32.xlu0 %v2009_v0, %s4115_s23 }
 0xe4c   :  { %2506 = vrot.lane.b32.xlu1 %v2010_v14, %s4115_s23 }
 0xe4d   :  { %2500 = vrot.lane.b32.xlu0 %v2007_v7, %s4115_s23 }
 0xe50   :  { %2502 = vrot.lane.b32.xlu1 %v2008_v21, %s4115_s23 }
 0xe51   :  { %2496 = vrot.lane.b32.xlu0 %v2005_v15, %s4115_s23 }
 0xe54   :  { %2498 = vrot.lane.b32.xlu1 %v2006_v26, %s4115_s23 }
 0xe55   :  { %2540 = vrot.lane.b32.xlu0 %v2027_v22, %s4115_s23 }
 0xe58   :  { %2494 = vrot.lane.b32.xlu1 %v2004_v31, %s4115_s23 }
 0xe59   :  { %2536 = vrot.lane.b32.xlu0 %v2025_v27, %s4115_s23 }
 0xe5c   :  { %2538 = vrot.lane.b32.xlu1 %v2026_v42, %s4115_s23 }
 0xe5d   :  { %2532 = vrot.lane.b32.xlu0 %v2023_v32, %s4115_s23 }
 0xe60   :  { %2534 = vrot.lane.b32.xlu1 %v2024_v62, %s4115_s23 }
 0xe61   :  { %2528 = vrot.lane.b32.xlu0 %v2021_v51, %s4115_s23 }
 0xe64   :  { %2530 = vrot.lane.b32.xlu1 %v2022_v9, %s4115_s23 }
 0xe68   :  { %2526 = vrot.lane.b32.xlu1 %v2020_v46, %s4115_s23 }
 0xe9c   :  { %v2270_v48 = vpop.xlane.xlu0 %2269 }
 0xe9d   :  { %v2291_v17 = vsub.f32 %v5732_v43, %v2270_v48  ;;  %v2292_v54 = vsub.f32 %v5727_v3, %v2270_v48 }
 0xe9f   :  { %v2303_v29 = vmul.f32 1.442695, %v2291_v17  ;;  %v2305_v4 = vmul.f32 1.442695, %v2292_v54 }
 0xea0   :  { %v2274_v18 = vpop.xlane.xlu1 %2273 }
 0xea1   :  { %3881 = vpow2.f32 %v2303_v29  ;;  %v2293_v28 = vsub.f32 %v5745_v36, %v2274_v18  ;;  %v2294_v44 = vsub.f32 %v5740_v35, %v2274_v18 }
 0xea2   :  { %3883 = vpow2.f32 %v2305_v4 }
 0xea3   :  { %v2307_v2 = vmul.f32 1.442695, %v2293_v28  ;;  %v2309_v63 = vmul.f32 1.442695, %v2294_v44 }
 0xea4   :  { %v2278_v12 = vpop.xlane.xlu0 %2277 }
 0xea5   :  { %3885 = vpow2.f32 %v2307_v2  ;;  %v2295_v53 = vsub.f32 %v5758_v24, %v2278_v12  ;;  %v2296_v5 = vsub.f32 %v5753_v45, %v2278_v12 }
 0xea6   :  { %3887 = vpow2.f32 %v2309_v63  ;;  %v3783_v63 = vld [vmem:[%s6140_s5 + $0x18] sm:$0xff]  }
 0xea7   :  { %v2311_v43 = vmul.f32 1.442695, %v2295_v53  ;;  %v2313_v3 = vmul.f32 1.442695, %v2296_v5  ;;  %3667 = vmatpush3.bf16.msra.mxu1 %v3783_v63 }
 0xea8   :  { %v2282_v55 = vpop.xlane.xlu0 %2281  ;;  %3668 = vmatprep.subr.bf16.mxu1 %v6189_v47 }
 0xea9   :  { %3889 = vpow2.f32 %v2311_v43  ;;  %v2297_v20 = vsub.f32 %v5771_v23, %v2282_v55  ;;  %v2298_v36 = vsub.f32 %v5766_v52, %v2282_v55 }
 0xeaa   :  { %3891 = vpow2.f32 %v2313_v3 }
 0xeab   :  { %v2315_v35 = vmul.f32 1.442695, %v2297_v20  ;;  %v2317_v16 = vmul.f32 1.442695, %v2298_v36 }
 0xeac   :  { %v2286_v56 = vpop.xlane.xlu0 %2285 }
 0xead   :  { %3893 = vpow2.f32 %v2315_v35  ;;  %v2299_v34 = vsub.f32 %v5784_v60, %v2286_v56  ;;  %v2300_v24 = vsub.f32 %v5779_v19, %v2286_v56 }
 0xeae   :  { %v5884_v57 = vpop.eup %3881  ;;  %3895 = vpow2.f32 %v2317_v16 }
 0xeaf   :  { %v5886_v45 = vpop.eup %3883  ;;  %v2319_v30 = vmul.f32 1.442695, %v2299_v34  ;;  %v2321_v59 = vmul.f32 1.442695, %v2300_v24 }
 0xeb0   :  { %3428 = vmatprep.mubr.msk.f32.mxu0 %vm899_vm2, %v5886_v45  ;;  %v2290_v52 = vpop.xlane.xlu1 %2289  ;;  %v2525_v23 = vpop.permute.xlu0 %2524 }
 0xeb1   :  { %3897 = vpow2.f32 %v2319_v30  ;;  %v2301_v41 = vsub.f32 %v5797_v25, %v2290_v52  ;;  %v2302_v33 = vsub.f32 %v5792_v50, %v2290_v52  ;;  %2410 = vmatmul.mubr.f32.vlgmr.msra.gmra.mxu0 %v5884_v57 }
 0xeb2   :  { %v5893_v19 = vpop.eup %3885  ;;  %3899 = vpow2.f32 %v2321_v59  ;;  %2585 = vmatpush1.msra.mxu0 %v2525_v23 }
 0xeb3   :  { %v5895_v60 = vpop.eup %3887  ;;  %v2323_v11 = vmul.f32 1.442695, %v2301_v41  ;;  %v2325_v37 = vmul.f32 1.442695, %v2302_v33  ;;  %2586 = vmatprep.subr.mxu0 %v6189_v47 }
 0xeb4   :  { %3429 = vmatprep.mubr.msk.f32.mxu0 %vm899_vm2, %v5895_v60  ;;  %v2523_v40 = vpop.permute.xlu1 %2522  ;;  %v2517_v39 = vpop.permute.xlu0 %2516 }
 0xeb5   :  { %3901 = vpow2.f32 %v2323_v11  ;;  %2416 = vmatmul.mubr.f32.gmra.mxu0 %v5893_v19 }
 0xeb6   :  { %v5901_v50 = vpop.eup %3889  ;;  %3903 = vpow2.f32 %v2325_v37  ;;  %2587 = vmatpush1.msra.mxu0 %v2523_v40 }
 0xeb7   :  { %v5903_v25 = vpop.eup %3891  ;;  %2588 = vmatprep.subr.mxu0 %v6189_v47 }
 0xeb8   :  { %3430 = vmatprep.mubr.msk.f32.mxu0 %vm899_vm2, %v5903_v25  ;;  %v2521_v1 = vpop.permute.xlu1 %2520  ;;  %v2513_v49 = vpop.permute.xlu0 %2512 }
 0xeb9   :  { %2422 = vmatmul.mubr.f32.gmra.mxu0 %v5901_v50 }
 0xeba   :  { %v5909_v6 = vpop.eup %3893  ;;  %2589 = vmatpush1.msra.mxu0 %v2521_v1 }
 0xebb   :  { %v5911_v0 = vpop.eup %3895  ;;  %2590 = vmatprep.subr.mxu0 %v6189_v47 }
 0xebc   :  { %3431 = vmatprep.mubr.msk.f32.mxu0 %vm899_vm2, %v5911_v0  ;;  %v2519_v14 = vpop.permute.xlu1 %2518  ;;  %v2509_v7 = vpop.permute.xlu0 %2508 }
 0xebd   :  { %2428 = vmatmul.mubr.f32.gmra.mxu0 %v5909_v6 }
 0xebe   :  { %v5917_v21 = vpop.eup %3897  ;;  %2591 = vmatpush1.msra.mxu0 %v2519_v14 }
 0xebf   :  { %v5919_v15 = vpop.eup %3899  ;;  %2592 = vmatprep.subr.mxu0 %v6189_v47 }
 0xec0   :  { %3432 = vmatprep.mubr.msk.f32.mxu0 %vm899_vm2, %v5919_v15  ;;  %2593 = vmatpush1.msra.mxu0 %v2517_v39  ;;  %v2515_v26 = vpop.permute.xlu1 %2514  ;;  %v2505_v22 = vpop.permute.xlu0 %2504 }
 0xec1   :  { %2434 = vmatmul.mubr.f32.gmra.mxu0 %v5917_v21  ;;  %2594 = vmatprep.subr.mxu0 %v6189_v47 }
 0xec2   :  { %v5926_v31 = vpop.eup %3901  ;;  %2595 = vmatpush1.msra.mxu0 %v2515_v26 }
 0xec3   :  { %v5928_v27 = vpop.eup %3903  ;;  %2596 = vmatprep.subr.mxu0 %v6189_v47 }
 0xec4   :  { %3433 = vmatprep.mubr.msk.f32.mxu0 %vm899_vm2, %v5928_v27  ;;  %2597 = vmatpush1.msra.mxu0 %v2513_v49  ;;  %v2511_v42 = vpop.permute.xlu1 %2510  ;;  %v2501_v32 = vpop.permute.xlu0 %2500 }
 0xec5   :  { %2440 = vmatmul.mubr.f32.gmra.mxu0 %v5926_v31  ;;  %2598 = vmatprep.subr.mxu0 %v6189_v47 }
 0xec6   :  { %2599 = vmatpush1.msra.mxu0 %v2511_v42 }
 0xec7   :  { %2600 = vmatprep.subr.mxu0 %v6189_v47 }
 0xec8   :  { %2601 = vmatpush1.msra.mxu0 %v2509_v7  ;;  %v2507_v62 = vpop.permute.xlu1 %2506  ;;  %v2497_v51 = vpop.permute.xlu0 %2496 }
 0xec9   :  { %2602 = vmatprep.subr.mxu0 %v6189_v47 }
 0xeca   :  { %2603 = vmatpush1.msra.mxu0 %v2507_v62 }
 0xecb   :  { %2604 = vmatprep.subr.mxu0 %v6189_v47 }
 0xecc   :  { %2605 = vmatpush1.msra.mxu0 %v2505_v22  ;;  %v2503_v9 = vpop.permute.xlu1 %2502  ;;  %v2541_v48 = vpop.permute.xlu0 %2540 }
 0xecd   :  { %2606 = vmatprep.subr.mxu0 %v6189_v47 }
 0xece   :  { %2607 = vmatpush1.msra.mxu0 %v2503_v9 }
 0xecf   :  { %2608 = vmatprep.subr.mxu0 %v6189_v47 }
 0xed0   :  { %2609 = vmatpush1.msra.mxu0 %v2501_v32  ;;  %v2499_v46 = vpop.permute.xlu1 %2498  ;;  %v2537_v54 = vpop.permute.xlu0 %2536 }
 0xed1   :  { %2610 = vmatprep.subr.mxu0 %v6189_v47 }
 0xed2   :  { %2611 = vmatpush1.msra.mxu0 %v2499_v46 }
 0xed3   :  { %2612 = vmatprep.subr.mxu0 %v6189_v47 }
 0xed4   :  { %2613 = vmatpush1.msra.mxu0 %v2497_v51  ;;  %v2495_v17 = vpop.permute.xlu1 %2494  ;;  %v2533_v18 = vpop.permute.xlu0 %2532 }
 0xed5   :  { %2614 = vmatprep.subr.mxu0 %v6189_v47 }
 0xed6   :  { %2615 = vmatpush1.msra.mxu0 %v2495_v17 }
 0xed7   :  { %2632 = vmatprep.subr.mxu0 %v6189_v47 }
 0xed8   :  { %2633 = vmatpush2.msra.mxu0 %v2541_v48  ;;  %v2539_v29 = vpop.permute.xlu1 %2538  ;;  %v2529_v44 = vpop.permute.xlu0 %2528 }
 0xed9   :  { %2634 = vmatprep.subr.mxu0 %v6189_v47 }
 0xeda   :  { %2635 = vmatpush2.msra.mxu0 %v2539_v29 }
 0xedb   :  { %2636 = vmatprep.subr.mxu0 %v6189_v47 }
 0xedc   :  { %2637 = vmatpush2.msra.mxu0 %v2537_v54  ;;  %v2535_v4 = vpop.permute.xlu1 %2534 }
 0xedd   :  { %2638 = vmatprep.subr.mxu0 %v6189_v47 }
 0xede   :  { %2639 = vmatpush2.msra.mxu0 %v2535_v4 }
 0xedf   :  { %2640 = vmatprep.subr.mxu0 %v6189_v47 }
 0xee0   :  { %2641 = vmatpush2.msra.mxu0 %v2533_v18  ;;  %v2531_v28 = vpop.permute.xlu1 %2530  ;;  %v3444_v18 = vld [vmem:[#allocation7 + $0xa] ss:$0 sm:$0xff] }
 0xee1   :  { %2642 = vmatprep.subr.mxu0 %v6189_v47 }
 0xee2   :  { %2643 = vmatpush2.msra.mxu0 %v2531_v28 }
 0xee3   :  { %2644 = vmatprep.subr.mxu0 %v6189_v47 }
 0xee4   :  { %2645 = vmatpush2.msra.mxu0 %v2529_v44  ;;  %v2527_v2 = vpop.permute.xlu1 %2526 }
 0xee5   :  { %2646 = vmatprep.subr.mxu0 %v6189_v47 }
 0xee6   :  { %2647 = vmatpush2.msra.mxu0 %v2527_v2 }
 0xee7   :  { %3682 = vmatprep.subr.bf16.mxu0 %v6189_v47 }
 0xf71   :  { %v2411_v12 = vpop.f32.mrf.mxu0 }
 0xf72   :  { %3905 = vrcp.f32 %v2411_v12 }
 0xf73   :  { %v2413_v53 = vpop.f32.mrf.mxu0 }
 0xf74   :  { %3907 = vrcp.f32 %v2413_v53 }
 0xf75   :  { %v2417_v5 = vpop.f32.mrf.mxu0 }
 0xf76   :  { %3909 = vrcp.f32 %v2417_v5 }
 0xf77   :  { %v2419_v43 = vpop.f32.mrf.mxu0 }
 0xf78   :  { %3911 = vrcp.f32 %v2419_v43 }
 0xf79   :  { %v2423_v3 = vpop.f32.mrf.mxu0 }
 0xf7a   :  { %3913 = vrcp.f32 %v2423_v3 }
 0xf7b   :  { %v2425_v55 = vpop.f32.mrf.mxu0 }
 0xf7c   :  { %3915 = vrcp.f32 %v2425_v55 }
 0xf7d   :  { %v2429_v20 = vpop.f32.mrf.mxu0 }
 0xf7e   :  { %3917 = vrcp.f32 %v2429_v20 }
 0xf7f   :  { %v2431_v36 = vpop.f32.mrf.mxu0  ;;  %v3906_v35 = vpop.eup %3905 }
 0xf80   :  { %3919 = vrcp.f32 %v2431_v36  ;;  %v2458_v30 = vmul.f32 %v3906_v35, %v5884_v57 }
 0xf81   :  { %v3908_v16 = vpop.eup %3907  ;;  %v2435_v56 = vpop.f32.mrf.mxu0 }
 0xf82   :  { %v2459_v34 = vmul.f32 %v3908_v16, %v5886_v45  ;;  %3921 = vrcp.f32 %v2435_v56 }
 0xf83   :  { %v2437_v24 = vpop.f32.mrf.mxu0  ;;  %v3910_v59 = vpop.eup %3909 }
 0xf84   :  { %3923 = vrcp.f32 %v2437_v24  ;;  %3434 = vmatprep.mubr.msk.f32.mxu0 %vm899_vm2, %v2459_v34  ;;  %v2460_v11 = vmul.f32 %v3910_v59, %v5893_v19 }
 0xf85   :  { %v3912_v52 = vpop.eup %3911  ;;  %v2441_v23 = vpop.f32.mrf.mxu0  ;;  %2649 = vmatmul.mubr.f32.vlgmr.msra.gmra.mxu0 %v2458_v30 }
 0xf86   :  { %v2461_v41 = vmul.f32 %v3912_v52, %v5895_v60  ;;  %3925 = vrcp.f32 %v2441_v23 }
 0xf87   :  { %v2443_v33 = vpop.f32.mrf.mxu0  ;;  %v3914_v37 = vpop.eup %3913 }
 0xf88   :  { %3927 = vrcp.f32 %v2443_v33  ;;  %3435 = vmatprep.mubr.msk.f32.mxu0 %vm899_vm2, %v2461_v41  ;;  %v2462_v40 = vmul.f32 %v3914_v37, %v5901_v50 }
 0xf89   :  { %v3916_v45 = vpop.eup %3915  ;;  %2654 = vmatmul.mubr.f32.gmra.mxu0 %v2460_v11 }
 0xf8a   :  { %v2463_v57 = vmul.f32 %v3916_v45, %v5903_v25 }
 0xf8b   :  { %v3918_v39 = vpop.eup %3917 }
 0xf8c   :  { %3436 = vmatprep.mubr.msk.f32.mxu0 %vm899_vm2, %v2463_v57  ;;  %v2464_v49 = vmul.f32 %v3918_v39, %v5909_v6  ;;  %v3784_v6 = vld [vmem:[%s6140_s5 + $0x10] sm:$0xff]  }
 0xf8d   :  { %v3920_v1 = vpop.eup %3919  ;;  %2659 = vmatmul.mubr.f32.gmra.mxu0 %v2462_v40  ;;  %3669 = vmatpush3.bf16.msra.mxu1 %v3784_v6 }
 0xf8e   :  { %v2465_v60 = vmul.f32 %v3920_v1, %v5911_v0  ;;  %3698 = vmatprep.subr.bf16.mxu1 %v6189_v47 }
 0xf8f   :  { %v3922_v19 = vpop.eup %3921 }
 0xf90   :  { %3437 = vmatprep.mubr.msk.f32.mxu0 %vm899_vm2, %v2465_v60  ;;  %v2466_v25 = vmul.f32 %v3922_v19, %v5917_v21 }
 0xf91   :  { %v3924_v14 = vpop.eup %3923  ;;  %2664 = vmatmul.mubr.f32.gmra.mxu0 %v2464_v49 }
 0xf92   :  { %v2467_v7 = vmul.f32 %v3924_v14, %v5919_v15 }
 0xf93   :  { %v3926_v26 = vpop.eup %3925 }
 0xf94   :  { %3438 = vmatprep.mubr.msk.f32.mxu0 %vm899_vm2, %v2467_v7  ;;  %v2468_v0 = vmul.f32 %v3926_v26, %v5926_v31 }
 0xf95   :  { %v3928_v50 = vpop.eup %3927  ;;  %2669 = vmatmul.mubr.f32.gmra.mxu0 %v2466_v25 }
 0xf96   :  { %v2469_v22 = vmul.f32 %v3928_v50, %v5928_v27 }
 0xf98   :  { %3439 = vmatprep.mubr.msk.f32.mxu0 %vm899_vm2, %v2469_v22 }
 0xf99   :  { %2674 = vmatmul.mubr.f32.gmra.mxu0 %v2468_v0 }
 0xf9a   :  { %3686 = vmatprep.mubr.msk.bf16.mxu0 %vm4122_vm0, %v6189_v47 }
0x1045   :  { %v2650_v21 = vpop.f32.mrf.mxu0 }
0x1047   :  { %v2652_v15 = vpop.f32.mrf.mxu0 }
0x1049   :  { %v2655_v42 = vpop.f32.mrf.mxu0 }
0x104a   :  { %v2679_v32 = vpack.c.bf16 %v2655_v42, %v2650_v21 }
0x104b   :  { %v2657_v27 = vpop.f32.mrf.mxu0 }
0x104c   :  { %3671 = vmatmul.mubr.msk.bf16.vlgmr.msra.gmra.mxu1 %vm150_vm1, %v2679_v32 }
0x104d   :  { %v2660_v31 = vpop.f32.mrf.mxu0  ;;  %3674 = vmatprep.mubr.msk.bf16.mxu1 %vm4122_vm0, %v6189_v47 }
0x104f   :  { %v2662_v62 = vpop.f32.mrf.mxu0 }
0x1051   :  { %v2665_v51 = vpop.f32.mrf.mxu0 }
0x1052   :  { %v2680_v9 = vpack.c.bf16 %v2665_v51, %v2660_v31 }
0x1053   :  { %v2667_v46 = vpop.f32.mrf.mxu0 }
0x1054   :  { %3675 = vmatmul.mubr.msk.bf16.gmra.mxu1 %vm150_vm1, %v2680_v9 }
0x1055   :  { %v2670_v48 = vpop.f32.mrf.mxu0  ;;  %3678 = vmatprep.mubr.msk.bf16.mxu1 %vm4122_vm0, %v6189_v47 }
0x1057   :  { %v2672_v17 = vpop.f32.mrf.mxu0 }
0x1059   :  { %v2675_v54 = vpop.f32.mrf.mxu0 }
0x105a   :  { %v2681_v29 = vpack.c.bf16 %v2675_v54, %v2670_v48 }
0x105b   :  { %v2677_v4 = vpop.f32.mrf.mxu0 }
0x105c   :  { %3679 = vmatmul.mubr.msk.bf16.gmra.mxu1 %vm150_vm1, %v2681_v29  ;;  %v3785_v29 = vld [vmem:[#allocation5 + $0x18] sm:$0xff]   ;;  %v3786_v4 = vld [vmem:[#allocation5 + $0x10] sm:$0xff]  }
0x105d   :  { %3714 = vmatprep.mubr.msk.bf16.mxu1 %vm4122_vm0, %v6189_v47  ;;  %3683 = vmatpush3.bf16.msra.mxu0 %v3785_v29  ;;  %v3453_v29 = vld [vmem:[%s6139_s4 + $0x3] ss:$0 sm:$0xff] }
0x105e   :  { %3684 = vmatprep.subr.bf16.mxu0 %v6189_v47 }
0x1061   :  { %3685 = vmatpush3.bf16.msra.mxu0 %v3786_v4 }
0x1062   :  { %3726 = vmatprep.subr.mxu0 %v6189_v47 }
0x110c   :  { %v2747_v28 = vpop.f32.mrf.mxu1 }
0x110d   :  { %v2748_v44 = vadd.f32 %v3444_v18, %v2747_v28  ;;  %v3788_v28 = vld [vmem:[%s6142_s7 + $0x70] sm:$0xff]  }
0x110e   :  { %v3672_v2 = vpop.f32.mrf.mxu1 }
0x110f   :  { %v5990_v63 = vadd.f32 %v2748_v44, %v5493_v61  ;;  %v3789_v44 = vld [vmem:[%s6142_s7 + $0x68] sm:$0xff]   ;;  %v3790_v2 = vld [vmem:[%s6142_s7 + $0x60] sm:$0xff]  }
0x1110   :  { %v2750_v12 = vpop.f32.mrf.mxu1 }
0x1111   :  { %v2751_v53 = vadd.f32 %v3444_v18, %v2750_v12  ;;  %v2778_v5 = vsel %vm150_vm1, %v5990_v63, 0.0  ;;  %v3791_v12 = vld [vmem:[%s6142_s7 + $0x58] sm:$0xff]  }
0x1112   :  { %2779 = vadd.xlane.f32.xlu0 %v2778_v5  ;;  %v3673_v43 = vpop.f32.mrf.mxu1 }
0x1113   :  { %v5995_v3 = vadd.f32 %v2751_v53, %v5498_v38 }
0x1114   :  { %v2755_v55 = vpop.f32.mrf.mxu1 }
0x1115   :  { %v2756_v20 = vadd.f32 %v3444_v18, %v2755_v55  ;;  %v2781_v36 = vsel %vm150_vm1, %v5995_v3, 0.0 }
0x1116   :  { %2782 = vadd.xlane.f32.xlu1 %v2781_v36  ;;  %v3676_v35 = vpop.f32.mrf.mxu1 }
0x1117   :  { %v6000_v61 = vadd.f32 %v2756_v20, %v5503_v58 }
0x1118   :  { %v2758_v16 = vpop.f32.mrf.mxu1 }
0x1119   :  { %v2759_v56 = vadd.f32 %v3444_v18, %v2758_v16  ;;  %v2784_v34 = vsel %vm150_vm1, %v6000_v61, 0.0 }
0x111a   :  { %2785 = vadd.xlane.f32.xlu0 %v2784_v34  ;;  %v3677_v24 = vpop.f32.mrf.mxu1 }
0x111b   :  { %v6005_v38 = vadd.f32 %v2759_v56, %v5508_v10 }
0x111c   :  { %v2763_v30 = vpop.f32.mrf.mxu1 }
0x111d   :  { %v2764_v59 = vadd.f32 %v3444_v18, %v2763_v30  ;;  %v2787_v52 = vsel %vm150_vm1, %v6005_v38, 0.0 }
0x111e   :  { %2788 = vadd.xlane.f32.xlu0 %v2787_v52  ;;  %v3680_v23 = vpop.f32.mrf.mxu1 }
0x111f   :  { %v6010_v58 = vadd.f32 %v2764_v59, %v5513_v8 }
0x1120   :  { %v2766_v41 = vpop.f32.mrf.mxu1 }
0x1121   :  { %v2767_v33 = vadd.f32 %v3444_v18, %v2766_v41  ;;  %v2790_v11 = vsel %vm150_vm1, %v6010_v58, 0.0  ;;  %v3787_v18 = vld [vmem:[%s6142_s7 + $0x78] sm:$0xff]  }
0x1122   :  { %2791 = vadd.xlane.f32.xlu0 %v2790_v11  ;;  %v3681_v37 = vpop.f32.mrf.mxu1  ;;  %3699 = vmatpush3.bf16.msra.mxu1 %v3787_v18  ;;  %v3450_v11 = vld [vmem:[#allocation7 + $0xb] ss:$0 sm:$0xff] }
0x1123   :  { %v6015_v10 = vadd.f32 %v2767_v33, %v5518_v13  ;;  %3700 = vmatprep.subr.bf16.mxu1 %v6189_v47 }
0x1125   :  { %v2793_v45 = vsel %vm150_vm1, %v6015_v10, 0.0 }
0x1126   :  { %2794 = vadd.xlane.f32.xlu1 %v2793_v45  ;;  %3701 = vmatpush3.bf16.msra.mxu1 %v3788_v28 }
0x1127   :  { %3702 = vmatprep.subr.bf16.mxu1 %v6189_v47 }
0x112a   :  { %3703 = vmatpush3.bf16.msra.mxu1 %v3789_v44 }
0x112b   :  { %3704 = vmatprep.subr.bf16.mxu1 %v6189_v47 }
0x112e   :  { %3705 = vmatpush3.bf16.msra.mxu1 %v3790_v2 }
0x112f   :  { %3706 = vmatprep.subr.bf16.mxu1 %v6189_v47 }
0x1132   :  { %3707 = vmatpush3.bf16.msra.mxu1 %v3791_v12 }
0x1133   :  { %3708 = vmatprep.subr.bf16.mxu1 %v6189_v47 }
0x119b   :  { %v2780_v57 = vpop.xlane.xlu0 %2779 }
0x119c   :  { %v2796_v40 = vmul.f32 0.03125, %v2780_v57 }
0x119e   :  { %v6020_v39 = vsub.f32 %v5990_v63, %v2796_v40 }
0x119f   :  { %v2783_v8 = vpop.xlane.xlu1 %2782 }
0x11a0   :  { %v2797_v1 = vmul.f32 0.03125, %v2783_v8  ;;  %v2808_v60 = vmul.f32 %v6020_v39, %v6020_v39 }
0x11a2   :  { %v6025_v49 = vsub.f32 %v5995_v3, %v2797_v1  ;;  %v2814_v13 = vsel %vm150_vm1, %v2808_v60, 0.0  ;;  %v3451_v60 = vld [vmem:[#allocation7 + $0xc] ss:$0 sm:$0xff] }
0x11a3   :  { %v2786_v19 = vpop.xlane.xlu0 %2785  ;;  %2815 = vadd.xlane.f32.xlu0 %v2814_v13 }
0x11a4   :  { %v2798_v14 = vmul.f32 0.03125, %v2786_v19  ;;  %v2809_v7 = vmul.f32 %v6025_v49, %v6025_v49 }
0x11a6   :  { %v6031_v25 = vsub.f32 %v6000_v61, %v2798_v14  ;;  %v2817_v26 = vsel %vm150_vm1, %v2809_v7, 0.0 }
0x11a7   :  { %v2789_v50 = vpop.xlane.xlu0 %2788  ;;  %2818 = vadd.xlane.f32.xlu1 %v2817_v26 }
0x11a8   :  { %v2799_v22 = vmul.f32 0.03125, %v2789_v50  ;;  %v2810_v0 = vmul.f32 %v6031_v25, %v6031_v25 }
0x11aa   :  { %v6037_v6 = vsub.f32 %v6005_v38, %v2799_v22  ;;  %v2820_v21 = vsel %vm150_vm1, %v2810_v0, 0.0 }
0x11ab   :  { %2821 = vadd.xlane.f32.xlu0 %v2820_v21  ;;  %v2792_v15 = vpop.xlane.xlu0 %2791 }
0x11ac   :  { %v2800_v42 = vmul.f32 0.03125, %v2792_v15  ;;  %v2811_v32 = vmul.f32 %v6037_v6, %v6037_v6 }
0x11ae   :  { %v6043_v27 = vsub.f32 %v6010_v58, %v2800_v42  ;;  %v2823_v31 = vsel %vm150_vm1, %v2811_v32, 0.0 }
0x11af   :  { %2824 = vadd.xlane.f32.xlu1 %v2823_v31  ;;  %v2795_v62 = vpop.xlane.xlu1 %2794 }
0x11b0   :  { %v2801_v51 = vmul.f32 0.03125, %v2795_v62  ;;  %v2812_v9 = vmul.f32 %v6043_v27, %v6043_v27 }
0x11b2   :  { %v6049_v46 = vsub.f32 %v6015_v10, %v2801_v51  ;;  %v2826_v48 = vsel %vm150_vm1, %v2812_v9, 0.0 }
0x11b3   :  { %2827 = vadd.xlane.f32.xlu0 %v2826_v48 }
0x11b4   :  { %v2813_v17 = vmul.f32 %v6049_v46, %v6049_v46 }
0x11b6   :  { %v2829_v54 = vsel %vm150_vm1, %v2813_v17, 0.0 }
0x11b7   :  { %2830 = vadd.xlane.f32.xlu1 %v2829_v54  ;;  %v3794_v54 = vld [vmem:[%s6142_s7 + $0x40] sm:$0xff]  }
0x122c   :  { %v2816_v53 = vpop.xlane.xlu0 %2815 }
0x122d   :  { %v2832_v5 = vmul.f32 0.03125, %v2816_v53 }
0x122f   :  { %v2838_v43 = vadd.f32 1e-05, %v2832_v5 }
0x1230   :  { %v2819_v55 = vpop.xlane.xlu1 %2818 }
0x1231   :  { %3929 = vrsqrt.f32 %v2838_v43  ;;  %v2833_v20 = vmul.f32 0.03125, %v2819_v55 }
0x1233   :  { %v2839_v36 = vadd.f32 1e-05, %v2833_v20 }
0x1234   :  { %v2822_v35 = vpop.xlane.xlu0 %2821 }
0x1235   :  { %3931 = vrsqrt.f32 %v2839_v36  ;;  %v2834_v16 = vmul.f32 0.03125, %v2822_v35 }
0x1237   :  { %v2840_v56 = vadd.f32 1e-05, %v2834_v16 }
0x1238   :  { %v2825_v34 = vpop.xlane.xlu1 %2824 }
0x1239   :  { %3933 = vrsqrt.f32 %v2840_v56  ;;  %v2835_v24 = vmul.f32 0.03125, %v2825_v34 }
0x123b   :  { %v2841_v30 = vadd.f32 1e-05, %v2835_v24 }
0x123c   :  { %v2828_v59 = vpop.xlane.xlu0 %2827 }
0x123d   :  { %3935 = vrsqrt.f32 %v2841_v30  ;;  %v2836_v52 = vmul.f32 0.03125, %v2828_v59 }
0x123e   :  { %v3930_v23 = vpop.eup %3929 }
0x123f   :  { %v2850_v41 = vmul.f32 %v3930_v23, %v6020_v39  ;;  %v2842_v33 = vadd.f32 1e-05, %v2836_v52 }
0x1240   :  { %v2831_v37 = vpop.xlane.xlu1 %2830 }
0x1241   :  { %3937 = vrsqrt.f32 %v2842_v33  ;;  %v2837_v45 = vmul.f32 0.03125, %v2831_v37  ;;  %v2860_v40 = vmul.f32 %v3450_v11, %v2850_v41 }
0x1242   :  { %v3932_v57 = vpop.eup %3931 }
0x1243   :  { %v2851_v8 = vmul.f32 %v3932_v57, %v6025_v49  ;;  %v2843_v1 = vadd.f32 1e-05, %v2837_v45  ;;  %v2870_v14 = vadd.f32 %v3451_v60, %v2860_v40 }
0x1245   :  { %v2861_v13 = vmul.f32 %v3450_v11, %v2851_v8  ;;  %3939 = vrsqrt.f32 %v2843_v1 }
0x1246   :  { %v3934_v19 = vpop.eup %3933 }
0x1247   :  { %v2871_v7 = vadd.f32 %v3451_v60, %v2861_v13  ;;  %v2852_v26 = vmul.f32 %v3934_v19, %v6031_v25 }
0x1249   :  { %v2876_v50 = vpack.c.bf16 %v2871_v7, %v2870_v14  ;;  %v2862_v0 = vmul.f32 %v3450_v11, %v2852_v26 }
0x124a   :  { %v3936_v39 = vpop.eup %3935 }
0x124b   :  { %3687 = vmatmul.mubr.msk.bf16.vlgmr.msra.gmra.mxu0 %vm150_vm1, %v2876_v50  ;;  %v2853_v22 = vmul.f32 %v3936_v39, %v6037_v6  ;;  %v2872_v15 = vadd.f32 %v3451_v60, %v2862_v0  ;;  %v3475_v39 = vld [vmem:[#allocation7 + $0xd] ss:$0 sm:$0xff] }
0x124c   :  { %3690 = vmatprep.mubr.msk.bf16.mxu0 %vm4122_vm0, %v6189_v47 }
0x124d   :  { %v2863_v49 = vmul.f32 %v3450_v11, %v2853_v22 }
0x124e   :  { %v3938_v21 = vpop.eup %3937 }
0x124f   :  { %v2873_v42 = vadd.f32 %v3451_v60, %v2863_v49  ;;  %v2854_v32 = vmul.f32 %v3938_v21, %v6043_v27  ;;  %v3792_v27 = vld [vmem:[%s6142_s7 + $0x50] sm:$0xff]  }
0x1250   :  { %3709 = vmatpush3.bf16.msra.mxu1 %v3792_v27 }
0x1251   :  { %v2877_v31 = vpack.c.bf16 %v2873_v42, %v2872_v15  ;;  %v2864_v51 = vmul.f32 %v3450_v11, %v2854_v32  ;;  %3710 = vmatprep.subr.bf16.mxu1 %v6189_v47 }
0x1252   :  { %v3940_v62 = vpop.eup %3939 }
0x1253   :  { %3691 = vmatmul.mubr.msk.bf16.gmra.mxu0 %vm150_vm1, %v2877_v31  ;;  %v2855_v25 = vmul.f32 %v3940_v62, %v6049_v46  ;;  %v2874_v9 = vadd.f32 %v3451_v60, %v2864_v51  ;;  %v3793_v46 = vld [vmem:[%s6142_s7 + $0x48] sm:$0xff]  }
0x1254   :  { %3694 = vmatprep.mubr.msk.bf16.mxu0 %vm4122_vm0, %v6189_v47  ;;  %3711 = vmatpush3.bf16.msra.mxu1 %v3793_v46 }
0x1255   :  { %v2865_v6 = vmul.f32 %v3450_v11, %v2855_v25  ;;  %3712 = vmatprep.subr.bf16.mxu1 %v6189_v47 }
0x1257   :  { %v2875_v48 = vadd.f32 %v3451_v60, %v2865_v6 }
0x1258   :  { %3713 = vmatpush3.bf16.msra.mxu1 %v3794_v54  ;;  %v3795_v54 = vld [vmem:[#allocation8 + $0x8] sm:$0xff]  }
0x1259   :  { %v2878_v17 = vpack.c.bf16 %v2875_v48, %v2874_v9 }
0x125b   :  { %3695 = vmatmul.mubr.msk.bf16.gmra.mxu0 %vm150_vm1, %v2878_v17 }
0x125c   :  { %3738 = vmatprep.mubr.msk.f32.mxu0 %vm4122_vm0, %v6189_v47 }
0x130b   :  { %v2944_v4 = vpop.f32.mrf.mxu0 }
0x130c   :  { %v2945_v28 = vadd.f32 %v3453_v29, %v2944_v4 }
0x130d   :  { %v3688_v18 = vpop.f32.mrf.mxu0 }
0x130e   :  { %v2967_v53 = vmax.f32 %v2945_v28, 0.0 }
0x130f   :  { %v2947_v44 = vpop.f32.mrf.mxu0 }
0x1310   :  { %v2948_v2 = vadd.f32 %v3453_v29, %v2947_v44 }
0x1311   :  { %v3689_v12 = vpop.f32.mrf.mxu0 }
0x1312   :  { %v2968_v5 = vmax.f32 %v2948_v2, 0.0  ;;  %v3485_v2 = vld [vmem:[#allocation7 + $0x10] ss:$0 sm:$0xff] }
0x1313   :  { %v2952_v43 = vpop.f32.mrf.mxu0 }
0x1314   :  { %v2973_v55 = vpack.c.bf16 %v2968_v5, %v2967_v53  ;;  %v2953_v36 = vadd.f32 %v3453_v29, %v2952_v43  ;;  %v3486_v53 = vld [vmem:[#allocation7 + $0x11] ss:$0 sm:$0xff] }
0x1315   :  { %v3692_v20 = vpop.f32.mrf.mxu0 }
0x1316   :  { %3715 = vmatmul.mubr.bf16.vlgmr.msra.gmra.mxu1 %v2973_v55  ;;  %v2969_v34 = vmax.f32 %v2953_v36, 0.0  ;;  %v3487_v20 = vld [vmem:[%s6149_s14] ss:$0 sm:$0xff] }
0x1317   :  { %v2955_v35 = vpop.f32.mrf.mxu0  ;;  %3718 = vmatprep.mubr.msk.bf16.mxu1 %vm4122_vm0, %v6189_v47 }
0x1318   :  { %v2956_v16 = vadd.f32 %v3453_v29, %v2955_v35 }
0x1319   :  { %v3693_v56 = vpop.f32.mrf.mxu0 }
0x131a   :  { %v2970_v24 = vmax.f32 %v2956_v16, 0.0 }
0x131b   :  { %v2960_v30 = vpop.f32.mrf.mxu0 }
0x131c   :  { %v2974_v59 = vpack.c.bf16 %v2970_v24, %v2969_v34  ;;  %v2961_v23 = vadd.f32 %v3453_v29, %v2960_v30 }
0x131d   :  { %v3696_v52 = vpop.f32.mrf.mxu0 }
0x131e   :  { %3719 = vmatmul.mubr.bf16.gmra.mxu1 %v2974_v59  ;;  %v2971_v37 = vmax.f32 %v2961_v23, 0.0 }
0x131f   :  { %v2963_v41 = vpop.f32.mrf.mxu0  ;;  %3722 = vmatprep.mubr.msk.bf16.mxu1 %vm4122_vm0, %v6189_v47 }
0x1320   :  { %v2964_v33 = vadd.f32 %v3453_v29, %v2963_v41  ;;  %v3796_v29 = vld [vmem:[#allocation8] sm:$0xff]  }
0x1321   :  { %v3697_v11 = vpop.f32.mrf.mxu0 }
0x1322   :  { %v2972_v45 = vmax.f32 %v2964_v33, 0.0 }
0x1324   :  { %v2975_v57 = vpack.c.bf16 %v2972_v45, %v2971_v37 }
0x1326   :  { %3723 = vmatmul.mubr.bf16.gmra.mxu1 %v2975_v57 }
0x13d6   :  { %v3080_v40 = vpop.f32.mrf.mxu1 }
0x13d7   :  { %v3081_v51 = vadd.f32 %v3475_v39, %v3080_v40 }
0x13d8   :  { %v3716_v8 = vpop.f32.mrf.mxu1 }
0x13da   :  { %v3083_v1 = vpop.f32.mrf.mxu1 }
0x13db   :  { %v3084_v62 = vadd.f32 %v3475_v39, %v3083_v1 }
0x13dc   :  { %v3717_v60 = vpop.f32.mrf.mxu1 }
0x13de   :  { %v3088_v13 = vpop.f32.mrf.mxu1 }
0x13df   :  { %v3089_v32 = vadd.f32 %v3475_v39, %v3088_v13 }
0x13e0   :  { %v3720_v19 = vpop.f32.mrf.mxu1 }
0x13e1   :  { %v3105_v6 = vadd.f32 %v3089_v32, %v6000_v61 }
0x13e2   :  { %v3091_v14 = vpop.f32.mrf.mxu1 }
0x13e3   :  { %v3092_v15 = vadd.f32 %v3475_v39, %v3091_v14 }
0x13e4   :  { %v3721_v7 = vpop.f32.mrf.mxu1 }
0x13e5   :  { %v3106_v25 = vadd.f32 %v3092_v15, %v6005_v38  ;;  %v3109_v38 = vld [vmem:[%s6147_s12] sm:$0x3] }
0x13e6   :  { %v3096_v26 = vpop.f32.mrf.mxu1 }
0x13e7   :  { %v3097_v0 = vadd.f32 %v3475_v39, %v3096_v26 }
0x13e8   :  { %v3724_v50 = vpop.f32.mrf.mxu1 }
0x13e9   :  { %v3107_v31 = vadd.f32 %v3097_v0, %v6010_v58  ;;  %v3103_v58 = vadd.f32 %v3081_v51, %v5990_v63 }
0x13ea   :  { %v3099_v22 = vpop.f32.mrf.mxu1 }
0x13eb   :  { %v3100_v49 = vadd.f32 %v3475_v39, %v3099_v22 }
0x13ec   :  { %v3725_v21 = vpop.f32.mrf.mxu1 }
0x13ed   :  { %v3108_v42 = vadd.f32 %v3100_v49, %v6015_v10  ;;  %v3104_v10 = vadd.f32 %v3084_v62, %v5995_v3 }
0x13ef   :  { %3727 = vmatpush3.msra.mxu0 %v3108_v42 }
0x13f0   :  { %3728 = vmatprep.subr.mxu0 %v6189_v47 }
0x13f1   :  { %3729 = vmatpush3.msra.mxu0 %v3107_v31 }
0x13f2   :  { %3730 = vmatprep.subr.mxu0 %v6189_v47 }
0x13f3   :  { %3731 = vmatpush3.msra.mxu0 %v3106_v25 }
0x13f4   :  { %3732 = vmatprep.subr.mxu0 %v6189_v47 }
0x13f5   :  { %3733 = vmatpush3.msra.mxu0 %v3105_v6 }
0x13f6   :  { %3734 = vmatprep.subr.mxu0 %v6189_v47 }
0x13f7   :  { %3735 = vmatpush3.msra.mxu0 %v3104_v10 }
0x13f8   :  { %3736 = vmatprep.subr.mxu0 %v6189_v47 }
0x13f9   :  { %3737 = vmatpush3.msra.mxu0 %v3103_v58 }
0x13fa   :  { %3739 = vmatmul.mubr.msk.f32.vlgmr.msra.gmra.mxu0 %vm3110_vm3, %v3109_v38  ;;  %3741 = vmatprep.subr.bf16.mxu0 %v6189_v47 }
0x13fb   :  { %3745 = vmatprep.mubr.msk.bf16.mxu0 %vm4122_vm0, %v6189_v47  ;;  %3742 = vmatpush3.bf16.msra.mxu0 %v3795_v54 }
0x13fc   :  { %3743 = vmatprep.subr.bf16.mxu0 %v6189_v47 }
0x13ff   :  { %3744 = vmatpush3.bf16.msra.mxu0 %v3796_v29 }
0x14ba   :  { %v3180_v3 = vpop.f32.mrf.mxu0 }
0x14bb   :  { %v3188_v61 = vsel %vm3187_vm4, %v3180_v3, 0.0 }
0x14bc   :  { %3189 = vadd.xlane.f32.xlu0 %v3188_v61  ;;  %v3740_v63 = vpop.f32.mrf.mxu0 }
0x1545   :  { %v3190_v9 = vpop.xlane.xlu0 %3189 }
0x1546   :  { %v3191_v48 = vmul.f32 0.03125, %v3190_v9 }
0x1548   :  { %v3192_v17 = vsub.f32 %v3180_v3, %v3191_v48 }
0x154a   :  { %v3193_v27 = vmul.f32 %v3192_v17, %v3192_v17 }
0x154c   :  { %v3194_v46 = vsel %vm3187_vm4, %v3193_v27, 0.0 }
0x154d   :  { %3195 = vadd.xlane.f32.xlu1 %v3194_v46 }
0x15d6   :  { %v3196_v4 = vpop.xlane.xlu1 %3195 }
0x15d7   :  { %v3197_v18 = vmul.f32 0.03125, %v3196_v4 }
0x15d9   :  { %v3198_v28 = vadd.f32 1e-05, %v3197_v18 }
0x15db   :  { %3941 = vrsqrt.f32 %v3198_v28 }
0x15e8   :  { %v3942_v44 = vpop.eup %3941 }
0x15e9   :  { %v3200_v12 = vmul.f32 %v3942_v44, %v3192_v17 }
0x15eb   :  { %v3205_v5 = vmul.f32 %v3485_v2, %v3200_v12 }
0x15ed   :  { %v3210_v43 = vadd.f32 %v3486_v53, %v3205_v5 }
0x15ef   :  { %v3211_v55 = vpack.c.bf16 %v3210_v43, %v3210_v43 }
0x15f1   :  { %3746 = vmatmul.mubr.msk.bf16.vlgmr.msra.gmra.mxu0 %vm150_vm1, %v3211_v55 }
0x16b1   :  { %v3272_v36 = vpop.f32.mrf.mxu0 }
0x16b2   :  { %v3273_v47 = vadd.f32 %v3487_v20, %v3272_v36 }
0x16b3   :  { %v3747_v35 = vpop.f32.mrf.mxu0 }
0x16b4   :  { %v3278_v16 = vmul.f32 %v3273_v47, %v3273_v47 }
0x16b5   :  { %v3275_v56 = vpop.f32.mrf.mxu0 }
0x16b6   :  { %v3280_v34 = vsel %vm3279_vm5, %v3278_v16, 0.0 }
0x16b7   :  { %3281 = vadd.xlane.f32.xlu0 %v3280_v34  ;;  %v3748_v24 = vpop.f32.mrf.mxu0 }
0x1740   :  { %v3282_v30 = vpop.xlane.xlu0 %3281 }
0x1741   :  { %v3283_v59 = vmax.f32 %v3282_v30, 1e-24 }
0x1743   :  { %3943 = vrsqrt.f32 %v3283_v59 }
0x1750   :  { %v3944_v52 = vpop.eup %3943 }
0x1751   :  { %v3285_v23 = vmul.f32 %v3944_v52, %v3273_v47 }
0x1753   :  { %3286 = vst [vmem:[#allocation10] sm:$0x3] %v3285_v23 }
0x1754   :  { %4096 = shalt.err (!%p4093_p10)
}
0x1755   :  { %3296 = dma.vmem_to_hbm [thread:$0]  %s3294_s25, 32, %s6150_s15, [#allocation4]  }
0x1756   :  { %4111 = dma.done.wait [#allocation4], 32  }
0x1757   :  { %4112 = vsyncadd [#allocation4], 4294967264 }
0x1758   :  { %3300 = vsyncpa [#allocation3], 1 }
0x1759   :  { %3301 = vsyncpa [#allocation6], 1 }
0x175a   :  { %3302 = vsyncpa [#allocation9], 1 }
0x175b   :  { %3303 = vsyncpa [#allocation4], 1 }

</bundles_post_ra>
